<compile_context>
chip_gen: v6e
topology: v6e:2x2x1
jax: 0.10.0
libtpu: 0.0.40
codegen_flags: <defaults>
</compile_context>

<pallas_src>
import functools

import jax
import jax.numpy as jnp
import numpy as np
from jax import lax
from jax.experimental import pallas as pl
from jax.experimental.pallas import tpu as pltpu

PAD_ID = -1
LANES = 128          # lane width / j-tile size
SUBLANES = 8         # int32 sublane group


def _exclude_words_kernel(exc_ref, tok_ref, out_ref, cnt_ref, *,
                          num_excluded, seq_len, pad_id, j_tile):
    # exc_ref : SMEM int32 [E]            (scalar-prefetched)
    # tok_ref : VMEM int32 [B_TILE, S_pad]
    # out_ref : VMEM int32 [B_TILE, S_pad]
    # cnt_ref : VMEM int32 [B_TILE, LANES] (lane-dense count, replicated)
    tok = tok_ref[...]
    bt, sp = tok.shape
    lane = lax.broadcasted_iota(jnp.int32, (bt, sp), 1)

    # --- membership test: keep[b,i] = (i < seq_len) and (tok[b,i] not in excluded)
    keep = lane < seq_len                       # also kills the lane padding
    for e in range(num_excluded):               # E is static & small
        keep = jnp.logical_and(keep, tok != exc_ref[e])
    keep_i32 = keep.astype(jnp.int32)

    # --- inclusive prefix sum along lanes: Hillis-Steele log-step scan on XLU rolls
    # psum[b,i] = # kept among positions <= i
    psum = keep_i32
    shift = 1
    while shift < sp:                           # ceil(log2(sp)) steps
        rolled = pltpu.roll(psum, shift=shift, axis=1)     # rolled[i] = psum[i-shift]
        psum = psum + jnp.where(lane >= shift, rolled, 0)  # mask out the wrap-around
        shift *= 2

    count = jnp.sum(keep_i32, axis=-1, keepdims=True)      # [bt, 1]

    # destination slot of each kept token; dropped tokens get -1 (never matches j >= 0)
    pos = jnp.where(keep, psum - 1, -1)                    # [bt, sp]

    # --- stable compaction: one-hot scatter-sum, tiled over output positions j
    # (intermediates bounded to [bt, j_tile, sp] instead of [bt, sp, sp])
    num_j_tiles = sp // j_tile                  # static at trace time
    for jt in range(num_j_tiles):
        j_base = jt * j_tile
        j_vals = j_base + lax.broadcasted_iota(jnp.int32, (1, j_tile, 1), 1)
        sel = pos[:, None, :] == j_vals                              # [bt, j_tile, sp]
        tile = jnp.sum(jnp.where(sel, tok[:, None, :], 0), axis=-1)  # [bt, j_tile]
        j_idx = j_base + lax.broadcasted_iota(jnp.int32, (bt, j_tile), 1)
        out_ref[:, j_base:j_base + j_tile] = jnp.where(j_idx < count, tile, pad_id)

    cnt_ref[...] = jnp.broadcast_to(count, cnt_ref.shape)


def exclude_words(tokens: jax.Array, excluded_ids: jax.Array, *,
                  pad_id: int = PAD_ID, b_tile: int = SUBLANES,
                  j_tile: int = LANES):
    """tokens: int [B, S]; excluded_ids: int [E] -> (out [B,S], count [B,1])."""
    tokens = tokens.astype(jnp.int32)
    B, S = tokens.shape
    E = int(excluded_ids.shape[0])

    # Pad to TPU-friendly tiles: lanes multiple of 128, batch multiple of b_tile.
    s_pad = max(j_tile, ((S + j_tile - 1) // j_tile) * j_tile)
    b_pad = ((B + b_tile - 1) // b_tile) * b_tile
    tok_p = jnp.pad(tokens, ((0, b_pad - B), (0, s_pad - S)))
    if E == 0:
        exc = jnp.zeros((1,), jnp.int32)   # dummy, never read (num_excluded=0)
    else:
        exc = excluded_ids.astype(jnp.int32)

    # Tile-derived scoped-VMEM budget (double-buffered blocks + j-tile scatter
    # intermediates), clamped to stay honest on v7x's 64 MiB physical VMEM.
    est = (4 * b_tile * s_pad * 4            # tok + out blocks, double buffered
           + 2 * b_tile * LANES * 4          # count blocks
           + 8 * b_tile * j_tile * s_pad * 4)  # [bt, j_tile, sp] scatter temps
    vmem_limit = int(min(max(2 * est, 32 * 1024 * 1024), 64 * 1024 * 1024))

    kernel = functools.partial(
        _exclude_words_kernel,
        num_excluded=E, seq_len=S, pad_id=pad_id, j_tile=j_tile)

    out_p, cnt_p = pl.pallas_call(
        kernel,
        out_shape=(
            jax.ShapeDtypeStruct((b_pad, s_pad), jnp.int32),
            jax.ShapeDtypeStruct((b_pad, LANES), jnp.int32),
        ),
        grid_spec=pltpu.PrefetchScalarGridSpec(
            num_scalar_prefetch=1,                       # excluded ids -> SMEM
            grid=(b_pad // b_tile,),
            in_specs=[pl.BlockSpec((b_tile, s_pad), lambda b, exc: (b, 0))],
            out_specs=(
                pl.BlockSpec((b_tile, s_pad), lambda b, exc: (b, 0)),
                pl.BlockSpec((b_tile, LANES), lambda b, exc: (b, 0)),
            ),
        ),
        compiler_params=pltpu.CompilerParams(
            dimension_semantics=("parallel",),           # batch axis -> megacore
            vmem_limit_bytes=vmem_limit,
        ),
    )(exc, tok_p)

    return out_p[:B, :S], cnt_p[:B, :1]


if __name__ == "__main__":
    key = jax.random.PRNGKey(0)
    B, S, E = 2, 8, 4
    # token ids in [1, 10]; "excluded words" are the ids {3, 5, 7, 9}
    tokens = jax.random.randint(key, (B, S), 1, 11, dtype=jnp.int32)
    excluded = jnp.array([3, 5, 7, 9], dtype=jnp.int32)

    out, cnt = exclude_words(tokens, excluded)
    out = jax.block_until_ready(out)
    cnt = jax.block_until_ready(cnt)

    # Pure-Python reference replicating ExcludeWords.forward semantics.
    tokens_np = np.asarray(tokens)
    excl_set = set(np.asarray(excluded).tolist())
    ref_out = np.full((B, S), PAD_ID, dtype=np.int32)
    ref_cnt = np.zeros((B, 1), dtype=np.int32)
    for b in range(B):
        kept = [int(t) for t in tokens_np[b] if int(t) not in excl_set]
        ref_out[b, : len(kept)] = kept
        ref_cnt[b, 0] = len(kept)

    np.testing.assert_array_equal(np.asarray(out), ref_out)
    np.testing.assert_array_equal(np.asarray(cnt), ref_cnt)
    print("KERNEL_OK")
</pallas_src>

<mosaic_0001>
module attributes {stable_mosaic.version = 11 : i64} {
  func.func @_exclude_words_kernel(%arg0: i32, %arg1: memref<4xi32, #tpu.memory_space<smem>>, %arg2: memref<8x128xi32, #tpu.memory_space<vmem>>, %arg3: memref<8x128xi32, #tpu.memory_space<vmem>>, %arg4: memref<8x128xi32, #tpu.memory_space<vmem>>) attributes {dimension_semantics = [#tpu.dimension_semantics<parallel>], iteration_bounds = array<i64: 1>, scalar_prefetch = 1 : i64, scratch_operands = 0 : i64, tpu.core_type = #tpu.core_type<tc>, window_params = [{transform_indices = @transform_0, window_bounds = array<i64: 8, 128>}, {transform_indices = @transform_1, window_bounds = array<i64: 8, 128>}, {transform_indices = @transform_2, window_bounds = array<i64: 8, 128>}]} {
    %c0 = arith.constant 0 : index
    %c0_0 = arith.constant 0 : index
    %0 = vector.load %arg2[%c0, %c0_0] : memref<8x128xi32, #tpu.memory_space<vmem>>, vector<8x128xi32>
    %1 = tpu.iota {dimensions = array<i32: 1>} : vector<8x128xi32>
    %c8_i32 = arith.constant 8 : i32
    %2 = vector.broadcast %c8_i32 : i32 to vector<8x128xi32>
    %3 = arith.cmpi slt, %1, %2 : vector<8x128xi32>
    %c0_1 = arith.constant 0 : index
    %4 = memref.load %arg1[%c0_1] : memref<4xi32, #tpu.memory_space<smem>>
    %5 = vector.broadcast %4 : i32 to vector<8x128xi32>
    %6 = arith.cmpi ne, %0, %5 : vector<8x128xi32>
    %7 = arith.andi %3, %6 : vector<8x128xi1>
    %c1 = arith.constant 1 : index
    %8 = memref.load %arg1[%c1] : memref<4xi32, #tpu.memory_space<smem>>
    %9 = vector.broadcast %8 : i32 to vector<8x128xi32>
    %10 = arith.cmpi ne, %0, %9 : vector<8x128xi32>
    %11 = arith.andi %7, %10 : vector<8x128xi1>
    %c2 = arith.constant 2 : index
    %12 = memref.load %arg1[%c2] : memref<4xi32, #tpu.memory_space<smem>>
    %13 = vector.broadcast %12 : i32 to vector<8x128xi32>
    %14 = arith.cmpi ne, %0, %13 : vector<8x128xi32>
    %15 = arith.andi %11, %14 : vector<8x128xi1>
    %c3 = arith.constant 3 : index
    %16 = memref.load %arg1[%c3] : memref<4xi32, #tpu.memory_space<smem>>
    %17 = vector.broadcast %16 : i32 to vector<8x128xi32>
    %18 = arith.cmpi ne, %0, %17 : vector<8x128xi32>
    %19 = arith.andi %15, %18 : vector<8x128xi1>
    %20 = arith.extui %19 : vector<8x128xi1> to vector<8x128xi32>
    %c1_i32 = arith.constant 1 : i32
    %21 = tpu.dynamic_rotate %20 by %c1_i32 dim 1 : vector<8x128xi32>, i32 -> vector<8x128xi32>
    %c1_i32_2 = arith.constant 1 : i32
    %22 = vector.broadcast %c1_i32_2 : i32 to vector<8x128xi32>
    %23 = arith.cmpi sge, %1, %22 : vector<8x128xi32>
    %c0_i32 = arith.constant 0 : i32
    %24 = vector.broadcast %c0_i32 : i32 to vector<8x128xi32>
    %25 = arith.select %23, %21, %24 : vector<8x128xi1>, vector<8x128xi32>
    %26 = arith.addi %20, %25 : vector<8x128xi32>
    %c2_i32 = arith.constant 2 : i32
    %27 = tpu.dynamic_rotate %26 by %c2_i32 dim 1 : vector<8x128xi32>, i32 -> vector<8x128xi32>
    %c2_i32_3 = arith.constant 2 : i32
    %28 = vector.broadcast %c2_i32_3 : i32 to vector<8x128xi32>
    %29 = arith.cmpi sge, %1, %28 : vector<8x128xi32>
    %c0_i32_4 = arith.constant 0 : i32
    %30 = vector.broadcast %c0_i32_4 : i32 to vector<8x128xi32>
    %31 = arith.select %29, %27, %30 : vector<8x128xi1>, vector<8x128xi32>
    %32 = arith.addi %26, %31 : vector<8x128xi32>
    %c4_i32 = arith.constant 4 : i32
    %33 = tpu.dynamic_rotate %32 by %c4_i32 dim 1 : vector<8x128xi32>, i32 -> vector<8x128xi32>
    %c4_i32_5 = arith.constant 4 : i32
    %34 = vector.broadcast %c4_i32_5 : i32 to vector<8x128xi32>
    %35 = arith.cmpi sge, %1, %34 : vector<8x128xi32>
    %c0_i32_6 = arith.constant 0 : i32
    %36 = vector.broadcast %c0_i32_6 : i32 to vector<8x128xi32>
    %37 = arith.select %35, %33, %36 : vector<8x128xi1>, vector<8x128xi32>
    %38 = arith.addi %32, %37 : vector<8x128xi32>
    %c8_i32_7 = arith.constant 8 : i32
    %39 = tpu.dynamic_rotate %38 by %c8_i32_7 dim 1 : vector<8x128xi32>, i32 -> vector<8x128xi32>
    %c8_i32_8 = arith.constant 8 : i32
    %40 = vector.broadcast %c8_i32_8 : i32 to vector<8x128xi32>
    %41 = arith.cmpi sge, %1, %40 : vector<8x128xi32>
    %c0_i32_9 = arith.constant 0 : i32
    %42 = vector.broadcast %c0_i32_9 : i32 to vector<8x128xi32>
    %43 = arith.select %41, %39, %42 : vector<8x128xi1>, vector<8x128xi32>
    %44 = arith.addi %38, %43 : vector<8x128xi32>
    %c16_i32 = arith.constant 16 : i32
    %45 = tpu.dynamic_rotate %44 by %c16_i32 dim 1 : vector<8x128xi32>, i32 -> vector<8x128xi32>
    %c16_i32_10 = arith.constant 16 : i32
    %46 = vector.broadcast %c16_i32_10 : i32 to vector<8x128xi32>
    %47 = arith.cmpi sge, %1, %46 : vector<8x128xi32>
    %c0_i32_11 = arith.constant 0 : i32
    %48 = vector.broadcast %c0_i32_11 : i32 to vector<8x128xi32>
    %49 = arith.select %47, %45, %48 : vector<8x128xi1>, vector<8x128xi32>
    %50 = arith.addi %44, %49 : vector<8x128xi32>
    %c32_i32 = arith.constant 32 : i32
    %51 = tpu.dynamic_rotate %50 by %c32_i32 dim 1 : vector<8x128xi32>, i32 -> vector<8x128xi32>
    %c32_i32_12 = arith.constant 32 : i32
    %52 = vector.broadcast %c32_i32_12 : i32 to vector<8x128xi32>
    %53 = arith.cmpi sge, %1, %52 : vector<8x128xi32>
    %c0_i32_13 = arith.constant 0 : i32
    %54 = vector.broadcast %c0_i32_13 : i32 to vector<8x128xi32>
    %55 = arith.select %53, %51, %54 : vector<8x128xi1>, vector<8x128xi32>
    %56 = arith.addi %50, %55 : vector<8x128xi32>
    %c64_i32 = arith.constant 64 : i32
    %57 = tpu.dynamic_rotate %56 by %c64_i32 dim 1 : vector<8x128xi32>, i32 -> vector<8x128xi32>
    %c64_i32_14 = arith.constant 64 : i32
    %58 = vector.broadcast %c64_i32_14 : i32 to vector<8x128xi32>
    %59 = arith.cmpi sge, %1, %58 : vector<8x128xi32>
    %c0_i32_15 = arith.constant 0 : i32
    %60 = vector.broadcast %c0_i32_15 : i32 to vector<8x128xi32>
    %61 = arith.select %59, %57, %60 : vector<8x128xi1>, vector<8x128xi32>
    %62 = arith.addi %56, %61 : vector<8x128xi32>
    %cst = arith.constant dense<0> : vector<8xi32>
    %63 = vector.multi_reduction <add>, %20, %cst [1] : vector<8x128xi32> to vector<8xi32>
    %64 = vector.shape_cast %63 : vector<8xi32> to vector<8x1xi32>
    %c1_i32_16 = arith.constant 1 : i32
    %65 = vector.broadcast %c1_i32_16 : i32 to vector<8x128xi32>
    %66 = arith.subi %62, %65 : vector<8x128xi32>
    %c-1_i32 = arith.constant -1 : i32
    %67 = vector.broadcast %c-1_i32 : i32 to vector<8x128xi32>
    %68 = arith.select %19, %66, %67 : vector<8x128xi1>, vector<8x128xi32>
    %69 = tpu.iota {dimensions = array<i32: 1>} : vector<1x128x1xi32>
    %c0_i32_17 = arith.constant 0 : i32
    %70 = vector.broadcast %c0_i32_17 : i32 to vector<1x128x1xi32>
    %71 = arith.addi %70, %69 : vector<1x128x1xi32>
    %72 = vector.shape_cast %68 : vector<8x128xi32> to vector<8x1x128xi32>
    %73 = vector.broadcast %72 : vector<8x1x128xi32> to vector<8x128x128xi32>
    %74 = vector.broadcast %71 : vector<1x128x1xi32> to vector<8x128x128xi32>
    %75 = arith.cmpi eq, %73, %74 : vector<8x128x128xi32>
    %76 = vector.shape_cast %0 : vector<8x128xi32> to vector<8x1x128xi32>
    %c0_i32_18 = arith.constant 0 : i32
    %77 = vector.shape_cast %76 : vector<8x1x128xi32> to vector<8x1x128xi32>
    %78 = vector.broadcast %77 : vector<8x1x128xi32> to vector<8x128x128xi32>
    %79 = vector.broadcast %c0_i32_18 : i32 to vector<8x128x128xi32>
    %80 = arith.select %75, %78, %79 : vector<8x128x128xi1>, vector<8x128x128xi32>
    %cst_19 = arith.constant dense<0> : vector<8x128xi32>
    %81 = vector.multi_reduction <add>, %80, %cst_19 [2] : vector<8x128x128xi32> to vector<8x128xi32>
    %82 = tpu.iota {dimensions = array<i32: 1>} : vector<8x128xi32>
    %c0_i32_20 = arith.constant 0 : i32
    %83 = vector.broadcast %c0_i32_20 : i32 to vector<8x128xi32>
    %84 = arith.addi %83, %82 : vector<8x128xi32>
    %85 = vector.broadcast %64 : vector<8x1xi32> to vector<8x128xi32>
    %86 = arith.cmpi slt, %84, %85 : vector<8x128xi32>
    %c-1_i32_21 = arith.constant -1 : i32
    %87 = vector.broadcast %c-1_i32_21 : i32 to vector<8x128xi32>
    %88 = arith.select %86, %81, %87 : vector<8x128xi1>, vector<8x128xi32>
    %c0_22 = arith.constant 0 : index
    %c0_23 = arith.constant 0 : index
    %89 = vector.load %arg3[%c0_22, %c0_23] : memref<8x128xi32, #tpu.memory_space<vmem>>, vector<8x128xi32>
    tpu.vector_store %arg3[%c0_22, %c0_23], %88 {strides = array<i32>} : memref<8x128xi32, #tpu.memory_space<vmem>>, vector<8x128xi32>,
    %90 = vector.shape_cast %64 : vector<8x1xi32> to vector<8x1xi32>
    %91 = vector.broadcast %90 : vector<8x1xi32> to vector<8x128xi32>
    %c0_24 = arith.constant 0 : index
    %c0_25 = arith.constant 0 : index
    %92 = vector.load %arg4[%c0_24, %c0_25] : memref<8x128xi32, #tpu.memory_space<vmem>>, vector<8x128xi32>
    tpu.vector_store %arg4[%c0_24, %c0_25], %91 {strides = array<i32>} : memref<8x128xi32, #tpu.memory_space<vmem>>, vector<8x128xi32>,
    return
  }
  func.func @transform_0(%arg0: i32, %arg1: memref<4xi32, #tpu.memory_space<smem>>) -> (i32, i32) {
    %c0_i32 = arith.constant 0 : i32
    %c0_i32_0 = arith.constant 0 : i32
    return %arg0, %c0_i32 : i32, i32
  }
  func.func @transform_1(%arg0: i32, %arg1: memref<4xi32, #tpu.memory_space<smem>>) -> (i32, i32) {
    %c0_i32 = arith.constant 0 : i32
    %c0_i32_0 = arith.constant 0 : i32
    return %arg0, %c0_i32 : i32, i32
  }
  func.func @transform_2(%arg0: i32, %arg1: memref<4xi32, #tpu.memory_space<smem>>) -> (i32, i32) {
    %c0_i32 = arith.constant 0 : i32
    %c0_i32_0 = arith.constant 0 : i32
    return %arg0, %c0_i32 : i32, i32
  }
}

</mosaic_0001>

<bundles_post_ra>
// kernel: tpu_custom_call.1
= control target key start
LH: loop header
LB: loop body
LE: loop exit
PB: predicated region body
PF: predicated region fallthrough
CT: control target
= control target key end

     0   :  { %s2873_s12 = smov [#allocation3]   ;;  %s4251_s0 = inlined_call_operand.hbm [shape: s32[4], index: 0, kind: input, shape index: {}]   ;;  %s4252_s1 = inlined_call_operand.hbm [shape: s32[8,128], index: 1, kind: input, shape index: {}]   ;;  %s4253_s2 = inlined_call_operand.hbm [shape: s32[8,128], index: 2, kind: output, shape index: {0}]   ;;  %s4254_s3 = inlined_call_operand.hbm [shape: s32[8,128], index: 3, kind: output, shape index: {1}]  }
   0x1   :  { %10 = dma.hbm_to_smem %s4251_s0, 16, %s2873_s12, [#allocation2] }
   0x2   :  { %2865 = dma.done.wait [#allocation2], 16 }
   0x3   :  { %2866 = vsyncadd [#allocation2], 4294967280 }
   0x4   :  { %12 = sfence }
   0x5   :  { %13 = vsyncpa [#allocation5], 0 }
   0x6   :  { %14 = vsyncpa [#allocation6], 0 }
   0x7   :  { %15 = vsyncpa [#allocation9], 0  ;;  %s2874_s15 = smov [#allocation4]  }
   0x8   :  { %s22_s16 = sshll.u32 %s2874_s15, 4  ;;  %s23_s16 = int_to_ptr.vmem [resolvable:$true] %s22_s16 }
   0x9   :  { %s2813_s17 = scalar_lea.vmem %s23_s16, 128  ;;  %p2818_p1 = scmp.lt.s32.totalorder %s23_s16, %s23_s16 }
   0xa   :  { %p2814_p0 = scmp.ne.s32.totalorder %s23_s16, %s2813_s17  ;;  %p2819_p2 = scmp.lt.s32.totalorder %s2813_s17, %s2813_s17 }
   0xc   :  { %p2820_p3 = por %p2819_p2, %p2818_p1 }
   0xe   :  { %p2821_p4 = pnand %p2820_p3, %p2814_p0 }
  0x10   :  { %2824 = shalt.err (!%p2821_p4)
}
  0x11   :  { %25 = dma.hbm_to_vmem [thread:$0]  %s4252_s1, 128, %s23_s16, [#allocation5]  }
  0x12   :  { %2867 = dma.done.wait [#allocation5], 128  }
  0x13   :  { %2868 = vsyncadd [#allocation5], 4294967168  ;;  %v30_v0 = vlaneseq  ;;  %s33_s0 = sld [smem:[#allocation3]]  ;;  %v2916_v2 = vld [vmem:[#allocation4] sm:$0xff]  ;;  %v2875_v9 = vmov 0   ;;  %s2876_s1 = smov 1  }
  0x14   :  { %s2779_s20 = sld [smem:[#allocation3 + $0x1]]  ;;  %s2877_s23 = smov 2   ;;  %v2883_v39 = vmov 1966171168  }
  0x15   :  { %v2913_v1 = vand.u32 127, %v30_v0  ;;  %s2780_s21 = sld [smem:[#allocation3 + $0x2]]  ;;  %s2878_s24 = smov 4   ;;  %v118_v40 = vunpack.c.l.s4 %v2883_v39  ;;  %v2949_v41 = vshrl.u32 %v30_v0, 7 }
  0x16   :  { %s2781_s22 = sld [smem:[#allocation3 + $0x3]]  ;;  %s2879_s25 = smov 8  }
  0x17   :  { %4312 = vst [vmem:[#allocation14_spill] sm:$0xff] %v2913_v1  ;;  %vm32_vm0 = vcmp.lt.s32.totalorder %v2913_v1, 8  ;;  %vm52_vm9 = vcmp.ge.s32.totalorder %v2913_v1, 1  ;;  %vm57_vm10 = vcmp.ge.s32.totalorder %v2913_v1, 2  ;;  %vm62_vm11 = vcmp.ge.s32.totalorder %v2913_v1, 4  ;;  %s2880_s26 = smov 16  }
  0x18   :  { %vm67_vm12 = vcmp.ge.s32.totalorder %v2913_v1, 8  ;;  %vm72_vm13 = vcmp.ge.s32.totalorder %v2913_v1, 16  ;;  %s2881_s27 = smov 32   ;;  %vm77_vm14 = vcmp.ge.s32.totalorder %v2913_v1, 32  ;;  %s2882_s28 = smov 64   ;;  %v119_v42 = vunpack.c.0.s8 %v118_v40 }
  0x19   :  { %v34_v3 = vstv %s33_s0  ;;  %vm82_vm15 = vcmp.ge.s32.totalorder %v2913_v1, 64  ;;  %v2971_v51 = vsub.s32 0, %v2949_v41  ;;  %v2982_v54 = vadd.s32 8, %v2949_v41  ;;  %s2884_s29 = smov [#allocation8]  }
  0x1a   :  { %vm35_vm1 = vcmp.ne.s32.totalorder %v2916_v2, %v34_v3  ;;  %v38_v4 = vstv %s2779_s20  ;;  %v2953_v43 = vsub.s32 %v119_v42, %v2949_v41  ;;  %v2993_v57 = vadd.s32 16, %v2949_v41  ;;  %s2766_s30 = sshll.u32 %s2884_s29, 4  ;;  %s2767_s30 = int_to_ptr.vmem [resolvable:$true] %s2766_s30 }
  0x1b   :  { %vm36_vm2 = vmand %vm32_vm0, %vm35_vm1  ;;  %vm39_vm3 = vcmp.ne.s32.totalorder %v2916_v2, %v38_v4  ;;  %v42_v5 = vstv %s2780_s21  ;;  %v3004_v62 = vadd.s32 24, %v2949_v41  ;;  %s2825_s4 = scalar_lea.vmem %s2767_s30, 128  ;;  %p2830_p6 = scmp.lt.s32.totalorder %s2767_s30, %s2767_s30 }
  0x1c   :  { %vm40_vm4 = vmand %vm36_vm2, %vm39_vm3  ;;  %vm43_vm5 = vcmp.ne.s32.totalorder %v2916_v2, %v42_v5  ;;  %v46_v6 = vstv %s2781_s22  ;;  %v2957_v47 = vrot.slane %v2916_v2, %v2953_v43  ;;  %p2826_p5 = scmp.ne.s32.totalorder %s2767_s30, %s2825_s4  ;;  %p2831_p7 = scmp.lt.s32.totalorder %s2825_s4, %s2825_s4 }
  0x1d   :  { %vm2921_vm6 = vmand %vm40_vm4, %vm43_vm5  ;;  %vm2926_vm7 = vcmp.ne.s32.totalorder %v2916_v2, %v46_v6  ;;  %v3010_v6 = vadd.s32 32, %v2949_v41 }
  0x1e   :  { %vm48_vm8 = vmand %vm2921_vm6, %vm2926_vm7  ;;  %v2975_v52 = vrot.slane %v2957_v47, %v2953_v43  ;;  %p2832_p8 = por %p2831_p7, %p2830_p6 }
  0x1f   :  { %v49_v10 = vsel %vm48_vm8, 1, %v2875_v9 }
  0x20   :  { %50 = vrot.lane.b32.xlu0 %v49_v10, %s2876_s1  ;;  %v85_v11 = vand.u32 65535, %v49_v10  ;;  %v86_v13 = vshrl.u32 %v49_v10, 16  ;;  %v2986_v55 = vrot.slane %v2975_v52, %v2971_v51  ;;  %p2833_p9 = pnand %p2832_p8, %p2826_p5 }
  0x22   :  { %v87_v12 = vcvt.s32.f32 %v85_v11  ;;  %v88_v14 = vcvt.s32.f32 %v86_v13  ;;  %v3019_v13 = vadd.s32 48, %v2949_v41 }
  0x24   :  { %89 = vadd.xlane.f32.xlu1 %v87_v12  ;;  %v3016_v12 = vadd.s32 40, %v2949_v41 }
  0x3f   :  { %91 = vadd.xlane.f32.xlu0 %v88_v14 }
  0x92   :  { %v51_v15 = vpop.permute.xlu0 %50 }
  0x93   :  { %v53_v16 = vsel %vm52_vm9, %v51_v15, 0 }
  0x94   :  { %v54_v17 = vadd.s32 %v53_v16, %v49_v10 }
  0x96   :  { %55 = vrot.lane.b32.xlu0 %v54_v17, %s2877_s23 }
  0xad   :  { %v90_v18 = vpop.xlane.xlu1 %89 }
  0xae   :  { %v93_v21 = vcvt.f32.s32 %v90_v18 }
  0xc8   :  { %v92_v19 = vpop.xlane.xlu0 %91 }
  0xc9   :  { %v94_v20 = vcvt.f32.s32 %v92_v19 }
  0xcb   :  { %v95_v22 = vshll.u32 %v94_v20, 16 }
  0xcd   :  { %v2940_v23 = vadd.s32 %v95_v22, %v93_v21 }
  0xcf   :  { %4317 = vst [vmem:[#allocation15_spill] sm:$0xff] %v2940_v23  ;;  %2749 = vst [vmem:[#allocation8] sm:$0xff] %v2940_v23 }
 0x108   :  { %v56_v24 = vpop.permute.xlu0 %55 }
 0x109   :  { %v58_v25 = vsel %vm57_vm10, %v56_v24, 0 }
 0x10a   :  { %v59_v26 = vadd.s32 %v58_v25, %v54_v17  ;;  %v3028_v25 = vadd.s32 56, %v2949_v41 }
 0x10c   :  { %60 = vrot.lane.b32.xlu1 %v59_v26, %s2878_s24 }
 0x17e   :  { %v61_v27 = vpop.permute.xlu1 %60 }
 0x17f   :  { %v63_v28 = vsel %vm62_vm11, %v61_v27, 0 }
 0x180   :  { %v64_v29 = vadd.s32 %v63_v28, %v59_v26 }
 0x182   :  { %65 = vrot.lane.b32.xlu1 %v64_v29, %s2879_s25 }
 0x1f4   :  { %v66_v30 = vpop.permute.xlu1 %65 }
 0x1f5   :  { %v68_v31 = vsel %vm67_vm12, %v66_v30, 0 }
 0x1f6   :  { %v69_v32 = vadd.s32 %v68_v31, %v64_v29  ;;  %v3034_v31 = vadd.s32 64, %v2949_v41 }
 0x1f8   :  { %70 = vrot.lane.b32.xlu0 %v69_v32, %s2880_s26 }
 0x26a   :  { %v71_v33 = vpop.permute.xlu0 %70 }
 0x26b   :  { %v73_v34 = vsel %vm72_vm13, %v71_v33, 0 }
 0x26c   :  { %v74_v35 = vadd.s32 %v73_v34, %v69_v32 }
 0x26e   :  { %75 = vrot.lane.b32.xlu1 %v74_v35, %s2881_s27 }
 0x2e0   :  { %v76_v36 = vpop.permute.xlu1 %75 }
 0x2e1   :  { %v78_v37 = vsel %vm77_vm14, %v76_v36, 0 }
 0x2e2   :  { %v79_v38 = vadd.s32 %v78_v37, %v74_v35  ;;  %v3038_v37 = vadd.s32 72, %v2949_v41 }
 0x2e4   :  { %80 = vrot.lane.b32.xlu0 %v79_v38, %s2882_s28 }
 0x356   :  { %v81_v44 = vpop.permute.xlu0 %80 }
 0x357   :  { %v83_v45 = vsel %vm82_vm15, %v81_v44, 0 }
 0x358   :  { %v84_v46 = vadd.s32 %v83_v45, %v79_v38  ;;  %v3046_v45 = vadd.s32 80, %v2949_v41 }
 0x35a   :  { %v2782_v48 = vadd.s32 4294967295, %v84_v46 }
 0x35c   :  { %v2964_v49 = vsel %vm48_vm8, %v2782_v48, 4294967295 }
 0x35d   :  { %v2968_v50 = vrot.slane %v2964_v49, %v2953_v43 }
 0x35f   :  { %v2979_v53 = vrot.slane %v2968_v50, %v2953_v43 }
 0x361   :  { %v2990_v56 = vrot.slane %v2979_v53, %v2971_v51 }
 0x363   :  { %vm197_vm0 = vcmp.eq.s32.totalorder %v2990_v56, %v2949_v41  ;;  %vm198_vm1 = vcmp.eq.s32.totalorder %v2990_v56, %v2982_v54  ;;  %vm199_vm2 = vcmp.eq.s32.totalorder %v2990_v56, %v2993_v57  ;;  %vm200_vm3 = vcmp.eq.s32.totalorder %v2990_v56, %v3004_v62 }
 0x364   :  { %v406_v58 = vsel %vm197_vm0, %v2986_v55, 0  ;;  %v407_v59 = vsel %vm198_vm1, %v2986_v55, 0  ;;  %v408_v5 = vsel %vm199_vm2, %v2986_v55, 0  ;;  %v409_v11 = vsel %vm200_vm3, %v2986_v55, 0 }
 0x365   :  { %v535_v60 = vshrl.u32 %v406_v58, 16  ;;  %v534_v61 = vand.u32 65535, %v406_v58  ;;  %v547_v3 = vshrl.u32 %v407_v59, 16  ;;  %v546_v4 = vand.u32 65535, %v407_v59 }
 0x366   :  { %v559_v9 = vshrl.u32 %v408_v5, 16  ;;  %v558_v10 = vand.u32 65535, %v408_v5  ;;  %vm201_vm4 = vcmp.eq.s32.totalorder %v2990_v56, %v3010_v6  ;;  %v571_v16 = vshrl.u32 %v409_v11, 16 }
 0x367   :  { %v537_v63 = vcvt.s32.f32 %v535_v60  ;;  %v536_v0 = vcvt.s32.f32 %v534_v61  ;;  %v549_v7 = vcvt.s32.f32 %v547_v3  ;;  %v548_v8 = vcvt.s32.f32 %v546_v4 }
 0x368   :  { %v561_v14 = vcvt.s32.f32 %v559_v9  ;;  %v560_v15 = vcvt.s32.f32 %v558_v10  ;;  %v570_v17 = vand.u32 65535, %v409_v11  ;;  %v410_v18 = vsel %vm201_vm4, %v2986_v55, 0 }
 0x369   :  { %540 = vadd.xlane.f32.xlu1 %v537_v63  ;;  %538 = vadd.xlane.f32.xlu0 %v536_v0  ;;  %vm202_vm5 = vcmp.eq.s32.totalorder %v2990_v56, %v3016_v12  ;;  %vm203_vm6 = vcmp.eq.s32.totalorder %v2990_v56, %v3019_v13  ;;  %v573_v19 = vcvt.s32.f32 %v571_v16  ;;  %v583_v21 = vshrl.u32 %v410_v18, 16 }
 0x36a   :  { %v572_v20 = vcvt.s32.f32 %v570_v17  ;;  %v582_v22 = vand.u32 65535, %v410_v18  ;;  %v411_v24 = vsel %vm202_vm5, %v2986_v55, 0  ;;  %v412_v26 = vsel %vm203_vm6, %v2986_v55, 0 }
 0x36b   :  { %v585_v27 = vcvt.s32.f32 %v583_v21  ;;  %v595_v29 = vshrl.u32 %v411_v24, 16  ;;  %v594_v30 = vand.u32 65535, %v411_v24  ;;  %vm204_vm7 = vcmp.eq.s32.totalorder %v2990_v56, %v3028_v25 }
 0x36c   :  { %v584_v28 = vcvt.s32.f32 %v582_v22  ;;  %v607_v32 = vshrl.u32 %v412_v26, 16  ;;  %v606_v35 = vand.u32 65535, %v412_v26  ;;  %v413_v36 = vsel %vm204_vm7, %v2986_v55, 0 }
 0x36d   :  { %552 = vadd.xlane.f32.xlu1 %v549_v7  ;;  %550 = vadd.xlane.f32.xlu0 %v548_v8  ;;  %v597_v33 = vcvt.s32.f32 %v595_v29  ;;  %v596_v34 = vcvt.s32.f32 %v594_v30  ;;  %vm205_vm8 = vcmp.eq.s32.totalorder %v2990_v56, %v3034_v31  ;;  %v619_v38 = vshrl.u32 %v413_v36, 16 }
 0x36e   :  { %v609_v39 = vcvt.s32.f32 %v607_v32  ;;  %v608_v40 = vcvt.s32.f32 %v606_v35  ;;  %v618_v42 = vand.u32 65535, %v413_v36  ;;  %v414_v44 = vsel %vm205_vm8, %v2986_v55, 0 }
 0x36f   :  { %vm206_vm9 = vcmp.eq.s32.totalorder %v2990_v56, %v3038_v37  ;;  %v621_v46 = vcvt.s32.f32 %v619_v38  ;;  %v631_v58 = vshrl.u32 %v414_v44, 16  ;;  %v630_v59 = vand.u32 65535, %v414_v44 }
 0x370   :  { %v620_v48 = vcvt.s32.f32 %v618_v42  ;;  %v415_v60 = vsel %vm206_vm9, %v2986_v55, 0  ;;  %v3050_v61 = vadd.s32 88, %v2949_v41  ;;  %vm207_vm10 = vcmp.eq.s32.totalorder %v2990_v56, %v3046_v45 }
 0x371   :  { %564 = vadd.xlane.f32.xlu1 %v561_v14  ;;  %562 = vadd.xlane.f32.xlu0 %v560_v15  ;;  %v643_v63 = vshrl.u32 %v415_v60, 16  ;;  %v633_v0 = vcvt.s32.f32 %v631_v58  ;;  %v632_v3 = vcvt.s32.f32 %v630_v59  ;;  %v642_v4 = vand.u32 65535, %v415_v60 }
 0x372   :  { %v416_v5 = vsel %vm207_vm10, %v2986_v55, 0  ;;  %vm208_vm11 = vcmp.eq.s32.totalorder %v2990_v56, %v3050_v61  ;;  %v161_v7 = vcombine.high %v2979_v53, %v2979_v53  ;;  %v3060_v8 = vadd.s32 96, %v2949_v41 }
 0x373   :  { %v370_v9 = vcombine.high %v2975_v52, %v2975_v52  ;;  %v645_v10 = vcvt.s32.f32 %v643_v63  ;;  %v644_v11 = vcvt.s32.f32 %v642_v4  ;;  %v655_v14 = vshrl.u32 %v416_v5, 16 }
 0x374   :  { %v654_v15 = vand.u32 65535, %v416_v5  ;;  %v417_v16 = vsel %vm208_vm11, %v2986_v55, 0  ;;  %v3066_v17 = vrot.slane %v161_v7, %v2971_v51  ;;  %vm209_vm12 = vcmp.eq.s32.totalorder %v2990_v56, %v3060_v8 }
 0x375   :  { %576 = vadd.xlane.f32.xlu1 %v573_v19  ;;  %574 = vadd.xlane.f32.xlu0 %v572_v20  ;;  %v3071_v53 = vadd.s32 104, %v2949_v41  ;;  %v667_v18 = vshrl.u32 %v417_v16, 16  ;;  %v666_v19 = vand.u32 65535, %v417_v16  ;;  %v3074_v52 = vadd.s32 112, %v2949_v41 }
 0x376   :  { %v3077_v20 = vrot.slane %v370_v9, %v2971_v51  ;;  %v657_v21 = vcvt.s32.f32 %v655_v14  ;;  %v656_v22 = vcvt.s32.f32 %v654_v15  ;;  %v418_v24 = vsel %vm209_vm12, %v2986_v55, 0 }
 0x377   :  { %v131_v26 = vcombine.high %v2968_v50, %v2968_v50  ;;  %vm210_vm13 = vcmp.eq.s32.totalorder %v2990_v56, %v3071_v53  ;;  %vm229_vm14 = vcmp.eq.s32.totalorder %v3066_v17, %v2949_v41  ;;  %vm211_vm15 = vcmp.eq.s32.totalorder %v2990_v56, %v3074_v52 }
 0x378   :  { %v679_v29 = vshrl.u32 %v418_v24, 16  ;;  %v678_v30 = vand.u32 65535, %v418_v24  ;;  %v3089_v32 = vsel %vm229_vm14, %v3077_v20, 0  ;;  %vm230_vm0 = vcmp.eq.s32.totalorder %v3066_v17, %v2982_v54 }
 0x379   :  { %588 = vadd.xlane.f32.xlu1 %v585_v27  ;;  %586 = vadd.xlane.f32.xlu0 %v584_v28  ;;  %v669_v27 = vcvt.s32.f32 %v667_v18  ;;  %v668_v28 = vcvt.s32.f32 %v666_v19  ;;  %v340_v50 = vcombine.high %v2957_v47, %v2957_v47  ;;  %vm231_vm1 = vcmp.eq.s32.totalorder %v3066_v17, %v2993_v57 }
 0x37a   :  { %v3102_v35 = vrot.slane %v131_v26, %v2953_v43  ;;  %v3105_v36 = vadd.s32 120, %v2949_v41  ;;  %v420_v38 = vsel %vm211_vm15, %v2986_v55, 0  ;;  %v3109_v47 = vsel %vm231_vm1, %v3077_v20, 0 }
 0x37b   :  { %vm232_vm2 = vcmp.eq.s32.totalorder %v3066_v17, %v3004_v62  ;;  %vm233_vm3 = vcmp.eq.s32.totalorder %v3066_v17, %v3010_v6  ;;  %v703_v60 = vshrl.u32 %v420_v38, 16  ;;  %v702_v63 = vand.u32 65535, %v420_v38 }
 0x37c   :  { %vm212_vm4 = vcmp.eq.s32.totalorder %v2990_v56, %v3105_v36  ;;  %v3125_v58 = vsel %vm232_vm2, %v3077_v20, 0  ;;  %v3128_v59 = vsel %vm233_vm3, %v3077_v20, 0  ;;  %vm234_vm5 = vcmp.eq.s32.totalorder %v3066_v17, %v3016_v12 }
 0x37d   :  { %600 = vadd.xlane.f32.xlu1 %v597_v33  ;;  %598 = vadd.xlane.f32.xlu0 %v596_v34  ;;  %v419_v33 = vsel %vm210_vm13, %v2986_v55, 0  ;;  %v3097_v34 = vsel %vm230_vm0, %v3077_v20, 0  ;;  %v421_v5 = vsel %vm212_vm4, %v2986_v55, 0  ;;  %v3138_v56 = vsel %vm234_vm5, %v3077_v20, 0 }
 0x37e   :  { %v691_v42 = vshrl.u32 %v419_v33, 16  ;;  %v690_v44 = vand.u32 65535, %v419_v33  ;;  %v705_v7 = vcvt.s32.f32 %v703_v60  ;;  %v704_v9 = vcvt.s32.f32 %v702_v63 }
 0x37f   :  { %vm235_vm7 = vcmp.eq.s32.totalorder %v3066_v17, %v3019_v13  ;;  %v116_v15 = vcombine.high %v2964_v49, %v2964_v49  ;;  %vm236_vm9 = vcmp.eq.s32.totalorder %v3066_v17, %v3028_v25  ;;  %vm237_vm10 = vcmp.eq.s32.totalorder %v3066_v17, %v3034_v31 }
 0x380   :  { %v3147_v55 = vsel %vm235_vm7, %v3077_v20, 0  ;;  %v3158_v18 = vsel %vm236_vm9, %v3077_v20, 0  ;;  %v3161_v19 = vsel %vm237_vm10, %v3077_v20, 0  ;;  %v325_v26 = vcombine.high %v2916_v2, %v2916_v2 }
 0x381   :  { %612 = vadd.xlane.f32.xlu1 %v609_v39  ;;  %610 = vadd.xlane.f32.xlu0 %v608_v40  ;;  %v681_v39 = vcvt.s32.f32 %v679_v29  ;;  %v680_v40 = vcvt.s32.f32 %v678_v30  ;;  %vm238_vm12 = vcmp.eq.s32.totalorder %v3066_v17, %v3038_v37  ;;  %vm239_vm13 = vcmp.eq.s32.totalorder %v3066_v17, %v3046_v45 }
 0x382   :  { %v3173_v29 = vsel %vm238_vm12, %v3077_v20, 0  ;;  %v3179_v38 = vrot.slane %v325_v26, %v2953_v43  ;;  %vm240_vm15 = vcmp.eq.s32.totalorder %v3066_v17, %v3050_v61  ;;  %vm241_vm0 = vcmp.eq.s32.totalorder %v3066_v17, %v3060_v8 }
 0x383   :  { %vm242_vm2 = vcmp.eq.s32.totalorder %v3066_v17, %v3071_v53  ;;  %vm243_vm4 = vcmp.eq.s32.totalorder %v3066_v17, %v3074_v52 }
 0x385   :  { %624 = vadd.xlane.f32.xlu1 %v621_v46  ;;  %622 = vadd.xlane.f32.xlu0 %v620_v48  ;;  %v3112_v46 = vrot.slane %v340_v50, %v2953_v43  ;;  %v3120_v48 = vrot.slane %v3102_v35, %v2971_v51 }
 0x387   :  { %v3134_v4 = vrot.slane %v3112_v46, %v2971_v51  ;;  %vm213_vm6 = vcmp.eq.s32.totalorder %v3120_v48, %v2949_v41  ;;  %vm214_vm8 = vcmp.eq.s32.totalorder %v3120_v48, %v2982_v54  ;;  %vm215_vm11 = vcmp.eq.s32.totalorder %v3120_v48, %v2993_v57 }
 0x388   :  { %vm216_vm14 = vcmp.eq.s32.totalorder %v3120_v48, %v3004_v62  ;;  %vm217_vm1 = vcmp.eq.s32.totalorder %v3120_v48, %v3010_v6  ;;  %vm218_vm3 = vcmp.eq.s32.totalorder %v3120_v48, %v3016_v12  ;;  %vm219_vm5 = vcmp.eq.s32.totalorder %v3120_v48, %v3019_v13 }
 0x389   :  { %636 = vadd.xlane.f32.xlu1 %v633_v0  ;;  %634 = vadd.xlane.f32.xlu0 %v632_v3  ;;  %v693_v0 = vcvt.s32.f32 %v691_v42  ;;  %v692_v3 = vcvt.s32.f32 %v690_v44  ;;  %v422_v14 = vsel %vm213_vm6, %v3134_v4, 0  ;;  %v423_v16 = vsel %vm214_vm8, %v3134_v4, 0 }
 0x38a   :  { %v727_v24 = vshrl.u32 %v422_v14, 16  ;;  %v726_v49 = vand.u32 65535, %v422_v14  ;;  %v738_v30 = vand.u32 65535, %v423_v16  ;;  %v424_v2 = vsel %vm215_vm11, %v3134_v4, 0 }
 0x38b   :  { %v751_v60 = vshrl.u32 %v424_v2, 16  ;;  %v750_v63 = vand.u32 65535, %v424_v2  ;;  %vm244_vm6 = vcmp.eq.s32.totalorder %v3066_v17, %v3105_v36  ;;  %vm220_vm9 = vcmp.eq.s32.totalorder %v3120_v48, %v3028_v25 }
 0x38c   :  { %v729_v50 = vcvt.s32.f32 %v727_v24  ;;  %v728_v33 = vcvt.s32.f32 %v726_v49  ;;  %v740_v44 = vcvt.s32.f32 %v738_v30  ;;  %v3226_v24 = vsel %vm243_vm4, %v3077_v20, 0 }
 0x38d   :  { %648 = vadd.xlane.f32.xlu1 %v645_v10  ;;  %646 = vadd.xlane.f32.xlu0 %v644_v11  ;;  %v715_v10 = vshrl.u32 %v421_v5, 16  ;;  %v714_v11 = vand.u32 65535, %v421_v5  ;;  %v3199_v5 = vsel %vm241_vm0, %v3077_v20, 0  ;;  %vm221_vm12 = vcmp.eq.s32.totalorder %v3120_v48, %v3034_v31 }
 0x38e   :  { %vm222_vm0 = vcmp.eq.s32.totalorder %v3120_v48, %v3038_v37 }
 0x391   :  { %660 = vadd.xlane.f32.xlu1 %v657_v21  ;;  %658 = vadd.xlane.f32.xlu0 %v656_v22  ;;  %v717_v21 = vcvt.s32.f32 %v715_v10  ;;  %v716_v22 = vcvt.s32.f32 %v714_v11  ;;  %v3210_v11 = vsel %vm242_vm2, %v3077_v20, 0 }
 0x395   :  { %672 = vadd.xlane.f32.xlu1 %v669_v27  ;;  %670 = vadd.xlane.f32.xlu0 %v668_v28  ;;  %v3170_v27 = vrot.slane %v116_v15, %v2953_v43  ;;  %v739_v28 = vshrl.u32 %v423_v16, 16  ;;  %v753_v15 = vcvt.s32.f32 %v751_v60  ;;  %v752_v16 = vcvt.s32.f32 %v750_v63 }
 0x397   :  { %v741_v42 = vcvt.s32.f32 %v739_v28  ;;  %v427_v28 = vsel %vm218_vm3, %v3134_v4, 0 }
 0x398   :  { %v786_v17 = vand.u32 65535, %v427_v28 }
 0x399   :  { %684 = vadd.xlane.f32.xlu1 %v681_v39  ;;  %682 = vadd.xlane.f32.xlu0 %v680_v40  ;;  %v3184_v39 = vsel %vm239_vm13, %v3077_v20, 0  ;;  %v3188_v40 = vrot.slane %v3170_v27, %v2953_v43 }
 0x39b   :  { %v3214_v14 = vrot.slane %v3188_v40, %v2971_v51 }
 0x39d   :  { %696 = vadd.xlane.f32.xlu1 %v693_v0  ;;  %694 = vadd.xlane.f32.xlu0 %v692_v3  ;;  %v425_v0 = vsel %vm216_vm14, %v3134_v4, 0  ;;  %v3196_v3 = vsel %vm240_vm15, %v3077_v20, 0  ;;  %vm261_vm7 = vcmp.eq.s32.totalorder %v3214_v14, %v2949_v41  ;;  %vm262_vm8 = vcmp.eq.s32.totalorder %v3214_v14, %v2982_v54 }
 0x39e   :  { %v762_v10 = vand.u32 65535, %v425_v0  ;;  %vm263_vm10 = vcmp.eq.s32.totalorder %v3214_v14, %v2993_v57  ;;  %vm264_vm11 = vcmp.eq.s32.totalorder %v3214_v14, %v3004_v62  ;;  %vm265_vm13 = vcmp.eq.s32.totalorder %v3214_v14, %v3010_v6 }
 0x39f   :  { %vm266_vm14 = vcmp.eq.s32.totalorder %v3214_v14, %v3016_v12  ;;  %vm267_vm15 = vcmp.eq.s32.totalorder %v3214_v14, %v3019_v13  ;;  %vm269_vm2 = vcmp.eq.s32.totalorder %v3214_v14, %v3034_v31  ;;  %vm270_vm3 = vcmp.eq.s32.totalorder %v3214_v14, %v3038_v37 }
 0x3a0   :  { %v764_v26 = vcvt.s32.f32 %v762_v10  ;;  %vm271_vm4 = vcmp.eq.s32.totalorder %v3214_v14, %v3046_v45 }
 0x3a1   :  { %708 = vadd.xlane.f32.xlu1 %v705_v7  ;;  %706 = vadd.xlane.f32.xlu0 %v704_v9  ;;  %v3203_v7 = vrot.slane %v3179_v38, %v2953_v43  ;;  %v763_v9 = vshrl.u32 %v425_v0, 16 }
 0x3a3   :  { %v765_v49 = vcvt.s32.f32 %v763_v9 }
 0x3a5   :  { %720 = vadd.xlane.f32.xlu1 %v717_v21  ;;  %718 = vadd.xlane.f32.xlu0 %v716_v22  ;;  %v3220_v21 = vrot.slane %v3203_v7, %v2971_v51  ;;  %v426_v22 = vsel %vm217_vm1, %v3134_v4, 0  ;;  %vm268_vm1 = vcmp.eq.s32.totalorder %v3214_v14, %v3028_v25 }
 0x3a6   :  { %v775_v30 = vshrl.u32 %v426_v22, 16 }
 0x3a7   :  { %v3239_v2 = vsel %vm261_vm7, %v3220_v21, 0  ;;  %v3245_v0 = vsel %vm262_vm8, %v3220_v21, 0  ;;  %v3254_v9 = vsel %vm263_vm10, %v3220_v21, 0  ;;  %v3257_v10 = vsel %vm264_vm11, %v3220_v21, 0 }
 0x3a8   :  { %v777_v60 = vcvt.s32.f32 %v775_v30  ;;  %v3289_v23 = vsel %vm269_vm2, %v3220_v21, 0  ;;  %vm273_vm7 = vcmp.eq.s32.totalorder %v3214_v14, %v3060_v8  ;;  %vm224_vm8 = vcmp.eq.s32.totalorder %v3120_v48, %v3050_v61 }
 0x3a9   :  { %732 = vadd.xlane.f32.xlu1 %v729_v50  ;;  %730 = vadd.xlane.f32.xlu0 %v728_v33  ;;  %v774_v50 = vand.u32 65535, %v426_v22  ;;  %v3236_v33 = vsel %vm244_vm6, %v3077_v20, 0  ;;  %4320 = vst [vmem:[#allocation18_spill] sm:$0xff] %v3289_v23  ;;  %vm223_vm6 = vcmp.eq.s32.totalorder %v3120_v48, %v3046_v45  ;;  %vm275_vm10 = vcmp.eq.s32.totalorder %v3214_v14, %v3074_v52 }
 0x3aa   :  { %vm276_vm11 = vcmp.eq.s32.totalorder %v3214_v14, %v3105_v36 }
 0x3ab   :  { %v776_v63 = vcvt.s32.f32 %v774_v50 }
 0x3ad   :  { %744 = vadd.xlane.f32.xlu1 %v741_v42  ;;  %742 = vadd.xlane.f32.xlu0 %v740_v44  ;;  %v787_v42 = vshrl.u32 %v427_v28, 16  ;;  %v428_v44 = vsel %vm219_vm5, %v3134_v4, 0  ;;  %v3269_v28 = vsel %vm265_vm13, %v3220_v21, 0  ;;  %vm272_vm5 = vcmp.eq.s32.totalorder %v3214_v14, %v3050_v61 }
 0x3ae   :  { %v799_v20 = vshrl.u32 %v428_v44, 16  ;;  %v798_v22 = vand.u32 65535, %v428_v44  ;;  %v3310_v23 = vsel %vm272_vm5, %v3220_v21, 0  ;;  %vm226_vm13 = vcmp.eq.s32.totalorder %v3120_v48, %v3071_v53 }
 0x3af   :  { %4323 = vst [vmem:[#allocation21_spill] sm:$0xff] %v3310_v23 }
 0x3b0   :  { %v800_v44 = vcvt.s32.f32 %v798_v22 }
 0x3b1   :  { %756 = vadd.xlane.f32.xlu1 %v753_v15  ;;  %754 = vadd.xlane.f32.xlu0 %v752_v16  ;;  %v789_v15 = vcvt.s32.f32 %v787_v42  ;;  %v788_v16 = vcvt.s32.f32 %v786_v17  ;;  %v3274_v42 = vsel %vm266_vm14, %v3220_v21, 0  ;;  %v431_v17 = vsel %vm222_vm0, %v3134_v4, 0 }
 0x3b5   :  { %768 = vadd.xlane.f32.xlu1 %v765_v49  ;;  %766 = vadd.xlane.f32.xlu0 %v764_v26  ;;  %v429_v49 = vsel %vm220_vm9, %v3134_v4, 0  ;;  %v801_v26 = vcvt.s32.f32 %v799_v20  ;;  %v3284_v20 = vsel %vm268_vm1, %v3220_v21, 0  ;;  %vm274_vm9 = vcmp.eq.s32.totalorder %v3214_v14, %v3071_v53 }
 0x3b6   :  { %v811_v30 = vshrl.u32 %v429_v49, 16  ;;  %v810_v50 = vand.u32 65535, %v429_v49  ;;  %4319 = vst [vmem:[#allocation17_spill] sm:$0xff] %v3284_v20  ;;  %v834_v20 = vand.u32 65535, %v431_v17 }
 0x3b9   :  { %780 = vadd.xlane.f32.xlu1 %v777_v60  ;;  %778 = vadd.xlane.f32.xlu0 %v776_v63  ;;  %v430_v60 = vsel %vm221_vm12, %v3134_v4, 0  ;;  %v3278_v63 = vsel %vm267_vm15, %v3220_v21, 0  ;;  %vm225_vm12 = vcmp.eq.s32.totalorder %v3120_v48, %v3060_v8 }
 0x3ba   :  { %4318 = vst [vmem:[#allocation16_spill] sm:$0xff] %v3278_v63  ;;  %v823_v22 = vshrl.u32 %v430_v60, 16  ;;  %v822_v49 = vand.u32 65535, %v430_v60  ;;  %v3307_v60 = vsel %vm271_vm4, %v3220_v21, 0  ;;  %v432_v63 = vsel %vm223_vm6, %v3134_v4, 0 }
 0x3bb   :  { %4322 = vst [vmem:[#allocation20_spill] sm:$0xff] %v3307_v60  ;;  %v3329_v60 = vsel %vm274_vm9, %v3220_v21, 0 }
 0x3bd   :  { %792 = vadd.xlane.f32.xlu1 %v789_v15  ;;  %790 = vadd.xlane.f32.xlu0 %v788_v16  ;;  %v813_v15 = vcvt.s32.f32 %v811_v30  ;;  %v812_v16 = vcvt.s32.f32 %v810_v50  ;;  %v163_v30 = vcombine.high %v3102_v35, %v3102_v35  ;;  %v835_v50 = vshrl.u32 %v431_v17, 16 }
 0x3be   :  { %v824_v35 = vcvt.s32.f32 %v822_v49  ;;  %v846_v49 = vand.u32 65535, %v432_v63 }
 0x3bf   :  { %v3326_v23 = vrot.slane %v163_v30, %v2971_v51  ;;  %v837_v17 = vcvt.s32.f32 %v835_v50 }
 0x3c0   :  { %v848_v30 = vcvt.s32.f32 %v846_v49 }
 0x3c1   :  { %804 = vadd.xlane.f32.xlu1 %v801_v26  ;;  %802 = vadd.xlane.f32.xlu0 %v800_v44  ;;  %v372_v26 = vcombine.high %v3112_v46, %v3112_v46  ;;  %v3304_v44 = vsel %vm270_vm3, %v3220_v21, 0  ;;  %v825_v46 = vcvt.s32.f32 %v823_v22  ;;  %v847_v22 = vshrl.u32 %v432_v63, 16 }
 0x3c2   :  { %4321 = vst [vmem:[#allocation19_spill] sm:$0xff] %v3304_v44  ;;  %v433_v44 = vsel %vm224_vm8, %v3134_v4, 0  ;;  %v3344_v63 = vsel %vm276_vm11, %v3220_v21, 0  ;;  %vm245_vm14 = vcmp.eq.s32.totalorder %v3326_v23, %v2949_v41  ;;  %vm246_vm15 = vcmp.eq.s32.totalorder %v3326_v23, %v2982_v54 }
 0x3c3   :  { %4325 = vst [vmem:[#allocation23_spill] sm:$0xff] %v3344_v63  ;;  %v859_v50 = vshrl.u32 %v433_v44, 16  ;;  %vm247_vm0 = vcmp.eq.s32.totalorder %v3326_v23, %v2993_v57  ;;  %vm248_vm1 = vcmp.eq.s32.totalorder %v3326_v23, %v3004_v62  ;;  %vm249_vm2 = vcmp.eq.s32.totalorder %v3326_v23, %v3010_v6 }
 0x3c4   :  { %vm227_vm3 = vcmp.eq.s32.totalorder %v3120_v48, %v3074_v52  ;;  %vm250_vm4 = vcmp.eq.s32.totalorder %v3326_v23, %v3016_v12  ;;  %vm251_vm5 = vcmp.eq.s32.totalorder %v3326_v23, %v3019_v13  ;;  %vm252_vm6 = vcmp.eq.s32.totalorder %v3326_v23, %v3028_v25 }
 0x3c5   :  { %816 = vadd.xlane.f32.xlu1 %v813_v15  ;;  %814 = vadd.xlane.f32.xlu0 %v812_v16  ;;  %v3318_v15 = vsel %vm273_vm7, %v3220_v21, 0  ;;  %v3323_v16 = vrot.slane %v372_v26, %v2971_v51  ;;  %v3335_v26 = vsel %vm275_vm10, %v3220_v21, 0  ;;  %v434_v21 = vsel %vm225_vm12, %v3134_v4, 0 }
 0x3c6   :  { %4324 = vst [vmem:[#allocation22_spill] sm:$0xff] %v3318_v15  ;;  %v836_v15 = vcvt.s32.f32 %v834_v20  ;;  %v849_v20 = vcvt.s32.f32 %v847_v22  ;;  %v861_v22 = vcvt.s32.f32 %v859_v50  ;;  %vm228_vm7 = vcmp.eq.s32.totalorder %v3120_v48, %v3105_v36 }
 0x3c7   :  { %v3349_v14 = vsel %vm245_vm14, %v3323_v16, 0  ;;  %v3382_v63 = vsel %vm250_vm4, %v3323_v16, 0  ;;  %vm253_vm8 = vcmp.eq.s32.totalorder %v3326_v23, %v3034_v31  ;;  %vm254_vm9 = vcmp.eq.s32.totalorder %v3326_v23, %v3038_v37 }
 0x3c8   :  { %4326 = vst [vmem:[#allocation24_spill] sm:$0xff] %v3349_v14  ;;  %4331 = vst [vmem:[#allocation29_spill] sm:$0xff] %v3382_v63  ;;  %vm255_vm10 = vcmp.eq.s32.totalorder %v3326_v23, %v3046_v45  ;;  %vm256_vm11 = vcmp.eq.s32.totalorder %v3326_v23, %v3050_v61  ;;  %vm257_vm12 = vcmp.eq.s32.totalorder %v3326_v23, %v3060_v8 }
 0x3c9   :  { %828 = vadd.xlane.f32.xlu1 %v825_v46  ;;  %826 = vadd.xlane.f32.xlu0 %v824_v35  ;;  %v858_v46 = vand.u32 65535, %v433_v44  ;;  %v3359_v35 = vsel %vm246_vm15, %v3323_v16, 0  ;;  %v3362_v44 = vsel %vm247_vm0, %v3323_v16, 0  ;;  %vm259_vm14 = vcmp.eq.s32.totalorder %v3326_v23, %v3074_v52 }
 0x3ca   :  { %4327 = vst [vmem:[#allocation25_spill] sm:$0xff] %v3359_v35  ;;  %4328 = vst [vmem:[#allocation26_spill] sm:$0xff] %v3362_v44  ;;  %v3376_v44 = vsel %vm249_vm2, %v3323_v16, 0  ;;  %vm260_vm15 = vcmp.eq.s32.totalorder %v3326_v23, %v3105_v36 }
 0x3cb   :  { %v860_v49 = vcvt.s32.f32 %v858_v46  ;;  %4330 = vst [vmem:[#allocation28_spill] sm:$0xff] %v3376_v44 }
 0x3cd   :  { %840 = vadd.xlane.f32.xlu1 %v837_v17  ;;  %838 = vadd.xlane.f32.xlu0 %v836_v15  ;;  %v3365_v15 = vsel %vm248_vm1, %v3323_v16, 0  ;;  %v435_v17 = vsel %vm226_vm13, %v3134_v4, 0  ;;  %vm258_vm13 = vcmp.eq.s32.totalorder %v3326_v23, %v3071_v53 }
 0x3ce   :  { %4329 = vst [vmem:[#allocation27_spill] sm:$0xff] %v3365_v15  ;;  %v436_v15 = vsel %vm227_vm3, %v3134_v4, 0  ;;  %v883_v35 = vshrl.u32 %v435_v17, 16  ;;  %v882_v14 = vand.u32 65535, %v435_v17  ;;  %v132_v17 = vcombine.high %v3170_v27, %v3170_v27 }
 0x3cf   :  { %v894_v63 = vand.u32 65535, %v436_v15 }
 0x3d0   :  { %v3415_v27 = vrot.slane %v132_v17, %v2953_v43 }
 0x3d1   :  { %852 = vadd.xlane.f32.xlu1 %v849_v20  ;;  %850 = vadd.xlane.f32.xlu0 %v848_v30  ;;  %v871_v20 = vshrl.u32 %v434_v21, 16  ;;  %v870_v30 = vand.u32 65535, %v434_v21  ;;  %v3387_v21 = vsel %vm251_vm5, %v3323_v16, 0 }
 0x3d2   :  { %4332 = vst [vmem:[#allocation30_spill] sm:$0xff] %v3387_v21  ;;  %v895_v21 = vshrl.u32 %v436_v15, 16  ;;  %v3422_v15 = vsel %vm255_vm10, %v3323_v16, 0 }
 0x3d3   :  { %v873_v50 = vcvt.s32.f32 %v871_v20  ;;  %v872_v46 = vcvt.s32.f32 %v870_v30  ;;  %v885_v20 = vcvt.s32.f32 %v883_v35  ;;  %v884_v30 = vcvt.s32.f32 %v882_v14  ;;  %4336 = vst [vmem:[#allocation34_spill] sm:$0xff] %v3422_v15 }
 0x3d4   :  { %v437_v14 = vsel %vm228_vm7, %v3134_v4, 0  ;;  %v3419_v35 = vsel %vm254_vm9, %v3323_v16, 0  ;;  %v3430_v4 = vsel %vm257_vm12, %v3323_v16, 0  ;;  %v3450_v15 = vsel %vm259_vm14, %v3323_v16, 0 }
 0x3d5   :  { %864 = vadd.xlane.f32.xlu1 %v861_v22  ;;  %862 = vadd.xlane.f32.xlu0 %v860_v49  ;;  %v341_v22 = vcombine.high %v3179_v38, %v3179_v38  ;;  %v3398_v49 = vsel %vm252_vm6, %v3323_v16, 0  ;;  %v3403_v38 = vsel %vm253_vm8, %v3323_v16, 0  ;;  %4335 = vst [vmem:[#allocation33_spill] sm:$0xff] %v3419_v35  ;;  %v906_v17 = vand.u32 65535, %v437_v14  ;;  %4338 = vst [vmem:[#allocation36_spill] sm:$0xff] %v3430_v4 }
 0x3d6   :  { %4333 = vst [vmem:[#allocation31_spill] sm:$0xff] %v3398_v49  ;;  %4334 = vst [vmem:[#allocation32_spill] sm:$0xff] %v3403_v38  ;;  %vm2080_vm12 = vcmask 130112   ;;  %v2096_v35 = vadd.s32 4294967264, %v2913_v1  ;;  %vm2094_vm14 = vcmask 261312  }
 0x3d7   :  { %v3412_v48 = vrot.slane %v341_v22, %v2953_v43  ;;  %v896_v22 = vcvt.s32.f32 %v894_v63  ;;  %v907_v43 = vshrl.u32 %v437_v14, 16  ;;  %v919_v63 = vshrl.u32 %v3089_v32, 16  ;;  %4340 = vst [vmem:[#allocation38_spill] sm:$0xff] %v3450_v15 }
 0x3d8   :  { %v3445_v14 = vsel %vm258_vm13, %v3323_v16, 0  ;;  %vm2087_vm13 = vcmask 195712  }
 0x3d9   :  { %876 = vadd.xlane.f32.xlu1 %v873_v50  ;;  %874 = vadd.xlane.f32.xlu0 %v872_v46  ;;  %v3425_v50 = vsel %vm256_vm11, %v3323_v16, 0  ;;  %v897_v46 = vcvt.s32.f32 %v895_v21  ;;  %v918_v21 = vand.u32 65535, %v3089_v32  ;;  %4339 = vst [vmem:[#allocation37_spill] sm:$0xff] %v3445_v14  ;;  %v909_v4 = vcvt.s32.f32 %v907_v43 }
 0x3da   :  { %4337 = vst [vmem:[#allocation35_spill] sm:$0xff] %v3425_v50  ;;  %v908_v50 = vcvt.s32.f32 %v906_v17  ;;  %v921_v32 = vcvt.s32.f32 %v919_v63  ;;  %v931_v14 = vshrl.u32 %v3097_v34, 16  ;;  %v930_v43 = vand.u32 65535, %v3097_v34 }
 0x3dc   :  { %v933_v63 = vcvt.s32.f32 %v931_v14 }
 0x3dd   :  { %888 = vadd.xlane.f32.xlu1 %v885_v20  ;;  %886 = vadd.xlane.f32.xlu0 %v884_v30  ;;  %v3436_v20 = vrot.slane %v3412_v48, %v2971_v51  ;;  %v3440_v30 = vrot.slane %v3415_v27, %v2971_v51 }
 0x3df   :  { %vm277_vm0 = vcmp.eq.s32.totalorder %v3440_v30, %v2949_v41  ;;  %vm278_vm1 = vcmp.eq.s32.totalorder %v3440_v30, %v2982_v54  ;;  %vm279_vm2 = vcmp.eq.s32.totalorder %v3440_v30, %v2993_v57  ;;  %vm280_vm3 = vcmp.eq.s32.totalorder %v3440_v30, %v3004_v62 }
 0x3e0   :  { %v3462_v17 = vsel %vm277_vm0, %v3436_v20, 0  ;;  %v3471_v23 = vsel %vm278_vm1, %v3436_v20, 0  ;;  %v3477_v34 = vsel %vm280_vm3, %v3436_v20, 0  ;;  %vm281_vm4 = vcmp.eq.s32.totalorder %v3440_v30, %v3010_v6 }
 0x3e1   :  { %900 = vadd.xlane.f32.xlu1 %v897_v46  ;;  %898 = vadd.xlane.f32.xlu0 %v896_v22  ;;  %v3455_v46 = vsel %vm260_vm15, %v3323_v16, 0  ;;  %v920_v22 = vcvt.s32.f32 %v918_v21  ;;  %4342 = vst [vmem:[#allocation40_spill] sm:$0xff] %v3462_v17  ;;  %4343 = vst [vmem:[#allocation41_spill] sm:$0xff] %v3471_v23  ;;  %v3474_v16 = vsel %vm279_vm2, %v3436_v20, 0  ;;  %v932_v21 = vcvt.s32.f32 %v930_v43 }
 0x3e2   :  { %4341 = vst [vmem:[#allocation39_spill] sm:$0xff] %v3455_v46  ;;  %4344 = vst [vmem:[#allocation42_spill] sm:$0xff] %v3474_v16  ;;  %vm282_vm5 = vcmp.eq.s32.totalorder %v3440_v30, %v3016_v12  ;;  %v162_v16 = vcombine.high %v3188_v40, %v3188_v40  ;;  %vm283_vm6 = vcmp.eq.s32.totalorder %v3440_v30, %v3019_v13  ;;  %v2075_v17 = vadd.s32 4294967288, %v2913_v1 }
 0x3e3   :  { %4345 = vst [vmem:[#allocation43_spill] sm:$0xff] %v3477_v34  ;;  %v373_v34 = vcombine.high %v3412_v48, %v3412_v48  ;;  %v3495_v43 = vsel %vm282_vm5, %v3436_v20, 0  ;;  %v3502_v23 = vsel %vm283_vm6, %v3436_v20, 0  ;;  %vm284_vm7 = vcmp.eq.s32.totalorder %v3440_v30, %v3028_v25 }
 0x3e4   :  { %4347 = vst [vmem:[#allocation45_spill] sm:$0xff] %v3495_v43  ;;  %4348 = vst [vmem:[#allocation46_spill] sm:$0xff] %v3502_v23  ;;  %v164_v40 = vcombine.high %v3415_v27, %v3415_v27  ;;  %vm285_vm8 = vcmp.eq.s32.totalorder %v3440_v30, %v3034_v31  ;;  %v967_v27 = vshrl.u32 %v3128_v59, 16  ;;  %vm286_vm9 = vcmp.eq.s32.totalorder %v3440_v30, %v3038_v37 }
 0x3e5   :  { %912 = vadd.xlane.f32.xlu1 %v909_v4  ;;  %910 = vadd.xlane.f32.xlu0 %v908_v50  ;;  %v943_v50 = vshrl.u32 %v3109_v47, 16  ;;  %v942_v4 = vand.u32 65535, %v3109_v47  ;;  %vm287_vm10 = vcmp.eq.s32.totalorder %v3440_v30, %v3046_v45  ;;  %vm288_vm11 = vcmp.eq.s32.totalorder %v3440_v30, %v3050_v61 }
 0x3e6   :  { %v3528_v43 = vrot.slane %v164_v40, %v2971_v51  ;;  %v3539_v40 = vsel %vm286_vm9, %v3436_v20, 0  ;;  %v3551_v15 = vsub.s32 %v2075_v17, %v2949_v41  ;;  %v990_v17 = vand.u32 65535, %v3147_v55 }
 0x3e7   :  { %v945_v47 = vcvt.s32.f32 %v943_v50  ;;  %v944_v14 = vcvt.s32.f32 %v942_v4  ;;  %v3512_v50 = vsel %vm284_vm7, %v3436_v20, 0  ;;  %v3520_v4 = vrot.slane %v162_v16, %v2971_v51  ;;  %4351 = vst [vmem:[#allocation49_spill] sm:$0xff] %v3539_v40 }
 0x3e8   :  { %4349 = vst [vmem:[#allocation47_spill] sm:$0xff] %v3512_v50  ;;  %v3525_v50 = vsel %vm285_vm8, %v3436_v20, 0  ;;  %v2082_v16 = vadd.s32 4294967280, %v2913_v1  ;;  %vm289_vm15 = vcmp.eq.s32.totalorder %v3440_v30, %v3060_v8  ;;  %vm290_vm0 = vcmp.eq.s32.totalorder %v3440_v30, %v3071_v53 }
 0x3e9   :  { %924 = vadd.xlane.f32.xlu1 %v921_v32  ;;  %922 = vadd.xlane.f32.xlu0 %v920_v22  ;;  %v3484_v32 = vsel %vm281_vm4, %v3436_v20, 0  ;;  %v371_v22 = vcombine.high %v3203_v7, %v3203_v7  ;;  %v954_v7 = vand.u32 65535, %v3125_v58  ;;  %4350 = vst [vmem:[#allocation48_spill] sm:$0xff] %v3525_v50  ;;  %v3548_v50 = vsub.s32 %v2913_v1, %v2949_v41 }
 0x3ea   :  { %4346 = vst [vmem:[#allocation44_spill] sm:$0xff] %v3484_v32  ;;  %v955_v32 = vshrl.u32 %v3125_v58, 16  ;;  %v3517_v58 = vrot.slane %v373_v34, %v2971_v51  ;;  %vm291_vm1 = vcmp.eq.s32.totalorder %v3440_v30, %v3074_v52  ;;  %vm2101_vm2 = vcmask 326912  }
 0x3eb   :  { %v3509_v48 = vrot.slane %v371_v22, %v2971_v51  ;;  %v966_v22 = vand.u32 65535, %v3128_v59  ;;  %v956_v23 = vcvt.s32.f32 %v954_v7  ;;  %vm292_vm3 = vcmp.eq.s32.totalorder %v3440_v30, %v3105_v36 }
 0x3ec   :  { %vm293_vm4 = vcmp.eq.s32.totalorder %v3520_v4, %v2949_v41  ;;  %vm294_vm5 = vcmp.eq.s32.totalorder %v3520_v4, %v2982_v54  ;;  %vm2108_vm6 = vcmask 392512   ;;  %vm2115_vm7 = vcmask 458112  }
 0x3ed   :  { %936 = vadd.xlane.f32.xlu1 %v933_v63  ;;  %934 = vadd.xlane.f32.xlu0 %v932_v21  ;;  %v968_v7 = vcvt.s32.f32 %v966_v22  ;;  %vm295_vm8 = vcmp.eq.s32.totalorder %v3520_v4, %v2993_v57  ;;  %vm296_vm9 = vcmp.eq.s32.totalorder %v3520_v4, %v3004_v62 }
 0x3f1   :  { %948 = vadd.xlane.f32.xlu1 %v945_v47  ;;  %946 = vadd.xlane.f32.xlu0 %v944_v14  ;;  %v957_v14 = vcvt.s32.f32 %v955_v32  ;;  %v969_v32 = vcvt.s32.f32 %v967_v27  ;;  %v3554_v27 = vsel %vm288_vm11, %v3436_v20, 0  ;;  %vm2122_vm11 = vcmask 523712  }
 0x3f2   :  { %v541_v63 = vpop.xlane.xlu1 %540  ;;  %v539_v21 = vpop.xlane.xlu0 %538  ;;  %4353 = vst [vmem:[#allocation51_spill] sm:$0xff] %v3554_v27 }
 0x3f3   :  { %v543_v47 = vcvt.f32.s32 %v541_v63  ;;  %v542_v34 = vcvt.f32.s32 %v539_v21  ;;  %v3542_v63 = vsel %vm287_vm10, %v3436_v20, 0  ;;  %vm297_vm10 = vcmp.eq.s32.totalorder %v3520_v4, %v3010_v6 }
 0x3f4   :  { %4352 = vst [vmem:[#allocation50_spill] sm:$0xff] %v3542_v63  ;;  %v991_v63 = vshrl.u32 %v3147_v55, 16  ;;  %v3570_v55 = vsel %vm289_vm15, %v3436_v20, 0  ;;  %vm298_vm15 = vcmp.eq.s32.totalorder %v3520_v4, %v3016_v12 }
 0x3f5   :  { %v544_v46 = vshll.u32 %v543_v47, 16  ;;  %960 = vadd.xlane.f32.xlu1 %v957_v14  ;;  %958 = vadd.xlane.f32.xlu0 %v956_v23  ;;  %v979_v47 = vshrl.u32 %v3138_v56, 16  ;;  %v978_v14 = vand.u32 65535, %v3138_v56  ;;  %4354 = vst [vmem:[#allocation52_spill] sm:$0xff] %v3570_v55 }
 0x3f6   :  { %v553_v59 = vpop.xlane.xlu1 %552  ;;  %v551_v51 = vpop.xlane.xlu0 %550 }
 0x3f7   :  { %v545_v23 = vadd.s32 %v544_v46, %v542_v34  ;;  %v555_v21 = vcvt.f32.s32 %v553_v59  ;;  %v554_v40 = vcvt.f32.s32 %v551_v51  ;;  %v3557_v46 = vsub.s32 %v2082_v16, %v2949_v41 }
 0x3f8   :  { %v2089_v59 = vadd.s32 4294967272, %v2913_v1  ;;  %v980_v51 = vcvt.s32.f32 %v978_v14  ;;  %v993_v14 = vcvt.s32.f32 %v991_v63  ;;  %v1015_v63 = vshrl.u32 %v3161_v19, 16 }
 0x3f9   :  { %v556_v22 = vshll.u32 %v555_v21, 16  ;;  %972 = vadd.xlane.f32.xlu1 %v969_v32  ;;  %970 = vadd.xlane.f32.xlu0 %v968_v7  ;;  %v981_v21 = vcvt.s32.f32 %v979_v47  ;;  %v2074_v32 = vrot.slane %v545_v23, %v3548_v50 }
 0x3fa   :  { %v565_v56 = vpop.xlane.xlu1 %564  ;;  %v563_v34 = vpop.xlane.xlu0 %562 }
 0x3fb   :  { %v557_v38 = vadd.s32 %v556_v22, %v554_v40  ;;  %v567_v27 = vcvt.f32.s32 %v565_v56  ;;  %v566_v7 = vcvt.f32.s32 %v563_v34  ;;  %v3573_v40 = vsel %vm290_vm0, %v3436_v20, 0 }
 0x3fc   :  { %4355 = vst [vmem:[#allocation53_spill] sm:$0xff] %v3573_v40  ;;  %v992_v22 = vcvt.s32.f32 %v990_v17  ;;  %v1003_v56 = vshrl.u32 %v3158_v18, 16  ;;  %v2103_v40 = vadd.s32 4294967256, %v2913_v1  ;;  %vm299_vm0 = vcmp.eq.s32.totalorder %v3520_v4, %v3019_v13 }
 0x3fd   :  { %v2079_v16 = vrot.slane %v557_v38, %v3551_v15  ;;  %v568_v49 = vshll.u32 %v567_v27, 16  ;;  %984 = vadd.xlane.f32.xlu1 %v981_v21  ;;  %982 = vadd.xlane.f32.xlu0 %v980_v51  ;;  %v1002_v21 = vand.u32 65535, %v3158_v18  ;;  %v3581_v51 = vsub.s32 %v2089_v59, %v2949_v41 }
 0x3fe   :  { %v577_v23 = vpop.xlane.xlu1 %576  ;;  %v575_v47 = vpop.xlane.xlu0 %574  ;;  %v1005_v59 = vcvt.s32.f32 %v1003_v56  ;;  %v1027_v56 = vshrl.u32 %v3173_v29, 16 }
 0x3ff   :  { %v2081_v38 = vsel %vm2080_vm12, %v2079_v16, %v2074_v32  ;;  %v569_v27 = vadd.s32 %v568_v49, %v566_v7  ;;  %v579_v34 = vcvt.f32.s32 %v577_v23  ;;  %v578_v55 = vcvt.f32.s32 %v575_v47 }
 0x400   :  { %v3587_v32 = vsel %vm291_vm1, %v3436_v20, 0  ;;  %v1014_v7 = vand.u32 65535, %v3161_v19  ;;  %v3593_v16 = vsel %vm292_vm3, %v3436_v20, 0  ;;  %vm2129_vm1 = vcmask 589312  }
 0x401   :  { %v2086_v17 = vrot.slane %v569_v27, %v3557_v46  ;;  %v580_v44 = vshll.u32 %v579_v34, 16  ;;  %996 = vadd.xlane.f32.xlu1 %v993_v14  ;;  %994 = vadd.xlane.f32.xlu0 %v992_v22  ;;  %4356 = vst [vmem:[#allocation54_spill] sm:$0xff] %v3593_v16  ;;  %v1004_v22 = vcvt.s32.f32 %v1002_v21  ;;  %v3599_v27 = vsub.s32 %v2096_v35, %v2949_v41 }
 0x402   :  { %v589_v18 = vpop.xlane.xlu1 %588  ;;  %v587_v49 = vpop.xlane.xlu0 %586  ;;  %v2110_v34 = vadd.s32 4294967248, %v2913_v1  ;;  %v3605_v16 = vsel %vm293_vm4, %v3509_v48, 0  ;;  %v3610_v35 = vsub.s32 %v2103_v40, %v2949_v41  ;;  %v1016_v21 = vcvt.s32.f32 %v1014_v7 }
 0x403   :  { %v2088_v23 = vsel %vm2087_vm13, %v2086_v17, %v2081_v38  ;;  %v581_v47 = vadd.s32 %v580_v44, %v578_v55  ;;  %v591_v14 = vcvt.f32.s32 %v589_v18  ;;  %v590_v30 = vcvt.f32.s32 %v587_v49  ;;  %4357 = vst [vmem:[#allocation55_spill] sm:$0xff] %v3605_v16 }
 0x404   :  { %v1017_v38 = vcvt.s32.f32 %v1015_v63  ;;  %v3654_v16 = vsel %vm298_vm15, %v3509_v48, 0  ;;  %vm2136_vm3 = vcmask 654912   ;;  %vm300_vm4 = vcmp.eq.s32.totalorder %v3520_v4, %v3028_v25 }
 0x405   :  { %v2093_v19 = vrot.slane %v581_v47, %v3581_v51  ;;  %v592_v20 = vshll.u32 %v591_v14, 16  ;;  %1008 = vadd.xlane.f32.xlu1 %v1005_v59  ;;  %1006 = vadd.xlane.f32.xlu0 %v1004_v22  ;;  %v1026_v59 = vand.u32 65535, %v3173_v29  ;;  %v3615_v47 = vsub.s32 %v2110_v34, %v2949_v41 }
 0x406   :  { %v601_v44 = vpop.xlane.xlu1 %600  ;;  %v599_v55 = vpop.xlane.xlu0 %598  ;;  %v1029_v14 = vcvt.s32.f32 %v1027_v56  ;;  %v3618_v22 = vsel %vm294_vm5, %v3509_v48, 0  ;;  %v1038_v34 = vand.u32 65535, %v3184_v39  ;;  %v3626_v56 = vsel %vm295_vm8, %v3509_v48, 0 }
 0x407   :  { %v2095_v17 = vsel %vm2094_vm14, %v2093_v19, %v2088_v23  ;;  %v593_v18 = vadd.s32 %v592_v20, %v590_v30  ;;  %v603_v49 = vcvt.f32.s32 %v601_v44  ;;  %4358 = vst [vmem:[#allocation56_spill] sm:$0xff] %v3618_v22  ;;  %v602_v7 = vcvt.f32.s32 %v599_v55  ;;  %4359 = vst [vmem:[#allocation57_spill] sm:$0xff] %v3626_v56 }
 0x408   :  { %v1039_v23 = vshrl.u32 %v3184_v39, 16  ;;  %v1028_v55 = vcvt.s32.f32 %v1026_v59  ;;  %v2124_v39 = vadd.s32 4294967232, %v2913_v1  ;;  %v3637_v56 = vsel %vm296_vm9, %v3509_v48, 0 }
 0x409   :  { %v2100_v40 = vrot.slane %v593_v18, %v3599_v27  ;;  %v604_v63 = vshll.u32 %v603_v49, 16  ;;  %1020 = vadd.xlane.f32.xlu1 %v1017_v38  ;;  %1018 = vadd.xlane.f32.xlu0 %v1016_v21  ;;  %v2117_v21 = vadd.s32 4294967240, %v2913_v1  ;;  %4360 = vst [vmem:[#allocation58_spill] sm:$0xff] %v3637_v56  ;;  %v3640_v22 = vsel %vm297_vm10, %v3509_v48, 0 }
 0x40a   :  { %v613_v29 = vpop.xlane.xlu1 %612  ;;  %v611_v30 = vpop.xlane.xlu0 %610  ;;  %4361 = vst [vmem:[#allocation59_spill] sm:$0xff] %v3640_v22  ;;  %v1041_v59 = vcvt.s32.f32 %v1039_v23  ;;  %v1062_v22 = vand.u32 65535, %v3199_v5  ;;  %v1063_v23 = vshrl.u32 %v3199_v5, 16  ;;  %v2131_v5 = vadd.s32 4294967224, %v2913_v1 }
 0x40b   :  { %v2102_v19 = vsel %vm2101_vm2, %v2100_v40, %v2095_v17  ;;  %v605_v20 = vadd.s32 %v604_v63, %v602_v7  ;;  %v615_v44 = vcvt.f32.s32 %v613_v29  ;;  %v614_v38 = vcvt.f32.s32 %v611_v30 }
 0x40c   :  { %v1040_v63 = vcvt.s32.f32 %v1038_v34  ;;  %v1051_v7 = vshrl.u32 %v3196_v3, 16  ;;  %vm302_vm5 = vcmp.eq.s32.totalorder %v3520_v4, %v3038_v37  ;;  %vm301_vm8 = vcmp.eq.s32.totalorder %v3520_v4, %v3034_v31 }
 0x40d   :  { %v2107_v18 = vrot.slane %v605_v20, %v3610_v35  ;;  %v616_v49 = vshll.u32 %v615_v44, 16  ;;  %1032 = vadd.xlane.f32.xlu1 %v1029_v14  ;;  %1030 = vadd.xlane.f32.xlu0 %v1028_v55  ;;  %v1050_v20 = vand.u32 65535, %v3196_v3  ;;  %v3648_v44 = vsub.s32 %v2117_v21, %v2949_v41 }
 0x40e   :  { %v625_v17 = vpop.xlane.xlu1 %624  ;;  %v623_v40 = vpop.xlane.xlu0 %622  ;;  %v1053_v21 = vcvt.s32.f32 %v1051_v7  ;;  %vm303_vm9 = vcmp.eq.s32.totalorder %v3520_v4, %v3046_v45  ;;  %vm2143_vm10 = vcmask 720512   ;;  %vm304_vm15 = vcmp.eq.s32.totalorder %v3520_v4, %v3050_v61 }
 0x40f   :  { %v2109_v29 = vsel %vm2108_vm6, %v2107_v18, %v2102_v19  ;;  %v617_v30 = vadd.s32 %v616_v49, %v614_v38  ;;  %v627_v14 = vcvt.f32.s32 %v625_v17  ;;  %v626_v55 = vcvt.f32.s32 %v623_v40 }
 0x410   :  { %v3659_v19 = vsub.s32 %v2124_v39, %v2949_v41  ;;  %v1052_v40 = vcvt.s32.f32 %v1050_v20  ;;  %v1075_v20 = vshrl.u32 %v3210_v11, 16 }
 0x411   :  { %v2114_v34 = vrot.slane %v617_v30, %v3615_v47  ;;  %v628_v56 = vshll.u32 %v627_v14, 16  ;;  %1044 = vadd.xlane.f32.xlu1 %v1041_v59  ;;  %1042 = vadd.xlane.f32.xlu0 %v1040_v63  ;;  %v1064_v59 = vcvt.s32.f32 %v1062_v22  ;;  %v2138_v63 = vadd.s32 4294967216, %v2913_v1 }
 0x412   :  { %v637_v3 = vpop.xlane.xlu1 %636  ;;  %v635_v38 = vpop.xlane.xlu0 %634  ;;  %v3665_v30 = vsel %vm299_vm0, %v3509_v48, 0  ;;  %v3672_v22 = vsel %vm300_vm4, %v3509_v48, 0  ;;  %vm305_vm0 = vcmp.eq.s32.totalorder %v3520_v4, %v3060_v8  ;;  %vm2150_vm4 = vcmask 786112  }
 0x413   :  { %v2116_v18 = vsel %vm2115_vm7, %v2114_v34, %v2109_v29  ;;  %v629_v49 = vadd.s32 %v628_v56, %v626_v55  ;;  %v639_v17 = vcvt.f32.s32 %v637_v3  ;;  %4362 = vst [vmem:[#allocation60_spill] sm:$0xff] %v3665_v30  ;;  %v638_v14 = vcvt.f32.s32 %v635_v38  ;;  %4363 = vst [vmem:[#allocation61_spill] sm:$0xff] %v3672_v22 }
 0x414   :  { %v1065_v29 = vcvt.s32.f32 %v1063_v23  ;;  %v3681_v23 = vsub.s32 %v2131_v5, %v2949_v41  ;;  %v3694_v5 = vsub.s32 %v2138_v63, %v2949_v41  ;;  %v2152_v30 = vadd.s32 4294967200, %v2913_v1 }
 0x415   :  { %v2121_v39 = vrot.slane %v629_v49, %v3648_v44  ;;  %v640_v7 = vshll.u32 %v639_v17, 16  ;;  %1056 = vadd.xlane.f32.xlu1 %v1053_v21  ;;  %1054 = vadd.xlane.f32.xlu0 %v1052_v40  ;;  %v1074_v21 = vand.u32 65535, %v3210_v11  ;;  %v1087_v17 = vshrl.u32 %v3226_v24, 16 }
 0x416   :  { %v649_v56 = vpop.xlane.xlu1 %648  ;;  %v647_v55 = vpop.xlane.xlu0 %646  ;;  %v3704_v63 = vsel %vm303_vm9, %v3509_v48, 0  ;;  %vm4310_vm9 = vcmask 851712  }
 0x417   :  { %v2123_v34 = vsel %vm2122_vm11, %v2121_v39, %v2116_v18  ;;  %v641_v3 = vadd.s32 %v640_v7, %v638_v14  ;;  %v651_v38 = vcvt.f32.s32 %v649_v56  ;;  %v650_v49 = vcvt.f32.s32 %v647_v55  ;;  %4366 = vst [vmem:[#allocation64_spill] sm:$0xff] %v3704_v63 }
 0x418   :  { %v3688_v18 = vsel %vm302_vm5, %v3509_v48, 0  ;;  %v3691_v39 = vsel %vm301_vm8, %v3509_v48, 0  ;;  %v1077_v14 = vcvt.s32.f32 %v1075_v20  ;;  %v1086_v56 = vand.u32 65535, %v3226_v24 }
 0x419   :  { %v2128_v40 = vrot.slane %v641_v3, %v3659_v19  ;;  %v652_v22 = vshll.u32 %v651_v38, 16  ;;  %1068 = vadd.xlane.f32.xlu1 %v1065_v29  ;;  %1066 = vadd.xlane.f32.xlu0 %v1064_v59  ;;  %4364 = vst [vmem:[#allocation62_spill] sm:$0xff] %v3688_v18  ;;  %4365 = vst [vmem:[#allocation63_spill] sm:$0xff] %v3691_v39  ;;  %v1076_v59 = vcvt.s32.f32 %v1074_v21  ;;  %v2145_v38 = vadd.s32 4294967208, %v2913_v1 }
 0x41a   :  { %v661_v11 = vpop.xlane.xlu1 %660  ;;  %v659_v7 = vpop.xlane.xlu0 %658  ;;  %v1089_v18 = vcvt.s32.f32 %v1087_v17  ;;  %v1088_v21 = vcvt.s32.f32 %v1086_v56  ;;  %v3711_v17 = vsel %vm304_vm15, %v3509_v48, 0  ;;  %v3721_v56 = vsub.s32 %v2152_v30, %v2949_v41 }
 0x41b   :  { %v2130_v55 = vsel %vm2129_vm1, %v2128_v40, %v2123_v34  ;;  %v653_v3 = vadd.s32 %v652_v22, %v650_v49  ;;  %v663_v29 = vcvt.f32.s32 %v661_v11  ;;  %v662_v24 = vcvt.f32.s32 %v659_v7  ;;  %4367 = vst [vmem:[#allocation65_spill] sm:$0xff] %v3711_v17 }
 0x41c   :  { %v1099_v49 = vshrl.u32 %v3236_v33, 16  ;;  %vm306_vm5 = vcmp.eq.s32.totalorder %v3520_v4, %v3071_v53  ;;  %vm307_vm8 = vcmp.eq.s32.totalorder %v3520_v4, %v3074_v52  ;;  %vm308_vm15 = vcmp.eq.s32.totalorder %v3520_v4, %v3105_v36 }
 0x41d   :  { %v2135_v20 = vrot.slane %v653_v3, %v3681_v23  ;;  %v664_v39 = vshll.u32 %v663_v29, 16  ;;  %1080 = vadd.xlane.f32.xlu1 %v1077_v14  ;;  %1078 = vadd.xlane.f32.xlu0 %v1076_v59  ;;  %v1098_v14 = vand.u32 65535, %v3236_v33  ;;  %v3718_v3 = vsub.s32 %v2145_v38, %v2949_v41 }
 0x41e   :  { %v673_v22 = vpop.xlane.xlu1 %672  ;;  %v671_v34 = vpop.xlane.xlu0 %670  ;;  %v3724_v29 = vsel %vm305_vm0, %v3509_v48, 0  ;;  %v1302_v38 = vand.u32 65535, %v3239_v2  ;;  %vm4309_vm0 = vcmask 917312  }
 0x41f   :  { %v2137_v40 = vsel %vm2136_vm3, %v2135_v20, %v2130_v55  ;;  %v665_v11 = vadd.s32 %v664_v39, %v662_v24  ;;  %v675_v7 = vcvt.f32.s32 %v673_v22  ;;  %4368 = vst [vmem:[#allocation66_spill] sm:$0xff] %v3724_v29  ;;  %v674_v63 = vcvt.f32.s32 %v671_v34 }
 0x420   :  { %v1303_v39 = vshrl.u32 %v3239_v2, 16  ;;  %v1101_v20 = vcvt.s32.f32 %v1099_v49  ;;  %v1100_v34 = vcvt.s32.f32 %v1098_v14  ;;  %v3738_v49 = vsel %vm306_vm5, %v3509_v48, 0 }
 0x421   :  { %v2142_v59 = vrot.slane %v665_v11, %v3694_v5  ;;  %v676_v17 = vshll.u32 %v675_v7, 16  ;;  %1092 = vadd.xlane.f32.xlu1 %v1089_v18  ;;  %1090 = vadd.xlane.f32.xlu0 %v1088_v21  ;;  %v2159_v18 = vadd.s32 4294967192, %v2913_v1  ;;  %v2166_v21 = vadd.s32 4294967184, %v2913_v1  ;;  %4369 = vst [vmem:[#allocation67_spill] sm:$0xff] %v3738_v49 }
 0x422   :  { %v685_v55 = vpop.xlane.xlu1 %684  ;;  %v683_v33 = vpop.xlane.xlu0 %682  ;;  %v1315_v11 = vshrl.u32 %v3245_v0, 16  ;;  %v1305_v14 = vcvt.s32.f32 %v1303_v39  ;;  %vm310_vm5 = vcmp.eq.s32.totalorder %v3528_v43, %v2982_v54 }
 0x423   :  { %v2144_v30 = vsel %vm2143_vm10, %v2142_v59, %v2137_v40  ;;  %v677_v24 = vadd.s32 %v676_v17, %v674_v63  ;;  %v687_v22 = vcvt.f32.s32 %v685_v55  ;;  %v686_v29 = vcvt.f32.s32 %v683_v33 }
 0x424   :  { %v3742_v40 = vsel %vm307_vm8, %v3509_v48, 0  ;;  %v1314_v59 = vand.u32 65535, %v3245_v0  ;;  %v3749_v33 = vsub.s32 %v2159_v18, %v2949_v41  ;;  %v1317_v4 = vcvt.s32.f32 %v1315_v11 }
 0x425   :  { %v2149_v2 = vrot.slane %v677_v24, %v3718_v3  ;;  %v688_v7 = vshll.u32 %v687_v22, 16  ;;  %1104 = vadd.xlane.f32.xlu1 %v1101_v20  ;;  %1102 = vadd.xlane.f32.xlu0 %v1100_v34  ;;  %4370 = vst [vmem:[#allocation68_spill] sm:$0xff] %v3742_v40  ;;  %v1304_v22 = vcvt.s32.f32 %v1302_v38  ;;  %v3752_v20 = vsub.s32 %v2166_v21, %v2949_v41 }
 0x426   :  { %v697_v63 = vpop.xlane.xlu1 %696  ;;  %v695_v17 = vpop.xlane.xlu0 %694  ;;  %v3755_v34 = vsel %vm308_vm15, %v3509_v48, 0  ;;  %v1316_v38 = vcvt.s32.f32 %v1314_v59  ;;  %v1327_v18 = vshrl.u32 %v3254_v9, 16  ;;  %vm309_vm8 = vcmp.eq.s32.totalorder %v3528_v43, %v2949_v41 }
 0x427   :  { %v2151_v55 = vsel %vm2150_vm4, %v2149_v2, %v2144_v30  ;;  %v689_v49 = vadd.s32 %v688_v7, %v686_v29  ;;  %v699_v24 = vcvt.f32.s32 %v697_v63  ;;  %v698_v40 = vcvt.f32.s32 %v695_v17 }
 0x428   :  { %v1326_v2 = vand.u32 65535, %v3254_v9  ;;  %v2173_v7 = vadd.s32 4294967176, %v2913_v1  ;;  %v1339_v11 = vshrl.u32 %v3257_v10, 16  ;;  %v1338_v63 = vand.u32 65535, %v3257_v10 }
 0x429   :  { %v2156_v0 = vrot.slane %v689_v49, %v3721_v56  ;;  %v700_v39 = vshll.u32 %v699_v24, 16  ;;  %1308 = vadd.xlane.f32.xlu1 %v1305_v14  ;;  %1306 = vadd.xlane.f32.xlu0 %v1304_v22  ;;  %v3769_v17 = vsel %vm310_vm5, %v3517_v58, 0  ;;  %v1329_v24 = vcvt.s32.f32 %v1327_v18 }
 0x42a   :  { %v709_v29 = vpop.xlane.xlu1 %708  ;;  %v707_v30 = vpop.xlane.xlu0 %706  ;;  %vm311_vm15 = vcmp.eq.s32.totalorder %v3528_v43, %v2993_v57  ;;  %vm2171_vm5 = vcmask 982912   ;;  %v1340_v57 = vcvt.s32.f32 %v1338_v63 }
 0x42b   :  { %v2158_v48 = vsel %vm4310_vm9, %v2156_v0, %v2151_v55  ;;  %v701_v21 = vadd.s32 %v700_v39, %v698_v40  ;;  %v711_v49 = vcvt.f32.s32 %v709_v29  ;;  %v710_v59 = vcvt.f32.s32 %v707_v30 }
 0x42c   :  { %v3773_v40 = vsel %vm309_vm8, %v3517_v58, 0  ;;  %v1328_v39 = vcvt.s32.f32 %v1326_v2  ;;  %v3779_v29 = vsub.s32 %v2173_v7, %v2949_v41  ;;  %v3782_v30 = vsel %vm311_vm15, %v3517_v58, 0 }
 0x42d   :  { %v2163_v54 = vrot.slane %v701_v21, %v3749_v33  ;;  %v712_v14 = vshll.u32 %v711_v49, 16  ;;  %1320 = vadd.xlane.f32.xlu1 %v1317_v4  ;;  %1318 = vadd.xlane.f32.xlu0 %v1316_v38  ;;  %v1341_v4 = vcvt.s32.f32 %v1339_v11  ;;  %v1350_v2 = vand.u32 65535, %v3269_v28 }
 0x42e   :  { %v721_v55 = vpop.xlane.xlu1 %720  ;;  %v719_v9 = vpop.xlane.xlu0 %718  ;;  %vm312_vm8 = vcmp.eq.s32.totalorder %v3528_v43, %v3004_v62  ;;  %vm313_vm15 = vcmp.eq.s32.totalorder %v3528_v43, %v3010_v6  ;;  %vm2178_vm9 = vcmask 1048512  }
 0x42f   :  { %v2165_v10 = vsel %vm4309_vm0, %v2163_v54, %v2158_v48  ;;  %v713_v22 = vadd.s32 %v712_v14, %v710_v59  ;;  %v723_v0 = vcvt.f32.s32 %v721_v55  ;;  %v722_v18 = vcvt.f32.s32 %v719_v9 }
 0x430   :  { %v1351_v54 = vshrl.u32 %v3269_v28, 16  ;;  %vm314_vm0 = vcmp.eq.s32.totalorder %v3528_v43, %v3016_v12  ;;  %v3795_v63 = vsel %vm312_vm8, %v3517_v58, 0  ;;  %v3799_v62 = vsel %vm313_vm15, %v3517_v58, 0 }
 0x431   :  { %v2170_v38 = vrot.slane %v713_v22, %v3752_v20  ;;  %v724_v21 = vshll.u32 %v723_v0, 16  ;;  %1332 = vadd.xlane.f32.xlu1 %v1329_v24  ;;  %1330 = vadd.xlane.f32.xlu0 %v1328_v39  ;;  %v1363_v24 = vshrl.u32 %v3274_v42, 16  ;;  %v1362_v12 = vand.u32 65535, %v3274_v42 }
 0x432   :  { %v733_v49 = vpop.xlane.xlu1 %732  ;;  %v731_v48 = vpop.xlane.xlu0 %730  ;;  %v1353_v9 = vcvt.s32.f32 %v1351_v54  ;;  %vm315_vm8 = vcmp.eq.s32.totalorder %v3528_v43, %v3019_v13  ;;  %vm317_vm15 = vcmp.eq.s32.totalorder %v3528_v43, %v3034_v31 }
 0x433   :  { %v2172_v41 = vsel %vm2171_vm5, %v2170_v38, %v2165_v10  ;;  %v725_v7 = vadd.s32 %v724_v21, %v722_v18  ;;  %v735_v11 = vcvt.f32.s32 %v733_v49  ;;  %v734_v59 = vcvt.f32.s32 %v731_v48  ;;  %v4371_v49 = vld [vmem:[#allocation16_spill] sm:$0xff] }
 0x434   :  { %v3804_v10 = vsel %vm314_vm0, %v3517_v58, 0  ;;  %v1375_v42 = vshrl.u32 %v4371_v49, 16  ;;  %v1374_v48 = vand.u32 65535, %v4371_v49  ;;  %v3814_v54 = vsel %vm315_vm8, %v3517_v58, 0 }
 0x435   :  { %v2177_v14 = vrot.slane %v725_v7, %v3779_v29  ;;  %v736_v28 = vshll.u32 %v735_v11, 16  ;;  %1344 = vadd.xlane.f32.xlu1 %v1341_v4  ;;  %1342 = vadd.xlane.f32.xlu0 %v1340_v57  ;;  %v1352_v4 = vcvt.s32.f32 %v1350_v2  ;;  %vm316_vm0 = vcmp.eq.s32.totalorder %v3528_v43, %v3028_v25 }
 0x436   :  { %v745_v6 = vpop.xlane.xlu1 %744  ;;  %v743_v55 = vpop.xlane.xlu0 %742  ;;  %v1365_v7 = vcvt.s32.f32 %v1363_v24  ;;  %v1364_v11 = vcvt.s32.f32 %v1362_v12  ;;  %v3820_v13 = vsel %vm316_vm0, %v3517_v58, 0  ;;  %v1377_v24 = vcvt.s32.f32 %v1375_v42 }
 0x437   :  { %v3807_v22 = vsel %vm2178_vm9, %v2177_v14, %v2172_v41  ;;  %v737_v0 = vadd.s32 %v736_v28, %v734_v59  ;;  %v747_v39 = vcvt.f32.s32 %v745_v6  ;;  %v746_v21 = vcvt.f32.s32 %v743_v55  ;;  %v4372_v14 = vld [vmem:[#allocation17_spill] sm:$0xff] }
 0x438   :  { %v1387_v28 = vshrl.u32 %v4372_v14, 16  ;;  %v1386_v12 = vand.u32 65535, %v4372_v14  ;;  %vm318_vm8 = vcmp.eq.s32.totalorder %v3528_v43, %v3038_v37  ;;  %v4373_v14 = vld [vmem:[#allocation18_spill] sm:$0xff]  ;;  %vm319_vm0 = vcmp.eq.s32.totalorder %v3528_v43, %v3046_v45 }
 0x439   :  { %v748_v38 = vshll.u32 %v747_v39, 16  ;;  %1356 = vadd.xlane.f32.xlu1 %v1353_v9  ;;  %1354 = vadd.xlane.f32.xlu0 %v1352_v4  ;;  %v2183_v59 = vrot.slane %v737_v0, %v3548_v50  ;;  %v3828_v4 = vsel %vm317_vm15, %v3517_v58, 0  ;;  %v1399_v37 = vshrl.u32 %v4373_v14, 16 }
 0x43a   :  { %v757_v18 = vpop.xlane.xlu1 %756  ;;  %v755_v57 = vpop.xlane.xlu0 %754  ;;  %vm320_vm15 = vcmp.eq.s32.totalorder %v3528_v43, %v3050_v61 }
 0x43b   :  { %v749_v2 = vadd.s32 %v748_v38, %v746_v21  ;;  %v759_v41 = vcvt.f32.s32 %v757_v18  ;;  %v758_v9 = vcvt.f32.s32 %v755_v57  ;;  %v1376_v21 = vcvt.s32.f32 %v1374_v48 }
 0x43c   :  { %v3834_v18 = vsel %vm318_vm8, %v3517_v58, 0  ;;  %v3849_v45 = vsel %vm320_vm15, %v3517_v58, 0  ;;  %vm321_vm8 = vcmp.eq.s32.totalorder %v3528_v43, %v3060_v8  ;;  %vm323_vm15 = vcmp.eq.s32.totalorder %v3528_v43, %v3074_v52 }
 0x43d   :  { %v2187_v6 = vrot.slane %v749_v2, %v3551_v15  ;;  %v760_v55 = vshll.u32 %v759_v41, 16  ;;  %1368 = vadd.xlane.f32.xlu1 %v1365_v7  ;;  %1366 = vadd.xlane.f32.xlu0 %v1364_v11  ;;  %v1389_v2 = vcvt.s32.f32 %v1387_v28  ;;  %v1388_v11 = vcvt.s32.f32 %v1386_v12 }
 0x43e   :  { %v769_v25 = vpop.xlane.xlu1 %768  ;;  %v767_v39 = vpop.xlane.xlu0 %766  ;;  %v1401_v12 = vcvt.s32.f32 %v1399_v37 }
 0x43f   :  { %v2188_v31 = vsel %vm2080_vm12, %v2187_v6, %v2183_v59  ;;  %v761_v0 = vadd.s32 %v760_v55, %v758_v9  ;;  %v771_v38 = vcvt.f32.s32 %v769_v25  ;;  %v770_v42 = vcvt.f32.s32 %v767_v39 }
 0x440   :  { %v1398_v55 = vand.u32 65535, %v4373_v14  ;;  %v3845_v9 = vsel %vm319_vm0, %v3517_v58, 0  ;;  %vm322_vm0 = vcmp.eq.s32.totalorder %v3528_v43, %v3071_v53 }
 0x441   :  { %v2192_v57 = vrot.slane %v761_v0, %v3557_v46  ;;  %v772_v49 = vshll.u32 %v771_v38, 16  ;;  %1380 = vadd.xlane.f32.xlu1 %v1377_v24  ;;  %1378 = vadd.xlane.f32.xlu0 %v1376_v21 }
 0x442   :  { %v781_v41 = vpop.xlane.xlu1 %780  ;;  %v779_v7 = vpop.xlane.xlu0 %778 }
 0x443   :  { %v2193_v48 = vsel %vm2087_vm13, %v2192_v57, %v2188_v31  ;;  %v773_v59 = vadd.s32 %v772_v49, %v770_v42  ;;  %v783_v6 = vcvt.f32.s32 %v781_v41  ;;  %v782_v39 = vcvt.f32.s32 %v779_v7  ;;  %v4374_v31 = vld [vmem:[#allocation19_spill] sm:$0xff] }
 0x444   :  { %v1411_v0 = vshrl.u32 %v4374_v31, 16  ;;  %v1410_v38 = vand.u32 65535, %v4374_v31  ;;  %v1400_v42 = vcvt.s32.f32 %v1398_v55  ;;  %v3858_v7 = vsel %vm321_vm8, %v3517_v58, 0 }
 0x445   :  { %v2197_v28 = vrot.slane %v773_v59, %v3581_v51  ;;  %v784_v25 = vshll.u32 %v783_v6, 16  ;;  %1392 = vadd.xlane.f32.xlu1 %v1389_v2  ;;  %1390 = vadd.xlane.f32.xlu0 %v1388_v11  ;;  %v4375_v2 = vld [vmem:[#allocation20_spill] sm:$0xff]  ;;  %vm324_vm8 = vcmp.eq.s32.totalorder %v3528_v43, %v3105_v36 }
 0x446   :  { %v793_v24 = vpop.xlane.xlu1 %792  ;;  %v791_v61 = vpop.xlane.xlu0 %790  ;;  %v1423_v41 = vshrl.u32 %v4375_v2, 16  ;;  %v1422_v59 = vand.u32 65535, %v4375_v2  ;;  %v1413_v31 = vcvt.s32.f32 %v1411_v0  ;;  %v3879_v36 = vsel %vm324_vm8, %v3517_v58, 0 }
 0x447   :  { %v2198_v21 = vsel %vm2094_vm14, %v2197_v28, %v2193_v48  ;;  %v785_v57 = vadd.s32 %v784_v25, %v782_v39  ;;  %v795_v49 = vcvt.f32.s32 %v793_v24  ;;  %v794_v37 = vcvt.f32.s32 %v791_v61 }
 0x448   :  { %v1412_v48 = vcvt.s32.f32 %v1410_v38  ;;  %v3870_v39 = vsel %vm322_vm0, %v3517_v58, 0  ;;  %v3873_v24 = vsel %vm323_vm15, %v3517_v58, 0  ;;  %v1425_v38 = vcvt.s32.f32 %v1423_v41 }
 0x449   :  { %v2202_v11 = vrot.slane %v785_v57, %v3599_v27  ;;  %v796_v14 = vshll.u32 %v795_v49, 16  ;;  %1404 = vadd.xlane.f32.xlu1 %v1401_v12  ;;  %1402 = vadd.xlane.f32.xlu0 %v1400_v42  ;;  %vm4382_vm0 = vcmask 851712   ;;  %vm4384_vm15 = vcmask 917312  }
 0x44a   :  { %v805_v6 = vpop.xlane.xlu1 %804  ;;  %v803_v8 = vpop.xlane.xlu0 %802  ;;  %vm2733_vm8 = vcmask 1041409  }
 0x44b   :  { %v2203_v55 = vsel %vm2101_vm2, %v2202_v11, %v2198_v21  ;;  %v797_v28 = vadd.s32 %v796_v14, %v794_v37  ;;  %v807_v25 = vcvt.f32.s32 %v805_v6  ;;  %v806_v53 = vcvt.f32.s32 %v803_v8  ;;  %v4376_v21 = vld [vmem:[#allocation21_spill] sm:$0xff] }
 0x44c   :  { %v1435_v57 = vshrl.u32 %v4376_v21, 16  ;;  %v1434_v49 = vand.u32 65535, %v4376_v21  ;;  %v1424_v11 = vcvt.s32.f32 %v1422_v59 }
 0x44d   :  { %v2207_v61 = vrot.slane %v797_v28, %v3610_v35  ;;  %v808_v12 = vshll.u32 %v807_v25, 16  ;;  %1416 = vadd.xlane.f32.xlu1 %v1413_v31  ;;  %1414 = vadd.xlane.f32.xlu0 %v1412_v48  ;;  %v4377_v28 = vld [vmem:[#allocation22_spill] sm:$0xff] }
 0x44e   :  { %v817_v52 = vpop.xlane.xlu1 %816  ;;  %v815_v0 = vpop.xlane.xlu0 %814  ;;  %v1437_v31 = vcvt.s32.f32 %v1435_v57  ;;  %v1436_v48 = vcvt.s32.f32 %v1434_v49  ;;  %v1447_v25 = vshrl.u32 %v4377_v28, 16  ;;  %v1458_v57 = vand.u32 65535, %v3329_v60 }
 0x44f   :  { %v2208_v43 = vsel %vm2108_vm6, %v2207_v61, %v2203_v55  ;;  %v809_v42 = vadd.s32 %v808_v12, %v806_v53  ;;  %v819_v2 = vcvt.f32.s32 %v817_v52  ;;  %v818_v6 = vcvt.f32.s32 %v815_v0 }
 0x450   :  { %v1446_v55 = vand.u32 65535, %v4377_v28  ;;  %v1449_v0 = vcvt.s32.f32 %v1447_v25  ;;  %v1460_v25 = vcvt.s32.f32 %v1458_v57 }
 0x451   :  { %v2212_v14 = vrot.slane %v809_v42, %v3615_v47  ;;  %v820_v37 = vshll.u32 %v819_v2, 16  ;;  %1428 = vadd.xlane.f32.xlu1 %v1425_v38  ;;  %1426 = vadd.xlane.f32.xlu0 %v1424_v11  ;;  %v1459_v38 = vshrl.u32 %v3329_v60, 16 }
 0x452   :  { %v829_v8 = vpop.xlane.xlu1 %828  ;;  %v827_v41 = vpop.xlane.xlu0 %826  ;;  %v1448_v2 = vcvt.s32.f32 %v1446_v55 }
 0x453   :  { %v2213_v58 = vsel %vm2115_vm7, %v2212_v14, %v2208_v43  ;;  %v821_v21 = vadd.s32 %v820_v37, %v818_v6  ;;  %v831_v1 = vcvt.f32.s32 %v829_v8  ;;  %v830_v12 = vcvt.f32.s32 %v827_v41 }
 0x454   :  { %v1461_v8 = vcvt.s32.f32 %v1459_v38  ;;  %v1471_v41 = vshrl.u32 %v3335_v26, 16 }
 0x455   :  { %v2217_v59 = vrot.slane %v821_v21, %v3648_v44  ;;  %v832_v61 = vshll.u32 %v831_v1, 16  ;;  %1440 = vadd.xlane.f32.xlu1 %v1437_v31  ;;  %1438 = vadd.xlane.f32.xlu0 %v1436_v48  ;;  %v1470_v31 = vand.u32 65535, %v3335_v26 }
 0x456   :  { %v841_v53 = vpop.xlane.xlu1 %840  ;;  %v839_v52 = vpop.xlane.xlu0 %838 }
 0x457   :  { %v2218_v49 = vsel %vm2122_vm11, %v2217_v59, %v2213_v58  ;;  %v833_v43 = vadd.s32 %v832_v61, %v830_v12  ;;  %v843_v42 = vcvt.f32.s32 %v841_v53  ;;  %v842_v37 = vcvt.f32.s32 %v839_v52  ;;  %v4378_v52 = vld [vmem:[#allocation23_spill] sm:$0xff] }
 0x458   :  { %v1473_v12 = vcvt.s32.f32 %v1471_v41  ;;  %v1472_v53 = vcvt.s32.f32 %v1470_v31 }
 0x459   :  { %v2222_v11 = vrot.slane %v833_v43, %v3659_v19  ;;  %v844_v14 = vshll.u32 %v843_v42, 16  ;;  %1452 = vadd.xlane.f32.xlu1 %v1449_v0  ;;  %1450 = vadd.xlane.f32.xlu0 %v1448_v2  ;;  %v1483_v0 = vshrl.u32 %v4378_v52, 16 }
 0x45a   :  { %v853_v1 = vpop.xlane.xlu1 %852  ;;  %v851_v6 = vpop.xlane.xlu0 %850 }
 0x45b   :  { %v2223_v60 = vsel %vm2129_vm1, %v2222_v11, %v2218_v49  ;;  %v845_v48 = vadd.s32 %v844_v14, %v842_v37  ;;  %v855_v28 = vcvt.f32.s32 %v853_v1  ;;  %v854_v55 = vcvt.f32.s32 %v851_v6  ;;  %v4379_v1 = vld [vmem:[#allocation24_spill] sm:$0xff] }
 0x45c   :  { %v1482_v49 = vand.u32 65535, %v4378_v52  ;;  %v1485_v37 = vcvt.s32.f32 %v1483_v0  ;;  %v1111_v6 = vshrl.u32 %v4379_v1, 16 }
 0x45d   :  { %v2227_v58 = vrot.slane %v845_v48, %v3681_v23  ;;  %v856_v21 = vshll.u32 %v855_v28, 16  ;;  %1464 = vadd.xlane.f32.xlu1 %v1461_v8  ;;  %1462 = vadd.xlane.f32.xlu0 %v1460_v25  ;;  %v1110_v8 = vand.u32 65535, %v4379_v1 }
 0x45e   :  { %v865_v59 = vpop.xlane.xlu1 %864  ;;  %v863_v61 = vpop.xlane.xlu0 %862  ;;  %v1484_v48 = vcvt.s32.f32 %v1482_v49 }
 0x45f   :  { %v2228_v38 = vsel %vm2136_vm3, %v2227_v58, %v2223_v60  ;;  %v857_v26 = vadd.s32 %v856_v21, %v854_v55  ;;  %v867_v43 = vcvt.f32.s32 %v865_v59  ;;  %v866_v2 = vcvt.f32.s32 %v863_v61 }
 0x460   :  { %v1113_v59 = vcvt.s32.f32 %v1111_v6  ;;  %v1112_v61 = vcvt.s32.f32 %v1110_v8 }
 0x461   :  { %v2232_v57 = vrot.slane %v857_v26, %v3694_v5  ;;  %v868_v42 = vshll.u32 %v867_v43, 16  ;;  %1476 = vadd.xlane.f32.xlu1 %v1473_v12  ;;  %1474 = vadd.xlane.f32.xlu0 %v1472_v53  ;;  %v4380_v12 = vld [vmem:[#allocation25_spill] sm:$0xff] }
 0x462   :  { %v877_v11 = vpop.xlane.xlu1 %876  ;;  %v875_v14 = vpop.xlane.xlu0 %874  ;;  %v1123_v53 = vshrl.u32 %v4380_v12, 16 }
 0x463   :  { %v2233_v41 = vsel %vm2143_vm10, %v2232_v57, %v2228_v38  ;;  %v869_v31 = vadd.s32 %v868_v42, %v866_v2  ;;  %v879_v60 = vcvt.f32.s32 %v877_v11  ;;  %v878_v58 = vcvt.f32.s32 %v875_v14  ;;  %v4381_v14 = vld [vmem:[#allocation26_spill] sm:$0xff] }
 0x464   :  { %v1122_v38 = vand.u32 65535, %v4380_v12  ;;  %v1125_v11 = vcvt.s32.f32 %v1123_v53  ;;  %v1134_v1 = vand.u32 65535, %v4381_v14 }
 0x465   :  { %v2237_v28 = vrot.slane %v869_v31, %v3718_v3  ;;  %v880_v25 = vshll.u32 %v879_v60, 16  ;;  %1488 = vadd.xlane.f32.xlu1 %v1485_v37  ;;  %1486 = vadd.xlane.f32.xlu0 %v1484_v48  ;;  %v1135_v37 = vshrl.u32 %v4381_v14, 16 }
 0x466   :  { %v889_v21 = vpop.xlane.xlu1 %888  ;;  %v887_v55 = vpop.xlane.xlu0 %886  ;;  %v1124_v31 = vcvt.s32.f32 %v1122_v38 }
 0x467   :  { %v2238_v52 = vsel %vm2150_vm4, %v2237_v28, %v2233_v41  ;;  %v881_v0 = vadd.s32 %v880_v25, %v878_v58  ;;  %v891_v26 = vcvt.f32.s32 %v889_v21  ;;  %v890_v57 = vcvt.f32.s32 %v887_v55  ;;  %v4383_v55 = vld [vmem:[#allocation27_spill] sm:$0xff] }
 0x468   :  { %v1137_v21 = vcvt.s32.f32 %v1135_v37 }
 0x469   :  { %v2242_v43 = vrot.slane %v881_v0, %v3721_v56  ;;  %v892_v49 = vshll.u32 %v891_v26, 16  ;;  %1116 = vadd.xlane.f32.xlu1 %v1113_v59  ;;  %1114 = vadd.xlane.f32.xlu0 %v1112_v61  ;;  %v1147_v59 = vshrl.u32 %v4383_v55, 16  ;;  %v1146_v61 = vand.u32 65535, %v4383_v55 }
 0x46a   :  { %v901_v42 = vpop.xlane.xlu1 %900  ;;  %v899_v2 = vpop.xlane.xlu0 %898  ;;  %v1136_v0 = vcvt.s32.f32 %v1134_v1 }
 0x46b   :  { %v2243_v6 = vsel %vm4382_vm0, %v2242_v43, %v2238_v52  ;;  %v893_v8 = vadd.s32 %v892_v49, %v890_v57  ;;  %v903_v41 = vcvt.f32.s32 %v901_v42  ;;  %v902_v28 = vcvt.f32.s32 %v899_v2 }
 0x46c   :  { %v1149_v42 = vcvt.s32.f32 %v1147_v59  ;;  %v1148_v2 = vcvt.s32.f32 %v1146_v61 }
 0x46d   :  { %v2247_v60 = vrot.slane %v893_v8, %v3749_v33  ;;  %v904_v48 = vshll.u32 %v903_v41, 16  ;;  %1128 = vadd.xlane.f32.xlu1 %v1125_v11  ;;  %1126 = vadd.xlane.f32.xlu0 %v1124_v31  ;;  %v4385_v11 = vld [vmem:[#allocation28_spill] sm:$0xff] }
 0x46e   :  { %v913_v25 = vpop.xlane.xlu1 %912  ;;  %v911_v58 = vpop.xlane.xlu0 %910  ;;  %v1159_v14 = vshrl.u32 %v4385_v11, 16 }
 0x46f   :  { %v2248_v12 = vsel %vm4384_vm15, %v2247_v60, %v2243_v6  ;;  %v905_v53 = vadd.s32 %v904_v48, %v902_v28  ;;  %v915_v52 = vcvt.f32.s32 %v913_v25  ;;  %v914_v43 = vcvt.f32.s32 %v911_v58  ;;  %v4386_v58 = vld [vmem:[#allocation29_spill] sm:$0xff] }
 0x470   :  { %v1158_v6 = vand.u32 65535, %v4385_v11  ;;  %v1161_v25 = vcvt.s32.f32 %v1159_v14  ;;  %v1170_v55 = vand.u32 65535, %v4386_v58 }
 0x471   :  { %v2252_v26 = vrot.slane %v905_v53, %v3752_v20  ;;  %v916_v38 = vshll.u32 %v915_v52, 16  ;;  %1140 = vadd.xlane.f32.xlu1 %v1137_v21  ;;  %1138 = vadd.xlane.f32.xlu0 %v1136_v0  ;;  %v1171_v21 = vshrl.u32 %v4386_v58, 16 }
 0x472   :  { %v925_v49 = vpop.xlane.xlu1 %924  ;;  %v923_v57 = vpop.xlane.xlu0 %922  ;;  %v1160_v53 = vcvt.s32.f32 %v1158_v6 }
 0x473   :  { %v2253_v37 = vsel %vm2171_vm5, %v2252_v26, %v2248_v12  ;;  %v917_v8 = vadd.s32 %v916_v38, %v914_v43  ;;  %v927_v41 = vcvt.f32.s32 %v925_v49  ;;  %v926_v60 = vcvt.f32.s32 %v923_v57  ;;  %v4387_v49 = vld [vmem:[#allocation30_spill] sm:$0xff] }
 0x474   :  { %v1183_v57 = vshrl.u32 %v4387_v49, 16  ;;  %v1173_v14 = vcvt.s32.f32 %v1171_v21 }
 0x475   :  { %v2257_v1 = vrot.slane %v917_v8, %v3779_v29  ;;  %v928_v31 = vshll.u32 %v927_v41, 16  ;;  %1152 = vadd.xlane.f32.xlu1 %v1149_v42  ;;  %1150 = vadd.xlane.f32.xlu0 %v1148_v2  ;;  %v1182_v42 = vand.u32 65535, %v4387_v49 }
 0x476   :  { %v937_v48 = vpop.xlane.xlu1 %936  ;;  %v935_v28 = vpop.xlane.xlu0 %934 }
 0x477   :  { %v2258_v59 = vsel %vm2178_vm9, %v2257_v1, %v2253_v37  ;;  %v929_v61 = vadd.s32 %v928_v31, %v926_v60  ;;  %v939_v12 = vcvt.f32.s32 %v937_v48  ;;  %v938_v26 = vcvt.f32.s32 %v935_v28  ;;  %v4388_v28 = vld [vmem:[#allocation31_spill] sm:$0xff] }
 0x478   :  { %v3923_v52 = vsel %vm2733_vm8, %v2258_v59, %v3807_v22  ;;  %v1172_v37 = vcvt.s32.f32 %v1170_v55  ;;  %v1185_v60 = vcvt.s32.f32 %v1183_v57  ;;  %v1184_v48 = vcvt.s32.f32 %v1182_v42 }
 0x479   :  { %v940_v0 = vshll.u32 %v939_v12, 16  ;;  %1164 = vadd.xlane.f32.xlu1 %v1161_v25  ;;  %1162 = vadd.xlane.f32.xlu0 %v1160_v53  ;;  %v2262_v8 = vrot.slane %v929_v61, %v3548_v50  ;;  %v1195_v25 = vshrl.u32 %v4388_v28, 16  ;;  %v1194_v21 = vand.u32 65535, %v4388_v28 }
 0x47a   :  { %v949_v38 = vpop.xlane.xlu1 %948  ;;  %v947_v43 = vpop.xlane.xlu0 %946  ;;  %vm2735_vm8 = vcmask 1042434  }
 0x47b   :  { %v941_v2 = vadd.s32 %v940_v0, %v938_v26  ;;  %v951_v11 = vcvt.f32.s32 %v949_v38  ;;  %v950_v6 = vcvt.f32.s32 %v947_v43  ;;  %v1197_v38 = vcvt.s32.f32 %v1195_v25  ;;  %v4389_v43 = vld [vmem:[#allocation32_spill] sm:$0xff] }
 0x47c   :  { %v1207_v49 = vshrl.u32 %v4389_v43, 16  ;;  %v1206_v57 = vand.u32 65535, %v4389_v43 }
 0x47d   :  { %v2266_v41 = vrot.slane %v941_v2, %v3551_v15  ;;  %v952_v22 = vshll.u32 %v951_v11, 16  ;;  %1176 = vadd.xlane.f32.xlu1 %v1173_v14  ;;  %1174 = vadd.xlane.f32.xlu0 %v1172_v37  ;;  %v1196_v14 = vcvt.s32.f32 %v1194_v21 }
 0x47e   :  { %v961_v1 = vpop.xlane.xlu1 %960  ;;  %v959_v31 = vpop.xlane.xlu0 %958 }
 0x47f   :  { %v2267_v58 = vsel %vm2080_vm12, %v2266_v41, %v2262_v8  ;;  %v953_v59 = vadd.s32 %v952_v22, %v950_v6  ;;  %v963_v12 = vcvt.f32.s32 %v961_v1  ;;  %v962_v53 = vcvt.f32.s32 %v959_v31 }
 0x480   :  { %v1209_v1 = vcvt.s32.f32 %v1207_v49  ;;  %v1208_v31 = vcvt.s32.f32 %v1206_v57 }
 0x481   :  { %v2271_v55 = vrot.slane %v953_v59, %v3557_v46  ;;  %v964_v61 = vshll.u32 %v963_v12, 16  ;;  %1188 = vadd.xlane.f32.xlu1 %v1185_v60  ;;  %1186 = vadd.xlane.f32.xlu0 %v1184_v48  ;;  %v4390_v60 = vld [vmem:[#allocation33_spill] sm:$0xff] }
 0x482   :  { %v973_v0 = vpop.xlane.xlu1 %972  ;;  %v971_v26 = vpop.xlane.xlu0 %970  ;;  %v1219_v48 = vshrl.u32 %v4390_v60, 16 }
 0x483   :  { %v2272_v42 = vsel %vm2087_vm13, %v2271_v55, %v2267_v58  ;;  %v965_v2 = vadd.s32 %v964_v61, %v962_v53  ;;  %v975_v11 = vcvt.f32.s32 %v973_v0  ;;  %v974_v41 = vcvt.f32.s32 %v971_v26  ;;  %v4391_v26 = vld [vmem:[#allocation34_spill] sm:$0xff] }
 0x484   :  { %v1218_v58 = vand.u32 65535, %v4390_v60  ;;  %v1221_v0 = vcvt.s32.f32 %v1219_v48  ;;  %v1230_v43 = vand.u32 65535, %v4391_v26 }
 0x485   :  { %v2276_v37 = vrot.slane %v965_v2, %v3581_v51  ;;  %v976_v8 = vshll.u32 %v975_v11, 16  ;;  %1200 = vadd.xlane.f32.xlu1 %v1197_v38  ;;  %1198 = vadd.xlane.f32.xlu0 %v1196_v14  ;;  %v1231_v38 = vshrl.u32 %v4391_v26, 16 }
 0x486   :  { %v985_v22 = vpop.xlane.xlu1 %984  ;;  %v983_v6 = vpop.xlane.xlu0 %982  ;;  %v1220_v2 = vcvt.s32.f32 %v1218_v58 }
 0x487   :  { %v2277_v28 = vsel %vm2094_vm14, %v2276_v37, %v2272_v42  ;;  %v977_v25 = vadd.s32 %v976_v8, %v974_v41  ;;  %v987_v59 = vcvt.f32.s32 %v985_v22  ;;  %v986_v55 = vcvt.f32.s32 %v983_v6  ;;  %v4392_v6 = vld [vmem:[#allocation35_spill] sm:$0xff] }
 0x488   :  { %v1233_v22 = vcvt.s32.f32 %v1231_v38 }
 0x489   :  { %v2281_v12 = vrot.slane %v977_v25, %v3599_v27  ;;  %v988_v21 = vshll.u32 %v987_v59, 16  ;;  %1212 = vadd.xlane.f32.xlu1 %v1209_v1  ;;  %1210 = vadd.xlane.f32.xlu0 %v1208_v31  ;;  %v1243_v1 = vshrl.u32 %v4392_v6, 16  ;;  %v1242_v31 = vand.u32 65535, %v4392_v6 }
 0x48a   :  { %v997_v61 = vpop.xlane.xlu1 %996  ;;  %v995_v53 = vpop.xlane.xlu0 %994  ;;  %v1232_v25 = vcvt.s32.f32 %v1230_v43 }
 0x48b   :  { %v2282_v49 = vsel %vm2101_vm2, %v2281_v12, %v2277_v28  ;;  %v989_v57 = vadd.s32 %v988_v21, %v986_v55  ;;  %v999_v42 = vcvt.f32.s32 %v997_v61  ;;  %v998_v37 = vcvt.f32.s32 %v995_v53 }
 0x48c   :  { %v1245_v61 = vcvt.s32.f32 %v1243_v1  ;;  %v1244_v53 = vcvt.s32.f32 %v1242_v31 }
 0x48d   :  { %v2286_v11 = vrot.slane %v989_v57, %v3610_v35  ;;  %v1000_v14 = vshll.u32 %v999_v42, 16  ;;  %1224 = vadd.xlane.f32.xlu1 %v1221_v0  ;;  %1222 = vadd.xlane.f32.xlu0 %v1220_v2  ;;  %v4393_v0 = vld [vmem:[#allocation36_spill] sm:$0xff] }
 0x48e   :  { %v1009_v8 = vpop.xlane.xlu1 %1008  ;;  %v1007_v41 = vpop.xlane.xlu0 %1006  ;;  %v1255_v26 = vshrl.u32 %v4393_v0, 16 }
 0x48f   :  { %v2287_v60 = vsel %vm2108_vm6, %v2286_v11, %v2282_v49  ;;  %v1001_v48 = vadd.s32 %v1000_v14, %v998_v37  ;;  %v1011_v28 = vcvt.f32.s32 %v1009_v8  ;;  %v1010_v12 = vcvt.f32.s32 %v1007_v41  ;;  %v4394_v41 = vld [vmem:[#allocation37_spill] sm:$0xff] }
 0x490   :  { %v1254_v49 = vand.u32 65535, %v4393_v0  ;;  %v1257_v8 = vcvt.s32.f32 %v1255_v26  ;;  %v1266_v6 = vand.u32 65535, %v4394_v41 }
 0x491   :  { %v2291_v59 = vrot.slane %v1001_v48, %v3615_v47  ;;  %v1012_v58 = vshll.u32 %v1011_v28, 16  ;;  %1236 = vadd.xlane.f32.xlu1 %v1233_v22  ;;  %1234 = vadd.xlane.f32.xlu0 %v1232_v25  ;;  %v1267_v22 = vshrl.u32 %v4394_v41, 16 }
 0x492   :  { %v1021_v21 = vpop.xlane.xlu1 %1020  ;;  %v1019_v55 = vpop.xlane.xlu0 %1018  ;;  %v1256_v48 = vcvt.s32.f32 %v1254_v49 }
 0x493   :  { %v2292_v38 = vsel %vm2115_vm7, %v2291_v59, %v2287_v60  ;;  %v1013_v57 = vadd.s32 %v1012_v58, %v1010_v12  ;;  %v1023_v42 = vcvt.f32.s32 %v1021_v21  ;;  %v1022_v11 = vcvt.f32.s32 %v1019_v55  ;;  %v4395_v55 = vld [vmem:[#allocation38_spill] sm:$0xff] }
 0x494   :  { %v1269_v21 = vcvt.s32.f32 %v1267_v22 }
 0x495   :  { %v2296_v43 = vrot.slane %v1013_v57, %v3648_v44  ;;  %v1024_v2 = vshll.u32 %v1023_v42, 16  ;;  %1248 = vadd.xlane.f32.xlu1 %v1245_v61  ;;  %1246 = vadd.xlane.f32.xlu0 %v1244_v53  ;;  %v1279_v61 = vshrl.u32 %v4395_v55, 16  ;;  %v1278_v53 = vand.u32 65535, %v4395_v55 }
 0x496   :  { %v1033_v14 = vpop.xlane.xlu1 %1032  ;;  %v1031_v37 = vpop.xlane.xlu0 %1030  ;;  %v1268_v57 = vcvt.s32.f32 %v1266_v6 }
 0x497   :  { %v2297_v1 = vsel %vm2122_vm11, %v2296_v43, %v2292_v38  ;;  %v1025_v31 = vadd.s32 %v1024_v2, %v1022_v11  ;;  %v1035_v60 = vcvt.f32.s32 %v1033_v14  ;;  %v1034_v59 = vcvt.f32.s32 %v1031_v37 }
 0x498   :  { %v1281_v14 = vcvt.s32.f32 %v1279_v61  ;;  %v1280_v37 = vcvt.s32.f32 %v1278_v53 }
 0x499   :  { %v2301_v28 = vrot.slane %v1025_v31, %v3659_v19  ;;  %v1036_v25 = vshll.u32 %v1035_v60, 16  ;;  %1260 = vadd.xlane.f32.xlu1 %v1257_v8  ;;  %1258 = vadd.xlane.f32.xlu0 %v1256_v48  ;;  %v4396_v8 = vld [vmem:[#allocation39_spill] sm:$0xff] }
 0x49a   :  { %v1045_v58 = vpop.xlane.xlu1 %1044  ;;  %v1043_v12 = vpop.xlane.xlu0 %1042  ;;  %v1291_v41 = vshrl.u32 %v4396_v8, 16 }
 0x49b   :  { %v2302_v0 = vsel %vm2129_vm1, %v2301_v28, %v2297_v1  ;;  %v1037_v26 = vadd.s32 %v1036_v25, %v1034_v59  ;;  %v1047_v38 = vcvt.f32.s32 %v1045_v58  ;;  %v1046_v43 = vcvt.f32.s32 %v1043_v12  ;;  %v4397_v12 = vld [vmem:[#allocation40_spill] sm:$0xff] }
 0x49c   :  { %v1290_v1 = vand.u32 65535, %v4396_v8  ;;  %v1293_v58 = vcvt.s32.f32 %v1291_v41  ;;  %v1494_v55 = vand.u32 65535, %v4397_v12 }
 0x49d   :  { %v2306_v42 = vrot.slane %v1037_v26, %v3681_v23  ;;  %v1048_v49 = vshll.u32 %v1047_v38, 16  ;;  %1272 = vadd.xlane.f32.xlu1 %v1269_v21  ;;  %1270 = vadd.xlane.f32.xlu0 %v1268_v57  ;;  %v1495_v21 = vshrl.u32 %v4397_v12, 16 }
 0x49e   :  { %v1057_v2 = vpop.xlane.xlu1 %1056  ;;  %v1055_v11 = vpop.xlane.xlu0 %1054  ;;  %v1292_v26 = vcvt.s32.f32 %v1290_v1 }
 0x49f   :  { %v2307_v22 = vsel %vm2136_vm3, %v2306_v42, %v2302_v0  ;;  %v1049_v31 = vadd.s32 %v1048_v49, %v1046_v43  ;;  %v1059_v60 = vcvt.f32.s32 %v1057_v2  ;;  %v1058_v28 = vcvt.f32.s32 %v1055_v11 }
 0x4a0   :  { %v1497_v2 = vcvt.s32.f32 %v1495_v21  ;;  %v1496_v11 = vcvt.s32.f32 %v1494_v55 }
 0x4a1   :  { %v2311_v6 = vrot.slane %v1049_v31, %v3694_v5  ;;  %v1060_v48 = vshll.u32 %v1059_v60, 16  ;;  %1284 = vadd.xlane.f32.xlu1 %v1281_v14  ;;  %1282 = vadd.xlane.f32.xlu0 %v1280_v37  ;;  %v4398_v14 = vld [vmem:[#allocation41_spill] sm:$0xff] }
 0x4a2   :  { %v1069_v25 = vpop.xlane.xlu1 %1068  ;;  %v1067_v59 = vpop.xlane.xlu0 %1066  ;;  %v1507_v37 = vshrl.u32 %v4398_v14, 16 }
 0x4a3   :  { %v2312_v61 = vsel %vm2143_vm10, %v2311_v6, %v2307_v22  ;;  %v1061_v53 = vadd.s32 %v1060_v48, %v1058_v28  ;;  %v1071_v0 = vcvt.f32.s32 %v1069_v25  ;;  %v1070_v42 = vcvt.f32.s32 %v1067_v59  ;;  %v4399_v59 = vld [vmem:[#allocation42_spill] sm:$0xff] }
 0x4a4   :  { %v1506_v22 = vand.u32 65535, %v4398_v14  ;;  %v1509_v25 = vcvt.s32.f32 %v1507_v37  ;;  %v1518_v12 = vand.u32 65535, %v4399_v59 }
 0x4a5   :  { %v2316_v38 = vrot.slane %v1061_v53, %v3718_v3  ;;  %v1072_v57 = vshll.u32 %v1071_v0, 16  ;;  %1296 = vadd.xlane.f32.xlu1 %v1293_v58  ;;  %1294 = vadd.xlane.f32.xlu0 %v1292_v26  ;;  %v1519_v58 = vshrl.u32 %v4399_v59, 16 }
 0x4a6   :  { %v1081_v49 = vpop.xlane.xlu1 %1080  ;;  %v1079_v43 = vpop.xlane.xlu0 %1078  ;;  %v1508_v53 = vcvt.s32.f32 %v1506_v22 }
 0x4a7   :  { %v2317_v8 = vsel %vm2150_vm4, %v2316_v38, %v2312_v61  ;;  %v1073_v41 = vadd.s32 %v1072_v57, %v1070_v42  ;;  %v1083_v31 = vcvt.f32.s32 %v1081_v49  ;;  %v1082_v6 = vcvt.f32.s32 %v1079_v43  ;;  %v4400_v43 = vld [vmem:[#allocation43_spill] sm:$0xff] }
 0x4a8   :  { %v1521_v49 = vcvt.s32.f32 %v1519_v58 }
 0x4a9   :  { %v2321_v60 = vrot.slane %v1073_v41, %v3721_v56  ;;  %v1084_v1 = vshll.u32 %v1083_v31, 16  ;;  %1500 = vadd.xlane.f32.xlu1 %v1497_v2  ;;  %1498 = vadd.xlane.f32.xlu0 %v1496_v11  ;;  %v1531_v2 = vshrl.u32 %v4400_v43, 16  ;;  %v1530_v11 = vand.u32 65535, %v4400_v43 }
 0x4aa   :  { %v1093_v48 = vpop.xlane.xlu1 %1092  ;;  %v1091_v28 = vpop.xlane.xlu0 %1090  ;;  %v1520_v41 = vcvt.s32.f32 %v1518_v12 }
 0x4ab   :  { %v2322_v21 = vsel %vm4382_vm0, %v2321_v60, %v2317_v8  ;;  %v1085_v55 = vadd.s32 %v1084_v1, %v1082_v6  ;;  %v1095_v61 = vcvt.f32.s32 %v1093_v48  ;;  %v1094_v38 = vcvt.f32.s32 %v1091_v28 }
 0x4ac   :  { %v1533_v48 = vcvt.s32.f32 %v1531_v2  ;;  %v1532_v28 = vcvt.s32.f32 %v1530_v11 }
 0x4ad   :  { %v2326_v0 = vrot.slane %v1085_v55, %v3749_v33  ;;  %v1096_v26 = vshll.u32 %v1095_v61, 16  ;;  %1512 = vadd.xlane.f32.xlu1 %v1509_v25  ;;  %1510 = vadd.xlane.f32.xlu0 %v1508_v53  ;;  %v4401_v25 = vld [vmem:[#allocation44_spill] sm:$0xff] }
 0x4ae   :  { %v1105_v57 = vpop.xlane.xlu1 %1104  ;;  %v1103_v42 = vpop.xlane.xlu0 %1102  ;;  %v1543_v59 = vshrl.u32 %v4401_v25, 16 }
 0x4af   :  { %v2327_v14 = vsel %vm4384_vm15, %v2326_v0, %v2322_v21  ;;  %v1097_v37 = vadd.s32 %v1096_v26, %v1094_v38  ;;  %v1107_v8 = vcvt.f32.s32 %v1105_v57  ;;  %v1106_v60 = vcvt.f32.s32 %v1103_v42  ;;  %v4402_v42 = vld [vmem:[#allocation45_spill] sm:$0xff] }
 0x4b0   :  { %v1542_v21 = vand.u32 65535, %v4401_v25  ;;  %v1545_v57 = vcvt.s32.f32 %v1543_v59  ;;  %v1554_v43 = vand.u32 65535, %v4402_v42 }
 0x4b1   :  { %v2331_v31 = vrot.slane %v1097_v37, %v3752_v20  ;;  %v1108_v22 = vshll.u32 %v1107_v8, 16  ;;  %1524 = vadd.xlane.f32.xlu1 %v1521_v49  ;;  %1522 = vadd.xlane.f32.xlu0 %v1520_v41  ;;  %v1555_v49 = vshrl.u32 %v4402_v42, 16 }
 0x4b2   :  { %v1309_v1 = vpop.xlane.xlu1 %1308  ;;  %v1307_v6 = vpop.xlane.xlu0 %1306  ;;  %v1544_v37 = vcvt.s32.f32 %v1542_v21 }
 0x4b3   :  { %v2332_v58 = vsel %vm2171_vm5, %v2331_v31, %v2327_v14  ;;  %v1109_v55 = vadd.s32 %v1108_v22, %v1106_v60  ;;  %v1311_v61 = vcvt.f32.s32 %v1309_v1  ;;  %v1310_v0 = vcvt.f32.s32 %v1307_v6  ;;  %v4403_v1 = vld [vmem:[#allocation46_spill] sm:$0xff] }
 0x4b4   :  { %v1567_v6 = vshrl.u32 %v4403_v1, 16  ;;  %v1557_v59 = vcvt.s32.f32 %v1555_v49 }
 0x4b5   :  { %v2336_v12 = vrot.slane %v1109_v55, %v3779_v29  ;;  %v1312_v53 = vshll.u32 %v1311_v61, 16  ;;  %1536 = vadd.xlane.f32.xlu1 %v1533_v48  ;;  %1534 = vadd.xlane.f32.xlu0 %v1532_v28  ;;  %v1566_v48 = vand.u32 65535, %v4403_v1 }
 0x4b6   :  { %v1321_v26 = vpop.xlane.xlu1 %1320  ;;  %v1319_v38 = vpop.xlane.xlu0 %1318 }
 0x4b7   :  { %v2337_v2 = vsel %vm2178_vm9, %v2336_v12, %v2332_v58  ;;  %v1313_v11 = vadd.s32 %v1312_v53, %v1310_v0  ;;  %v1323_v14 = vcvt.f32.s32 %v1321_v26  ;;  %v1322_v31 = vcvt.f32.s32 %v1319_v38  ;;  %v4404_v38 = vld [vmem:[#allocation47_spill] sm:$0xff] }
 0x4b8   :  { %v3989_v8 = vsel %vm2735_vm8, %v2337_v2, %v3923_v52  ;;  %v1556_v58 = vcvt.s32.f32 %v1554_v43  ;;  %v1569_v0 = vcvt.s32.f32 %v1567_v6  ;;  %v1568_v26 = vcvt.s32.f32 %v1566_v48  ;;  %vm4426_vm8 = vmmov %vm4382_vm0 }
 0x4b9   :  { %v1324_v41 = vshll.u32 %v1323_v14, 16  ;;  %1548 = vadd.xlane.f32.xlu1 %v1545_v57  ;;  %1546 = vadd.xlane.f32.xlu0 %v1544_v37  ;;  %v2420_v55 = vrot.slane %v1313_v11, %v3548_v50  ;;  %v1579_v57 = vshrl.u32 %v4404_v38, 16  ;;  %v1578_v49 = vand.u32 65535, %v4404_v38 }
 0x4ba   :  { %v1333_v22 = vpop.xlane.xlu1 %1332  ;;  %v1331_v60 = vpop.xlane.xlu0 %1330 }
 0x4bb   :  { %v1325_v28 = vadd.s32 %v1324_v41, %v1322_v31  ;;  %v1335_v25 = vcvt.f32.s32 %v1333_v22  ;;  %v1334_v21 = vcvt.f32.s32 %v1331_v60  ;;  %v1581_v22 = vcvt.s32.f32 %v1579_v57  ;;  %v4405_v60 = vld [vmem:[#allocation48_spill] sm:$0xff] }
 0x4bc   :  { %v1591_v1 = vshrl.u32 %v4405_v60, 16  ;;  %v1590_v6 = vand.u32 65535, %v4405_v60 }
 0x4bd   :  { %v2424_v61 = vrot.slane %v1325_v28, %v3551_v15  ;;  %v1336_v52 = vshll.u32 %v1335_v25, 16  ;;  %1560 = vadd.xlane.f32.xlu1 %v1557_v59  ;;  %1558 = vadd.xlane.f32.xlu0 %v1556_v58  ;;  %v1580_v59 = vcvt.s32.f32 %v1578_v49 }
 0x4be   :  { %v1345_v12 = vpop.xlane.xlu1 %1344  ;;  %v1343_v53 = vpop.xlane.xlu0 %1342 }
 0x4bf   :  { %v2425_v42 = vsel %vm2080_vm12, %v2424_v61, %v2420_v55  ;;  %v1337_v2 = vadd.s32 %v1336_v52, %v1334_v21  ;;  %v1347_v14 = vcvt.f32.s32 %v1345_v12  ;;  %v1346_v37 = vcvt.f32.s32 %v1343_v53 }
 0x4c0   :  { %v1593_v12 = vcvt.s32.f32 %v1591_v1  ;;  %v1592_v53 = vcvt.s32.f32 %v1590_v6 }
 0x4c1   :  { %v2429_v43 = vrot.slane %v1337_v2, %v3557_v46  ;;  %v1348_v11 = vshll.u32 %v1347_v14, 16  ;;  %1572 = vadd.xlane.f32.xlu1 %v1569_v0  ;;  %1570 = vadd.xlane.f32.xlu0 %v1568_v26  ;;  %v4406_v0 = vld [vmem:[#allocation49_spill] sm:$0xff] }
 0x4c2   :  { %v1357_v41 = vpop.xlane.xlu1 %1356  ;;  %v1355_v31 = vpop.xlane.xlu0 %1354  ;;  %v1603_v26 = vshrl.u32 %v4406_v0, 16 }
 0x4c3   :  { %v2430_v48 = vsel %vm2087_vm13, %v2429_v43, %v2425_v42  ;;  %v1349_v28 = vadd.s32 %v1348_v11, %v1346_v37  ;;  %v1359_v25 = vcvt.f32.s32 %v1357_v41  ;;  %v1358_v61 = vcvt.f32.s32 %v1355_v31  ;;  %v4407_v31 = vld [vmem:[#allocation50_spill] sm:$0xff] }
 0x4c4   :  { %v1602_v42 = vand.u32 65535, %v4406_v0  ;;  %v1605_v41 = vcvt.s32.f32 %v1603_v26  ;;  %v1614_v60 = vand.u32 65535, %v4407_v31 }
 0x4c5   :  { %v2434_v58 = vrot.slane %v1349_v28, %v3581_v51  ;;  %v1360_v55 = vshll.u32 %v1359_v25, 16  ;;  %1584 = vadd.xlane.f32.xlu1 %v1581_v22  ;;  %1582 = vadd.xlane.f32.xlu0 %v1580_v59  ;;  %v1615_v22 = vshrl.u32 %v4407_v31, 16 }
 0x4c6   :  { %v1369_v52 = vpop.xlane.xlu1 %1368  ;;  %v1367_v21 = vpop.xlane.xlu0 %1366  ;;  %v1604_v28 = vcvt.s32.f32 %v1602_v42 }
 0x4c7   :  { %v2435_v38 = vsel %vm2094_vm14, %v2434_v58, %v2430_v48  ;;  %v1361_v57 = vadd.s32 %v1360_v55, %v1358_v61  ;;  %v1371_v2 = vcvt.f32.s32 %v1369_v52  ;;  %v1370_v43 = vcvt.f32.s32 %v1367_v21  ;;  %v4408_v21 = vld [vmem:[#allocation51_spill] sm:$0xff] }
 0x4c8   :  { %v1617_v52 = vcvt.s32.f32 %v1615_v22 }
 0x4c9   :  { %v2439_v14 = vrot.slane %v1361_v57, %v3599_v27  ;;  %v1372_v49 = vshll.u32 %v1371_v2, 16  ;;  %1596 = vadd.xlane.f32.xlu1 %v1593_v12  ;;  %1594 = vadd.xlane.f32.xlu0 %v1592_v53  ;;  %v1627_v12 = vshrl.u32 %v4408_v21, 16  ;;  %v1626_v53 = vand.u32 65535, %v4408_v21 }
 0x4ca   :  { %v1381_v11 = vpop.xlane.xlu1 %1380  ;;  %v1379_v37 = vpop.xlane.xlu0 %1378  ;;  %v1616_v57 = vcvt.s32.f32 %v1614_v60 }
 0x4cb   :  { %v2440_v1 = vsel %vm2101_vm2, %v2439_v14, %v2435_v38  ;;  %v1373_v6 = vadd.s32 %v1372_v49, %v1370_v43  ;;  %v1383_v48 = vcvt.f32.s32 %v1381_v11  ;;  %v1382_v58 = vcvt.f32.s32 %v1379_v37 }
 0x4cc   :  { %v1629_v11 = vcvt.s32.f32 %v1627_v12  ;;  %v1628_v37 = vcvt.s32.f32 %v1626_v53 }
 0x4cd   :  { %v2444_v25 = vrot.slane %v1373_v6, %v3610_v35  ;;  %v1384_v59 = vshll.u32 %v1383_v48, 16  ;;  %1608 = vadd.xlane.f32.xlu1 %v1605_v41  ;;  %1606 = vadd.xlane.f32.xlu0 %v1604_v28  ;;  %v4409_v41 = vld [vmem:[#allocation52_spill] sm:$0xff] }
 0x4ce   :  { %v1393_v55 = vpop.xlane.xlu1 %1392  ;;  %v1391_v61 = vpop.xlane.xlu0 %1390  ;;  %v1639_v31 = vshrl.u32 %v4409_v41, 16 }
 0x4cf   :  { %v2445_v0 = vsel %vm2108_vm6, %v2444_v25, %v2440_v1  ;;  %v1385_v26 = vadd.s32 %v1384_v59, %v1382_v58  ;;  %v1395_v38 = vcvt.f32.s32 %v1393_v55  ;;  %v1394_v14 = vcvt.f32.s32 %v1391_v61  ;;  %v4410_v61 = vld [vmem:[#allocation53_spill] sm:$0xff] }
 0x4d0   :  { %v1638_v1 = vand.u32 65535, %v4409_v41  ;;  %v1641_v55 = vcvt.s32.f32 %v1639_v31  ;;  %v1650_v21 = vand.u32 65535, %v4410_v61 }
 0x4d1   :  { %v2449_v2 = vrot.slane %v1385_v26, %v3615_v47  ;;  %v1396_v42 = vshll.u32 %v1395_v38, 16  ;;  %1620 = vadd.xlane.f32.xlu1 %v1617_v52  ;;  %1618 = vadd.xlane.f32.xlu0 %v1616_v57  ;;  %v1651_v52 = vshrl.u32 %v4410_v61, 16 }
 0x4d2   :  { %v1405_v49 = vpop.xlane.xlu1 %1404  ;;  %v1403_v43 = vpop.xlane.xlu0 %1402  ;;  %v1640_v26 = vcvt.s32.f32 %v1638_v1 }
 0x4d3   :  { %v2450_v22 = vsel %vm2115_vm7, %v2449_v2, %v2445_v0  ;;  %v1397_v6 = vadd.s32 %v1396_v42, %v1394_v14  ;;  %v1407_v48 = vcvt.f32.s32 %v1405_v49  ;;  %v1406_v25 = vcvt.f32.s32 %v1403_v43 }
 0x4d4   :  { %v1653_v49 = vcvt.s32.f32 %v1651_v52  ;;  %v1663_v43 = vshrl.u32 %v3587_v32, 16 }
 0x4d5   :  { %v2454_v60 = vrot.slane %v1397_v6, %v3648_v44  ;;  %v1408_v28 = vshll.u32 %v1407_v48, 16  ;;  %1632 = vadd.xlane.f32.xlu1 %v1629_v11  ;;  %1630 = vadd.xlane.f32.xlu0 %v1628_v37  ;;  %v1662_v11 = vand.u32 65535, %v3587_v32 }
 0x4d6   :  { %v1417_v59 = vpop.xlane.xlu1 %1416  ;;  %v1415_v58 = vpop.xlane.xlu0 %1414 }
 0x4d7   :  { %v2455_v12 = vsel %vm2122_vm11, %v2454_v60, %v2450_v22  ;;  %v1409_v53 = vadd.s32 %v1408_v28, %v1406_v25  ;;  %v1419_v0 = vcvt.f32.s32 %v1417_v59  ;;  %v1418_v2 = vcvt.f32.s32 %v1415_v58  ;;  %v4411_v58 = vld [vmem:[#allocation54_spill] sm:$0xff] }
 0x4d8   :  { %v1652_v22 = vcvt.s32.f32 %v1650_v21  ;;  %v1665_v25 = vcvt.s32.f32 %v1663_v43  ;;  %v1664_v59 = vcvt.s32.f32 %v1662_v11 }
 0x4d9   :  { %v2459_v38 = vrot.slane %v1409_v53, %v3659_v19  ;;  %v1420_v57 = vshll.u32 %v1419_v0, 16  ;;  %1644 = vadd.xlane.f32.xlu1 %v1641_v55  ;;  %1642 = vadd.xlane.f32.xlu0 %v1640_v26  ;;  %v1675_v55 = vshrl.u32 %v4411_v58, 16 }
 0x4da   :  { %v1429_v42 = vpop.xlane.xlu1 %1428  ;;  %v1427_v14 = vpop.xlane.xlu0 %1426 }
 0x4db   :  { %v2460_v37 = vsel %vm2129_vm1, %v2459_v38, %v2455_v12  ;;  %v1421_v41 = vadd.s32 %v1420_v57, %v1418_v2  ;;  %v1431_v31 = vcvt.f32.s32 %v1429_v42  ;;  %v1430_v1 = vcvt.f32.s32 %v1427_v14  ;;  %v4412_v2 = vld [vmem:[#allocation55_spill] sm:$0xff] }
 0x4dc   :  { %v1674_v12 = vand.u32 65535, %v4411_v58  ;;  %v1677_v57 = vcvt.s32.f32 %v1675_v55  ;;  %v1687_v42 = vshrl.u32 %v4412_v2, 16  ;;  %v1686_v14 = vand.u32 65535, %v4412_v2 }
 0x4dd   :  { %v2464_v6 = vrot.slane %v1421_v41, %v3681_v23  ;;  %v1432_v48 = vshll.u32 %v1431_v31, 16  ;;  %1656 = vadd.xlane.f32.xlu1 %v1653_v49  ;;  %1654 = vadd.xlane.f32.xlu0 %v1652_v22 }
 0x4de   :  { %v1441_v60 = vpop.xlane.xlu1 %1440  ;;  %v1439_v28 = vpop.xlane.xlu0 %1438 }
 0x4df   :  { %v2465_v61 = vsel %vm2136_vm3, %v2464_v6, %v2460_v37  ;;  %v1433_v32 = vadd.s32 %v1432_v48, %v1430_v1  ;;  %v1443_v52 = vcvt.f32.s32 %v1441_v60  ;;  %v1442_v0 = vcvt.f32.s32 %v1439_v28  ;;  %v4413_v28 = vld [vmem:[#allocation56_spill] sm:$0xff] }
 0x4e0   :  { %v1676_v37 = vcvt.s32.f32 %v1674_v12  ;;  %v1689_v1 = vcvt.s32.f32 %v1687_v42  ;;  %v1688_v60 = vcvt.s32.f32 %v1686_v14 }
 0x4e1   :  { %v2469_v21 = vrot.slane %v1433_v32, %v3694_v5  ;;  %v1444_v53 = vshll.u32 %v1443_v52, 16  ;;  %1668 = vadd.xlane.f32.xlu1 %v1665_v25  ;;  %1666 = vadd.xlane.f32.xlu0 %v1664_v59  ;;  %v1699_v25 = vshrl.u32 %v4413_v28, 16 }
 0x4e2   :  { %v1453_v26 = vpop.xlane.xlu1 %1452  ;;  %v1451_v38 = vpop.xlane.xlu0 %1450 }
 0x4e3   :  { %v2470_v49 = vsel %vm2143_vm10, %v2469_v21, %v2465_v61  ;;  %v1445_v43 = vadd.s32 %v1444_v53, %v1442_v0  ;;  %v1455_v11 = vcvt.f32.s32 %v1453_v26  ;;  %v1454_v22 = vcvt.f32.s32 %v1451_v38  ;;  %v4414_v26 = vld [vmem:[#allocation57_spill] sm:$0xff] }
 0x4e4   :  { %v1698_v61 = vand.u32 65535, %v4413_v28  ;;  %v1701_v0 = vcvt.s32.f32 %v1699_v25  ;;  %v1711_v38 = vshrl.u32 %v4414_v26, 16 }
 0x4e5   :  { %v2474_v41 = vrot.slane %v1445_v43, %v3718_v3  ;;  %v1456_v31 = vshll.u32 %v1455_v11, 16  ;;  %1680 = vadd.xlane.f32.xlu1 %v1677_v57  ;;  %1678 = vadd.xlane.f32.xlu0 %v1676_v37  ;;  %v1710_v57 = vand.u32 65535, %v4414_v26 }
 0x4e6   :  { %v1465_v6 = vpop.xlane.xlu1 %1464  ;;  %v1463_v48 = vpop.xlane.xlu0 %1462 }
 0x4e7   :  { %v2475_v59 = vsel %vm2150_vm4, %v2474_v41, %v2470_v49  ;;  %v1457_v58 = vadd.s32 %v1456_v31, %v1454_v22  ;;  %v1467_v55 = vcvt.f32.s32 %v1465_v6  ;;  %v1466_v12 = vcvt.f32.s32 %v1463_v48  ;;  %v4415_v48 = vld [vmem:[#allocation58_spill] sm:$0xff] }
 0x4e8   :  { %v1700_v49 = vcvt.s32.f32 %v1698_v61  ;;  %v1713_v22 = vcvt.s32.f32 %v1711_v38  ;;  %v1712_v6 = vcvt.s32.f32 %v1710_v57 }
 0x4e9   :  { %v2479_v32 = vrot.slane %v1457_v58, %v3721_v56  ;;  %v1468_v52 = vshll.u32 %v1467_v55, 16  ;;  %1692 = vadd.xlane.f32.xlu1 %v1689_v1  ;;  %1690 = vadd.xlane.f32.xlu0 %v1688_v60  ;;  %v1723_v1 = vshrl.u32 %v4415_v48, 16 }
 0x4ea   :  { %v1477_v21 = vpop.xlane.xlu1 %1476  ;;  %v1475_v53 = vpop.xlane.xlu0 %1474 }
 0x4eb   :  { %v2480_v2 = vsel %vm4382_vm0, %v2479_v32, %v2475_v59  ;;  %v1469_v42 = vadd.s32 %v1468_v52, %v1466_v12  ;;  %v1479_v14 = vcvt.f32.s32 %v1477_v21  ;;  %v1478_v37 = vcvt.f32.s32 %v1475_v53  ;;  %v4416_v21 = vld [vmem:[#allocation59_spill] sm:$0xff]  ;;  %vm4427_vm0 = vmmov %vm4384_vm15 }
 0x4ec   :  { %v1722_v59 = vand.u32 65535, %v4415_v48  ;;  %v1725_v12 = vcvt.s32.f32 %v1723_v1  ;;  %v1735_v53 = vshrl.u32 %v4416_v21, 16  ;;  %v1746_v1 = vand.u32 65535, %v3654_v16 }
 0x4ed   :  { %v2484_v43 = vrot.slane %v1469_v42, %v3749_v33  ;;  %v1480_v11 = vshll.u32 %v1479_v14, 16  ;;  %1704 = vadd.xlane.f32.xlu1 %v1701_v0  ;;  %1702 = vadd.xlane.f32.xlu0 %v1700_v49  ;;  %v1734_v0 = vand.u32 65535, %v4416_v21 }
 0x4ee   :  { %v1489_v41 = vpop.xlane.xlu1 %1488  ;;  %v1487_v31 = vpop.xlane.xlu0 %1486 }
 0x4ef   :  { %v2485_v60 = vsel %vm4384_vm15, %v2484_v43, %v2480_v2  ;;  %v1481_v28 = vadd.s32 %v1480_v11, %v1478_v37  ;;  %v1491_v25 = vcvt.f32.s32 %v1489_v41  ;;  %v1490_v61 = vcvt.f32.s32 %v1487_v31 }
 0x4f0   :  { %v1724_v2 = vcvt.s32.f32 %v1722_v59  ;;  %v1737_v37 = vcvt.s32.f32 %v1735_v53  ;;  %v1736_v41 = vcvt.s32.f32 %v1734_v0  ;;  %v1747_v31 = vshrl.u32 %v3654_v16, 16 }
 0x4f1   :  { %v2489_v58 = vrot.slane %v1481_v28, %v3752_v20  ;;  %v1492_v55 = vshll.u32 %v1491_v25, 16  ;;  %1716 = vadd.xlane.f32.xlu1 %v1713_v22  ;;  %1714 = vadd.xlane.f32.xlu0 %v1712_v6  ;;  %vm2737_vm15 = vcmask 1043459  }
 0x4f2   :  { %v1117_v32 = vpop.xlane.xlu1 %1116  ;;  %v1115_v52 = vpop.xlane.xlu0 %1114 }
 0x4f3   :  { %v2490_v26 = vsel %vm2171_vm5, %v2489_v58, %v2485_v60  ;;  %v1493_v38 = vadd.s32 %v1492_v55, %v1490_v61  ;;  %v1119_v57 = vcvt.f32.s32 %v1117_v32  ;;  %v1118_v49 = vcvt.f32.s32 %v1115_v52  ;;  %v4417_v55 = vld [vmem:[#allocation60_spill] sm:$0xff] }
 0x4f4   :  { %v1749_v58 = vcvt.s32.f32 %v1747_v31  ;;  %v1759_v61 = vshrl.u32 %v4417_v55, 16  ;;  %v1758_v21 = vand.u32 65535, %v4417_v55 }
 0x4f5   :  { %v2494_v42 = vrot.slane %v1493_v38, %v3779_v29  ;;  %v1120_v14 = vshll.u32 %v1119_v57, 16  ;;  %1728 = vadd.xlane.f32.xlu1 %v1725_v12  ;;  %1726 = vadd.xlane.f32.xlu0 %v1724_v2  ;;  %v1748_v12 = vcvt.s32.f32 %v1746_v1 }
 0x4f6   :  { %v1129_v43 = vpop.xlane.xlu1 %1128  ;;  %v1127_v11 = vpop.xlane.xlu0 %1126  ;;  %v1761_v2 = vcvt.s32.f32 %v1759_v61 }
 0x4f7   :  { %v4053_v22 = vsel %vm2178_vm9, %v2494_v42, %v2490_v26  ;;  %v1121_v6 = vadd.s32 %v1120_v14, %v1118_v49  ;;  %v1131_v48 = vcvt.f32.s32 %v1129_v43  ;;  %v1130_v28 = vcvt.f32.s32 %v1127_v11  ;;  %v4418_v42 = vld [vmem:[#allocation61_spill] sm:$0xff] }
 0x4f8   :  { %v1771_v14 = vshrl.u32 %v4418_v42, 16  ;;  %v1770_v49 = vand.u32 65535, %v4418_v42 }
 0x4f9   :  { %v1132_v60 = vshll.u32 %v1131_v48, 16  ;;  %1740 = vadd.xlane.f32.xlu1 %v1737_v37  ;;  %1738 = vadd.xlane.f32.xlu0 %v1736_v41  ;;  %v2341_v53 = vrot.slane %v1121_v6, %v3548_v50  ;;  %v1760_v41 = vcvt.s32.f32 %v1758_v21 }
 0x4fa   :  { %v1141_v25 = vpop.xlane.xlu1 %1140  ;;  %v1139_v59 = vpop.xlane.xlu0 %1138 }
 0x4fb   :  { %v1133_v32 = vadd.s32 %v1132_v60, %v1130_v28  ;;  %v1143_v52 = vcvt.f32.s32 %v1141_v25  ;;  %v1142_v16 = vcvt.f32.s32 %v1139_v59  ;;  %v1773_v28 = vcvt.s32.f32 %v1771_v14  ;;  %v4419_v59 = vld [vmem:[#allocation62_spill] sm:$0xff] }
 0x4fc   :  { %v1772_v25 = vcvt.s32.f32 %v1770_v49 }
 0x4fd   :  { %v2345_v0 = vrot.slane %v1133_v32, %v3551_v15  ;;  %v1144_v26 = vshll.u32 %v1143_v52, 16  ;;  %1752 = vadd.xlane.f32.xlu1 %v1749_v58  ;;  %1750 = vadd.xlane.f32.xlu0 %v1748_v12  ;;  %v1795_v58 = vshrl.u32 %v4419_v59, 16  ;;  %v4420_v52 = vld [vmem:[#allocation63_spill] sm:$0xff] }
 0x4fe   :  { %v1153_v38 = vpop.xlane.xlu1 %1152  ;;  %v1151_v57 = vpop.xlane.xlu0 %1150  ;;  %v1783_v12 = vshrl.u32 %v4420_v52, 16  ;;  %v1782_v42 = vand.u32 65535, %v4420_v52 }
 0x4ff   :  { %v2346_v43 = vsel %vm2080_vm12, %v2345_v0, %v2341_v53  ;;  %v1145_v11 = vadd.s32 %v1144_v26, %v1142_v16  ;;  %v1155_v37 = vcvt.f32.s32 %v1153_v38  ;;  %v1154_v48 = vcvt.f32.s32 %v1151_v57  ;;  %v4421_v57 = vld [vmem:[#allocation64_spill] sm:$0xff] }
 0x500   :  { %v1797_v38 = vcvt.s32.f32 %v1795_v58 }
 0x501   :  { %v2350_v31 = vrot.slane %v1145_v11, %v3557_v46  ;;  %v1156_v6 = vshll.u32 %v1155_v37, 16  ;;  %1764 = vadd.xlane.f32.xlu1 %v1761_v2  ;;  %1762 = vadd.xlane.f32.xlu0 %v1760_v41  ;;  %v1807_v2 = vshrl.u32 %v4421_v57, 16  ;;  %v1785_v11 = vcvt.s32.f32 %v1783_v12 }
 0x502   :  { %v1165_v1 = vpop.xlane.xlu1 %1164  ;;  %v1163_v60 = vpop.xlane.xlu0 %1162 }
 0x503   :  { %v2351_v55 = vsel %vm2087_vm13, %v2350_v31, %v2346_v43  ;;  %v1157_v61 = vadd.s32 %v1156_v6, %v1154_v48  ;;  %v1167_v32 = vcvt.f32.s32 %v1165_v1  ;;  %v1166_v0 = vcvt.f32.s32 %v1163_v60 }
 0x504   :  { %v1809_v1 = vcvt.s32.f32 %v1807_v2  ;;  %v1784_v60 = vcvt.s32.f32 %v1782_v42  ;;  %v1806_v2 = vand.u32 65535, %v4421_v57 }
 0x505   :  { %v2355_v21 = vrot.slane %v1157_v61, %v3581_v51  ;;  %v1168_v53 = vshll.u32 %v1167_v32, 16  ;;  %1776 = vadd.xlane.f32.xlu1 %v1773_v28  ;;  %1774 = vadd.xlane.f32.xlu0 %v1772_v25  ;;  %v1794_v28 = vand.u32 65535, %v4419_v59 }
 0x506   :  { %v1177_v26 = vpop.xlane.xlu1 %1176  ;;  %v1175_v16 = vpop.xlane.xlu0 %1174 }
 0x507   :  { %v2356_v14 = vsel %vm2094_vm14, %v2355_v21, %v2351_v55  ;;  %v1169_v49 = vadd.s32 %v1168_v53, %v1166_v0  ;;  %v1179_v43 = vcvt.f32.s32 %v1177_v26  ;;  %v1178_v31 = vcvt.f32.s32 %v1175_v16  ;;  %v4422_v55 = vld [vmem:[#allocation65_spill] sm:$0xff]  ;;  %v4423_v16 = vld [vmem:[#allocation66_spill] sm:$0xff] }
 0x508   :  { %v1819_v32 = vshrl.u32 %v4422_v55, 16  ;;  %v1796_v26 = vcvt.s32.f32 %v1794_v28 }
 0x509   :  { %v2360_v37 = vrot.slane %v1169_v49, %v3599_v27  ;;  %v1180_v41 = vshll.u32 %v1179_v43, 16  ;;  %1800 = vadd.xlane.f32.xlu1 %v1797_v38  ;;  %1788 = vadd.xlane.f32.xlu0 %v1785_v11  ;;  %v1831_v38 = vshrl.u32 %v4423_v16, 16 }
 0x50a   :  { %v1189_v6 = vpop.xlane.xlu1 %1188  ;;  %v1187_v48 = vpop.xlane.xlu0 %1186  ;;  %v1821_v49 = vcvt.s32.f32 %v1819_v32 }
 0x50b   :  { %v2361_v25 = vsel %vm2101_vm2, %v2360_v37, %v2356_v14  ;;  %v1181_v58 = vadd.s32 %v1180_v41, %v1178_v31  ;;  %v1191_v61 = vcvt.f32.s32 %v1189_v6  ;;  %v1190_v21 = vcvt.f32.s32 %v1187_v48 }
 0x50c   :  { %v1833_v6 = vcvt.s32.f32 %v1831_v38  ;;  %v1808_v48 = vcvt.s32.f32 %v1806_v2  ;;  %v1830_v38 = vand.u32 65535, %v4423_v16 }
 0x50d   :  { %v2365_v52 = vrot.slane %v1181_v58, %v3610_v35  ;;  %v1192_v12 = vshll.u32 %v1191_v61, 16  ;;  %1812 = vadd.xlane.f32.xlu1 %v1809_v1  ;;  %1786 = vadd.xlane.f32.xlu0 %v1784_v60  ;;  %v1818_v1 = vand.u32 65535, %v4422_v55 }
 0x50e   :  { %v1201_v53 = vpop.xlane.xlu1 %1200  ;;  %v1199_v0 = vpop.xlane.xlu0 %1198 }
 0x50f   :  { %v2366_v59 = vsel %vm2108_vm6, %v2365_v52, %v2361_v25  ;;  %v1193_v42 = vadd.s32 %v1192_v12, %v1190_v21  ;;  %v1203_v14 = vcvt.f32.s32 %v1201_v53  ;;  %v1202_v37 = vcvt.f32.s32 %v1199_v0  ;;  %v4424_v25 = vld [vmem:[#allocation67_spill] sm:$0xff]  ;;  %v4425_v0 = vld [vmem:[#allocation68_spill] sm:$0xff] }
 0x510   :  { %v1843_v58 = vshrl.u32 %v4424_v25, 16  ;;  %v1820_v53 = vcvt.s32.f32 %v1818_v1 }
 0x511   :  { %v2370_v43 = vrot.slane %v1193_v42, %v3615_v47  ;;  %v1204_v11 = vshll.u32 %v1203_v14, 16  ;;  %1824 = vadd.xlane.f32.xlu1 %v1821_v49  ;;  %1798 = vadd.xlane.f32.xlu0 %v1796_v26  ;;  %v1855_v26 = vshrl.u32 %v4425_v0, 16 }
 0x512   :  { %v1213_v41 = vpop.xlane.xlu1 %1212  ;;  %v1211_v31 = vpop.xlane.xlu0 %1210  ;;  %v1845_v42 = vcvt.s32.f32 %v1843_v58 }
 0x513   :  { %v2371_v60 = vsel %vm2115_vm7, %v2370_v43, %v2366_v59  ;;  %v1205_v57 = vadd.s32 %v1204_v11, %v1202_v37  ;;  %v1215_v28 = vcvt.f32.s32 %v1213_v41  ;;  %v1214_v52 = vcvt.f32.s32 %v1211_v31 }
 0x514   :  { %v1857_v41 = vcvt.s32.f32 %v1855_v26  ;;  %v1832_v31 = vcvt.s32.f32 %v1830_v38 }
 0x515   :  { %v2375_v61 = vrot.slane %v1205_v57, %v3648_v44  ;;  %v1216_v32 = vshll.u32 %v1215_v28, 16  ;;  %1836 = vadd.xlane.f32.xlu1 %v1833_v6  ;;  %1810 = vadd.xlane.f32.xlu0 %v1808_v48  ;;  %v1842_v6 = vand.u32 65535, %v4424_v25 }
 0x516   :  { %v1225_v12 = vpop.xlane.xlu1 %1224  ;;  %v1223_v21 = vpop.xlane.xlu0 %1222 }
 0x517   :  { %v2376_v55 = vsel %vm2122_vm11, %v2375_v61, %v2371_v60  ;;  %v1217_v2 = vadd.s32 %v1216_v32, %v1214_v52  ;;  %v1227_v59 = vcvt.f32.s32 %v1225_v12  ;;  %v1226_v43 = vcvt.f32.s32 %v1223_v21 }
 0x518   :  { %v1867_v60 = vshrl.u32 %v3755_v34, 16  ;;  %v1844_v52 = vcvt.s32.f32 %v1842_v6  ;;  %v1866_v12 = vand.u32 65535, %v3755_v34  ;;  %v1854_v21 = vand.u32 65535, %v4425_v0 }
 0x519   :  { %v2380_v14 = vrot.slane %v1217_v2, %v3659_v19  ;;  %v1228_v49 = vshll.u32 %v1227_v59, 16  ;;  %1848 = vadd.xlane.f32.xlu1 %v1845_v42  ;;  %1822 = vadd.xlane.f32.xlu0 %v1820_v53 }
 0x51a   :  { %v1237_v11 = vpop.xlane.xlu1 %1236  ;;  %v1235_v37 = vpop.xlane.xlu0 %1234  ;;  %v1869_v38 = vcvt.s32.f32 %v1867_v60 }
 0x51b   :  { %v2381_v48 = vsel %vm2129_vm1, %v2380_v14, %v2376_v55  ;;  %v1229_v16 = vadd.s32 %v1228_v49, %v1226_v43  ;;  %v1239_v1 = vcvt.f32.s32 %v1237_v11  ;;  %v1238_v58 = vcvt.f32.s32 %v1235_v37 }
 0x51c   :  { %v1868_v49 = vcvt.s32.f32 %v1866_v12  ;;  %v1856_v43 = vcvt.s32.f32 %v1854_v21  ;;  %v1891_v11 = vshrl.u32 %v3769_v17, 16 }
 0x51d   :  { %v2385_v57 = vrot.slane %v1229_v16, %v3681_v23  ;;  %v1240_v28 = vshll.u32 %v1239_v1, 16  ;;  %1860 = vadd.xlane.f32.xlu1 %v1857_v41  ;;  %1834 = vadd.xlane.f32.xlu0 %v1832_v31  ;;  %v1879_v41 = vshrl.u32 %v3773_v40, 16 }
 0x51e   :  { %v1249_v61 = vpop.xlane.xlu1 %1248  ;;  %v1247_v32 = vpop.xlane.xlu0 %1246  ;;  %v1893_v60 = vcvt.s32.f32 %v1891_v11 }
 0x51f   :  { %v2386_v25 = vsel %vm2136_vm3, %v2385_v57, %v2381_v48  ;;  %v1241_v53 = vadd.s32 %v1240_v28, %v1238_v58  ;;  %v1251_v26 = vcvt.f32.s32 %v1249_v61  ;;  %v1250_v59 = vcvt.f32.s32 %v1247_v32 }
 0x520   :  { %v1903_v57 = vshrl.u32 %v3782_v30, 16  ;;  %v1878_v28 = vand.u32 65535, %v3773_v40 }
 0x521   :  { %v2390_v55 = vrot.slane %v1241_v53, %v3694_v5  ;;  %v1252_v2 = vshll.u32 %v1251_v26, 16  ;;  %1872 = vadd.xlane.f32.xlu1 %v1869_v38  ;;  %1846 = vadd.xlane.f32.xlu0 %v1844_v52  ;;  %v1881_v52 = vcvt.s32.f32 %v1879_v41  ;;  %v1902_v41 = vand.u32 65535, %v3782_v30 }
 0x522   :  { %v1261_v42 = vpop.xlane.xlu1 %1260  ;;  %v1259_v14 = vpop.xlane.xlu0 %1258  ;;  %v1905_v38 = vcvt.s32.f32 %v1903_v57  ;;  %v1939_v30 = vshrl.u32 %v3804_v10, 16 }
 0x523   :  { %v2391_v34 = vsel %vm2143_vm10, %v2390_v55, %v2386_v25  ;;  %v1253_v0 = vadd.s32 %v1252_v2, %v1250_v59  ;;  %v1263_v37 = vcvt.f32.s32 %v1261_v42  ;;  %v1262_v48 = vcvt.f32.s32 %v1259_v14 }
 0x524   :  { %v1880_v55 = vcvt.s32.f32 %v1878_v28  ;;  %v1890_v2 = vand.u32 65535, %v3769_v17  ;;  %v1915_v14 = vshrl.u32 %v3795_v63, 16 }
 0x525   :  { %v2395_v31 = vrot.slane %v1253_v0, %v3718_v3  ;;  %v1264_v6 = vshll.u32 %v1263_v37, 16  ;;  %1870 = vadd.xlane.f32.xlu1 %v1868_v49  ;;  %1858 = vadd.xlane.f32.xlu0 %v1856_v43 }
 0x526   :  { %v1273_v16 = vpop.xlane.xlu1 %1272  ;;  %v1271_v1 = vpop.xlane.xlu0 %1270  ;;  %v1892_v37 = vcvt.s32.f32 %v1890_v2 }
 0x527   :  { %v2396_v58 = vsel %vm2150_vm4, %v2395_v31, %v2391_v34  ;;  %v1265_v61 = vadd.s32 %v1264_v6, %v1262_v48  ;;  %v1275_v32 = vcvt.f32.s32 %v1273_v16  ;;  %v1274_v25 = vcvt.f32.s32 %v1271_v1 }
 0x528   :  { %v1927_v31 = vshrl.u32 %v3799_v62, 16  ;;  %v1917_v16 = vcvt.s32.f32 %v1915_v14 }
 0x529   :  { %v2400_v12 = vrot.slane %v1265_v61, %v3721_v56  ;;  %v1276_v21 = vshll.u32 %v1275_v32, 16  ;;  %1896 = vadd.xlane.f32.xlu1 %v1893_v60  ;;  %1884 = vadd.xlane.f32.xlu0 %v1881_v52  ;;  %v1904_v61 = vcvt.s32.f32 %v1902_v41  ;;  %v1914_v32 = vand.u32 65535, %v3795_v63 }
 0x52a   :  { %v1285_v53 = vpop.xlane.xlu1 %1284  ;;  %v1283_v26 = vpop.xlane.xlu0 %1282  ;;  %v1926_v63 = vand.u32 65535, %v3799_v62 }
 0x52b   :  { %v2401_v59 = vsel %vm4426_vm8, %v2400_v12, %v2396_v58  ;;  %v1277_v40 = vadd.s32 %v1276_v21, %v1274_v25  ;;  %v1287_v42 = vcvt.f32.s32 %v1285_v53  ;;  %v1286_v11 = vcvt.f32.s32 %v1283_v26 }
 0x52c   :  { %v1929_v25 = vcvt.s32.f32 %v1927_v31  ;;  %v1963_v31 = vshrl.u32 %v3820_v13, 16 }
 0x52d   :  { %v2405_v49 = vrot.slane %v1277_v40, %v3749_v33  ;;  %v1288_v43 = vshll.u32 %v1287_v42, 16  ;;  %1908 = vadd.xlane.f32.xlu0 %v1905_v38  ;;  %1882 = vadd.xlane.f32.xlu1 %v1880_v55  ;;  %v1941_v40 = vcvt.s32.f32 %v1939_v30  ;;  %v1950_v30 = vand.u32 65535, %v3814_v54 }
 0x52e   :  { %v1297_v34 = vpop.xlane.xlu1 %1296  ;;  %v1295_v0 = vpop.xlane.xlu0 %1294 }
 0x52f   :  { %v2406_v17 = vsel %vm4427_vm0, %v2405_v49, %v2401_v59  ;;  %v1289_v6 = vadd.s32 %v1288_v43, %v1286_v11  ;;  %v1299_v48 = vcvt.f32.s32 %v1297_v34  ;;  %v1298_v57 = vcvt.f32.s32 %v1295_v0 }
 0x530   :  { %v1916_v59 = vcvt.s32.f32 %v1914_v32  ;;  %v1951_v43 = vshrl.u32 %v3814_v54, 16 }
 0x531   :  { %v2410_v1 = vrot.slane %v1289_v6, %v3752_v20  ;;  %v1300_v60 = vshll.u32 %v1299_v48, 16  ;;  %1894 = vadd.xlane.f32.xlu0 %v1892_v37  ;;  %1920 = vadd.xlane.f32.xlu1 %v1917_v16  ;;  %v1928_v48 = vcvt.s32.f32 %v1926_v63 }
 0x532   :  { %v1501_v28 = vpop.xlane.xlu1 %1500  ;;  %v1499_v58 = vpop.xlane.xlu0 %1498  ;;  %v1953_v16 = vcvt.s32.f32 %v1951_v43 }
 0x533   :  { %v2411_v52 = vsel %vm2171_vm5, %v2410_v1, %v2406_v17  ;;  %v1301_v12 = vadd.s32 %v1300_v60, %v1298_v57  ;;  %v1503_v21 = vcvt.f32.s32 %v1501_v28  ;;  %v1502_v38 = vcvt.f32.s32 %v1499_v58 }
 0x534   :  { %v1938_v17 = vand.u32 65535, %v3804_v10 }
 0x535   :  { %v2415_v53 = vrot.slane %v1301_v12, %v3779_v29  ;;  %v1504_v26 = vshll.u32 %v1503_v21, 16  ;;  %1906 = vadd.xlane.f32.xlu0 %v1904_v61  ;;  %1932 = vadd.xlane.f32.xlu1 %v1929_v25  ;;  %v1965_v61 = vcvt.s32.f32 %v1963_v31  ;;  %v1975_v21 = vshrl.u32 %v3828_v4, 16 }
 0x536   :  { %v1513_v55 = vpop.xlane.xlu1 %1512  ;;  %v1511_v2 = vpop.xlane.xlu0 %1510  ;;  %v1940_v32 = vcvt.s32.f32 %v1938_v17  ;;  %v1974_v17 = vand.u32 65535, %v3828_v4 }
 0x537   :  { %v2416_v42 = vsel %vm2178_vm9, %v2415_v53, %v2411_v52  ;;  %v1505_v14 = vadd.s32 %v1504_v26, %v1502_v38  ;;  %v1515_v49 = vcvt.f32.s32 %v1513_v55  ;;  %v1514_v0 = vcvt.f32.s32 %v1511_v2 }
 0x538   :  { %v4120_v11 = vsel %vm2737_vm15, %v2416_v42, %v3989_v8  ;;  %v1952_v2 = vcvt.s32.f32 %v1950_v30  ;;  %vm2739_vm15 = vcmask 1044484  }
 0x539   :  { %v1516_v34 = vshll.u32 %v1515_v49, 16  ;;  %1918 = vadd.xlane.f32.xlu0 %v1916_v59  ;;  %1944 = vadd.xlane.f32.xlu1 %v1941_v40  ;;  %v2499_v1 = vrot.slane %v1505_v14, %v3548_v50  ;;  %v1962_v59 = vand.u32 65535, %v3820_v13  ;;  %v1987_v40 = vshrl.u32 %v3834_v18, 16 }
 0x53a   :  { %v1525_v37 = vpop.xlane.xlu1 %1524  ;;  %v1523_v41 = vpop.xlane.xlu0 %1522  ;;  %v1977_v14 = vcvt.s32.f32 %v1975_v21 }
 0x53b   :  { %v1517_v62 = vadd.s32 %v1516_v34, %v1514_v0  ;;  %v1527_v6 = vcvt.f32.s32 %v1525_v37  ;;  %v1526_v57 = vcvt.f32.s32 %v1523_v41  ;;  %v1964_v41 = vcvt.s32.f32 %v1962_v59 }
 0x53c   :  { %v1989_v31 = vcvt.s32.f32 %v1987_v40 }
 0x53d   :  { %v2503_v60 = vrot.slane %v1517_v62, %v3551_v15  ;;  %v1528_v8 = vshll.u32 %v1527_v6, 16  ;;  %1930 = vadd.xlane.f32.xlu0 %v1928_v48  ;;  %1956 = vadd.xlane.f32.xlu1 %v1953_v16  ;;  %v1999_v48 = vshrl.u32 %v3845_v9, 16 }
 0x53e   :  { %v1537_v28 = vpop.xlane.xlu1 %1536  ;;  %v1535_v58 = vpop.xlane.xlu0 %1534 }
 0x53f   :  { %v2504_v10 = vsel %vm2080_vm12, %v2503_v60, %v2499_v1  ;;  %v1529_v52 = vadd.s32 %v1528_v8, %v1526_v57  ;;  %v1539_v12 = vcvt.f32.s32 %v1537_v28  ;;  %v1538_v26 = vcvt.f32.s32 %v1535_v58 }
 0x540   :  { %v1976_v28 = vcvt.s32.f32 %v1974_v17  ;;  %v1986_v58 = vand.u32 65535, %v3834_v18  ;;  %v2023_v18 = vshrl.u32 %v3858_v7, 16 }
 0x541   :  { %v2508_v25 = vrot.slane %v1529_v52, %v3557_v46  ;;  %v1540_v53 = vshll.u32 %v1539_v12, 16  ;;  %1968 = vadd.xlane.f32.xlu0 %v1965_v61  ;;  %1942 = vadd.xlane.f32.xlu1 %v1940_v32  ;;  %v2011_v61 = vshrl.u32 %v3849_v45, 16 }
 0x542   :  { %v1549_v38 = vpop.xlane.xlu1 %1548  ;;  %v1547_v55 = vpop.xlane.xlu0 %1546 }
 0x543   :  { %v2509_v54 = vsel %vm2087_vm13, %v2508_v25, %v2504_v10  ;;  %v1541_v63 = vadd.s32 %v1540_v53, %v1538_v26  ;;  %v1551_v42 = vcvt.f32.s32 %v1549_v38  ;;  %v1550_v34 = vcvt.f32.s32 %v1547_v55 }
 0x544   :  { %v2001_v10 = vcvt.s32.f32 %v1999_v48  ;;  %v1988_v26 = vcvt.s32.f32 %v1986_v58  ;;  %v1998_v38 = vand.u32 65535, %v3845_v9  ;;  %v2013_v40 = vcvt.s32.f32 %v2011_v61 }
 0x545   :  { %v2513_v49 = vrot.slane %v1541_v63, %v3581_v51  ;;  %v1552_v43 = vshll.u32 %v1551_v42, 16  ;;  %1954 = vadd.xlane.f32.xlu0 %v1952_v2  ;;  %1980 = vadd.xlane.f32.xlu1 %v1977_v14 }
 0x546   :  { %v1561_v0 = vpop.xlane.xlu1 %1560  ;;  %v1559_v37 = vpop.xlane.xlu0 %1558 }
 0x547   :  { %v2514_v13 = vsel %vm2094_vm14, %v2513_v49, %v2509_v54  ;;  %v1553_v62 = vadd.s32 %v1552_v43, %v1550_v34  ;;  %v1563_v6 = vcvt.f32.s32 %v1561_v0  ;;  %v1562_v60 = vcvt.f32.s32 %v1559_v37 }
 0x548   :  { %v2000_v43 = vcvt.s32.f32 %v1998_v38  ;;  %v2025_v34 = vcvt.s32.f32 %v2023_v18  ;;  %v2010_v0 = vand.u32 65535, %v3849_v45 }
 0x549   :  { %v2518_v16 = vrot.slane %v1553_v62, %v3599_v27  ;;  %v1564_v1 = vshll.u32 %v1563_v6, 16  ;;  %1966 = vadd.xlane.f32.xlu0 %v1964_v41  ;;  %1992 = vadd.xlane.f32.xlu1 %v1989_v31  ;;  %v2035_v31 = vshrl.u32 %v3870_v39, 16 }
 0x54a   :  { %v1573_v8 = vpop.xlane.xlu1 %1572  ;;  %v1571_v57 = vpop.xlane.xlu0 %1570 }
 0x54b   :  { %v2519_v4 = vsel %vm2101_vm2, %v2518_v16, %v2514_v13  ;;  %v1565_v32 = vadd.s32 %v1564_v1, %v1562_v60  ;;  %v1575_v30 = vcvt.f32.s32 %v1573_v8  ;;  %v1574_v21 = vcvt.f32.s32 %v1571_v57 }
 0x54c   :  { %v2012_v16 = vcvt.s32.f32 %v2010_v0  ;;  %v2022_v1 = vand.u32 65535, %v3858_v7  ;;  %v2047_v60 = vshrl.u32 %v3873_v24, 16 }
 0x54d   :  { %v2523_v52 = vrot.slane %v1565_v32, %v3610_v35  ;;  %v1576_v12 = vshll.u32 %v1575_v30, 16  ;;  %1978 = vadd.xlane.f32.xlu0 %v1976_v28  ;;  %2004 = vadd.xlane.f32.xlu1 %v2001_v10  ;;  %v2037_v28 = vcvt.s32.f32 %v2035_v31 }
 0x54e   :  { %v1585_v25 = vpop.xlane.xlu1 %1584  ;;  %v1583_v53 = vpop.xlane.xlu0 %1582  ;;  %v2024_v10 = vcvt.s32.f32 %v2022_v1 }
 0x54f   :  { %v2524_v55 = vsel %vm2108_vm6, %v2523_v52, %v2519_v4  ;;  %v1577_v2 = vadd.s32 %v1576_v12, %v1574_v21  ;;  %v1587_v59 = vcvt.f32.s32 %v1585_v25  ;;  %v1586_v42 = vcvt.f32.s32 %v1583_v53 }
 0x550   :  { %v2049_v52 = vcvt.s32.f32 %v2047_v60  ;;  %v2034_v12 = vand.u32 65535, %v3870_v39  ;;  %v2059_v53 = vshrl.u32 %v3879_v36, 16 }
 0x551   :  { %v2528_v54 = vrot.slane %v1577_v2, %v3615_v47  ;;  %v1588_v63 = vshll.u32 %v1587_v59, 16  ;;  %1990 = vadd.xlane.f32.xlu0 %v1988_v26  ;;  %2016 = vadd.xlane.f32.xlu1 %v2013_v40  ;;  %v2046_v40 = vand.u32 65535, %v3873_v24 }
 0x552   :  { %v1597_v14 = vpop.xlane.xlu1 %1596  ;;  %v1595_v49 = vpop.xlane.xlu0 %1594  ;;  %v2036_v59 = vcvt.s32.f32 %v2034_v12 }
 0x553   :  { %v2529_v9 = vsel %vm2115_vm7, %v2528_v54, %v2524_v55  ;;  %v1589_v37 = vadd.s32 %v1588_v63, %v1586_v42  ;;  %v1599_v41 = vcvt.f32.s32 %v1597_v14  ;;  %v1598_v62 = vcvt.f32.s32 %v1595_v49 }
 0x554   :  { %v2058_v54 = vand.u32 65535, %v3879_v36  ;;  %v2061_v14 = vcvt.s32.f32 %v2059_v53 }
 0x555   :  { %v2533_v17 = vrot.slane %v1589_v37, %v3648_v44  ;;  %v1600_v13 = vshll.u32 %v1599_v41, 16  ;;  %2002 = vadd.xlane.f32.xlu0 %v2000_v43  ;;  %2028 = vadd.xlane.f32.xlu1 %v2025_v34  ;;  %v2048_v37 = vcvt.s32.f32 %v2046_v40 }
 0x556   :  { %v1609_v6 = vpop.xlane.xlu1 %1608  ;;  %v1607_v48 = vpop.xlane.xlu0 %1606 }
 0x557   :  { %v2534_v45 = vsel %vm2122_vm11, %v2533_v17, %v2529_v9  ;;  %v1601_v8 = vadd.s32 %v1600_v13, %v1598_v62  ;;  %v1611_v57 = vcvt.f32.s32 %v1609_v6  ;;  %v1610_v4 = vcvt.f32.s32 %v1607_v48 }
 0x558   :  { %v2060_v17 = vcvt.s32.f32 %v2058_v54 }
 0x559   :  { %v2538_v58 = vrot.slane %v1601_v8, %v3659_v19  ;;  %v1612_v61 = vshll.u32 %v1611_v57, 16  ;;  %2014 = vadd.xlane.f32.xlu0 %v2012_v16  ;;  %2040 = vadd.xlane.f32.xlu1 %v2037_v28 }
 0x55a   :  { %v1621_v32 = vpop.xlane.xlu1 %1620  ;;  %v1619_v30 = vpop.xlane.xlu0 %1618 }
 0x55b   :  { %v2539_v7 = vsel %vm2129_vm1, %v2538_v58, %v2534_v45  ;;  %v1613_v21 = vadd.s32 %v1612_v61, %v1610_v4  ;;  %v1623_v25 = vcvt.f32.s32 %v1621_v32  ;;  %v1622_v18 = vcvt.f32.s32 %v1619_v30 }
 0x55d   :  { %v2543_v26 = vrot.slane %v1613_v21, %v3681_v23  ;;  %v1624_v38 = vshll.u32 %v1623_v25, 16  ;;  %2026 = vadd.xlane.f32.xlu0 %v2024_v10  ;;  %2052 = vadd.xlane.f32.xlu1 %v2049_v52 }
 0x55e   :  { %v1633_v55 = vpop.xlane.xlu1 %1632  ;;  %v1631_v2 = vpop.xlane.xlu0 %1630 }
 0x55f   :  { %v2544_v39 = vsel %vm2136_vm3, %v2543_v26, %v2539_v7  ;;  %v1625_v63 = vadd.s32 %v1624_v38, %v1622_v18  ;;  %v1635_v42 = vcvt.f32.s32 %v1633_v55  ;;  %v1634_v34 = vcvt.f32.s32 %v1631_v2 }
 0x561   :  { %v2548_v49 = vrot.slane %v1625_v63, %v3694_v5  ;;  %v1636_v43 = vshll.u32 %v1635_v42, 16  ;;  %2064 = vadd.xlane.f32.xlu0 %v2061_v14  ;;  %2038 = vadd.xlane.f32.xlu1 %v2036_v59 }
 0x562   :  { %v1645_v0 = vpop.xlane.xlu1 %1644  ;;  %v1643_v9 = vpop.xlane.xlu0 %1642 }
 0x563   :  { %v2549_v41 = vsel %vm2143_vm10, %v2548_v49, %v2544_v39  ;;  %v1637_v31 = vadd.s32 %v1636_v43, %v1634_v34  ;;  %v1647_v24 = vcvt.f32.s32 %v1645_v0  ;;  %v1646_v62 = vcvt.f32.s32 %v1643_v9 }
 0x564   :  { %v2740_v9 = vsel %vm2739_vm15, %v4053_v22, %v4120_v11 }
 0x565   :  { %v2553_v36 = vrot.slane %v1637_v31, %v3718_v3  ;;  %v1648_v13 = vshll.u32 %v1647_v24, 16  ;;  %2050 = vadd.xlane.f32.xlu0 %v2048_v37  ;;  %2062 = vadd.xlane.f32.xlu1 %v2060_v17 }
 0x566   :  { %v1657_v6 = vpop.xlane.xlu1 %1656  ;;  %v1655_v48 = vpop.xlane.xlu0 %1654 }
 0x567   :  { %v2554_v16 = vsel %vm2150_vm4, %v2553_v36, %v2549_v41  ;;  %v1649_v1 = vadd.s32 %v1648_v13, %v1646_v62  ;;  %v1659_v60 = vcvt.f32.s32 %v1657_v6  ;;  %v1658_v57 = vcvt.f32.s32 %v1655_v48 }
 0x569   :  { %v2558_v45 = vrot.slane %v1649_v1, %v3721_v56  ;;  %v1660_v8 = vshll.u32 %v1659_v60, 16 }
 0x56a   :  { %v1669_v28 = vpop.xlane.xlu1 %1668  ;;  %v1667_v58 = vpop.xlane.xlu0 %1666 }
 0x56b   :  { %v2559_v61 = vsel %vm4426_vm8, %v2558_v45, %v2554_v16  ;;  %v1661_v4 = vadd.s32 %v1660_v8, %v1658_v57  ;;  %v1671_v32 = vcvt.f32.s32 %v1669_v28  ;;  %v1670_v52 = vcvt.f32.s32 %v1667_v58 }
 0x56c   :  { %vm2741_vm8 = vcmask 1045509  }
 0x56d   :  { %v2563_v30 = vrot.slane %v1661_v4, %v3749_v33  ;;  %v1672_v10 = vshll.u32 %v1671_v32, 16 }
 0x56e   :  { %v1681_v12 = vpop.xlane.xlu1 %1680  ;;  %v1679_v7 = vpop.xlane.xlu0 %1678 }
 0x56f   :  { %v2564_v21 = vsel %vm4427_vm0, %v2563_v30, %v2559_v61  ;;  %v1673_v25 = vadd.s32 %v1672_v10, %v1670_v52  ;;  %v1683_v53 = vcvt.f32.s32 %v1681_v12  ;;  %v1682_v18 = vcvt.f32.s32 %v1679_v7 }
 0x571   :  { %v2568_v26 = vrot.slane %v1673_v25, %v3752_v20  ;;  %v1684_v38 = vshll.u32 %v1683_v53, 16 }
 0x572   :  { %v1693_v55 = vpop.xlane.xlu1 %1692  ;;  %v1691_v2 = vpop.xlane.xlu0 %1690 }
 0x573   :  { %v2569_v59 = vsel %vm2171_vm5, %v2568_v26, %v2564_v21  ;;  %v1685_v40 = vadd.s32 %v1684_v38, %v1682_v18  ;;  %v1695_v54 = vcvt.f32.s32 %v1693_v55  ;;  %v1694_v42 = vcvt.f32.s32 %v1691_v2 }
 0x575   :  { %v2573_v39 = vrot.slane %v1685_v40, %v3779_v29  ;;  %v1696_v63 = vshll.u32 %v1695_v54, 16 }
 0x576   :  { %v1705_v14 = vpop.xlane.xlu1 %1704  ;;  %v1703_v49 = vpop.xlane.xlu0 %1702 }
 0x577   :  { %v2574_v43 = vsel %vm2178_vm9, %v2573_v39, %v2569_v59  ;;  %v1697_v34 = vadd.s32 %v1696_v63, %v1694_v42  ;;  %v1707_v0 = vcvt.f32.s32 %v1705_v14  ;;  %v1706_v41 = vcvt.f32.s32 %v1703_v49 }
 0x578   :  { %v4175_v31 = vsel %vm2741_vm8, %v2574_v43, %v2740_v9 }
 0x579   :  { %v1708_v37 = vshll.u32 %v1707_v0, 16  ;;  %v2578_v62 = vrot.slane %v1697_v34, %v3548_v50 }
 0x57a   :  { %v1717_v24 = vpop.xlane.xlu1 %1716  ;;  %v1715_v17 = vpop.xlane.xlu0 %1714 }
 0x57b   :  { %v1709_v36 = vadd.s32 %v1708_v37, %v1706_v41  ;;  %v1719_v13 = vcvt.f32.s32 %v1717_v24  ;;  %v1718_v16 = vcvt.f32.s32 %v1715_v17 }
 0x57d   :  { %v2582_v6 = vrot.slane %v1709_v36, %v3551_v15  ;;  %v1720_v48 = vshll.u32 %v1719_v13, 16 }
 0x57e   :  { %2836 = shalt.err (!%p2833_p9)
}
 0x57f   :  { %2769 = dma.vmem_to_hbm [thread:$0]  %s2767_s30, 128, %s4254_s3, [#allocation9]   ;;  %v1729_v22 = vpop.xlane.xlu1 %1728  ;;  %v1727_v11 = vpop.xlane.xlu0 %1726  ;;  %v2583_v1 = vsel %vm2080_vm12, %v2582_v6, %v2578_v62  ;;  %v1721_v60 = vadd.s32 %v1720_v48, %v1718_v16  ;;  %vm4428_vm0 = vcmask 851712   ;;  %vm4429_vm15 = vcmask 917312  }
 0x580   :  { %v1731_v45 = vcvt.f32.s32 %v1729_v22  ;;  %v1730_v28 = vcvt.f32.s32 %v1727_v11  ;;  %vm2743_vm8 = vcmask 1046534   ;;  %s2885_s3 = smov [#allocation7]  }
 0x581   :  { %v2587_v8 = vrot.slane %v1721_v60, %v3557_v46  ;;  %s2756_s7 = sshll.u32 %s2885_s3, 4  ;;  %s2757_s7 = int_to_ptr.vmem [resolvable:$true] %s2756_s7 }
 0x582   :  { %v1732_v57 = vshll.u32 %v1731_v45, 16  ;;  %s2845_s8 = scalar_lea.vmem %s2757_s7, 128  ;;  %p2850_p11 = scmp.lt.s32.totalorder %s2757_s7, %s2757_s7 }
 0x583   :  { %v1741_v58 = vpop.xlane.xlu1 %1740  ;;  %v1739_v61 = vpop.xlane.xlu0 %1738  ;;  %v2588_v4 = vsel %vm2087_vm13, %v2587_v8, %v2583_v1  ;;  %p2846_p10 = scmp.ne.s32.totalorder %s2757_s7, %s2845_s8  ;;  %p2851_p12 = scmp.lt.s32.totalorder %s2845_s8, %s2845_s8 }
 0x584   :  { %v1733_v32 = vadd.s32 %v1732_v57, %v1730_v28  ;;  %v1743_v30 = vcvt.f32.s32 %v1741_v58  ;;  %v1742_v12 = vcvt.f32.s32 %v1739_v61 }
 0x585   :  { %p2852_p13 = por %p2851_p12, %p2850_p11 }
 0x586   :  { %v2592_v10 = vrot.slane %v1733_v32, %v3581_v51  ;;  %v1744_v52 = vshll.u32 %v1743_v30, 16 }
 0x587   :  { %v1753_v7 = vpop.xlane.xlu1 %1752  ;;  %v1751_v21 = vpop.xlane.xlu0 %1750  ;;  %p2853_p0 = pnand %p2852_p13, %p2846_p10 }
 0x588   :  { %v2593_v25 = vsel %vm2094_vm14, %v2592_v10, %v2588_v4  ;;  %v1745_v53 = vadd.s32 %v1744_v52, %v1742_v12  ;;  %v1755_v26 = vcvt.f32.s32 %v1753_v7  ;;  %v1754_v55 = vcvt.f32.s32 %v1751_v21 }
 0x58a   :  { %v2597_v38 = vrot.slane %v1745_v53, %v3599_v27  ;;  %v1756_v18 = vshll.u32 %v1755_v26, 16 }
 0x58b   :  { %v1765_v2 = vpop.xlane.xlu1 %1764  ;;  %v1763_v59 = vpop.xlane.xlu0 %1762 }
 0x58c   :  { %v2598_v40 = vsel %vm2101_vm2, %v2597_v38, %v2593_v25  ;;  %v1757_v54 = vadd.s32 %v1756_v18, %v1754_v55  ;;  %v1767_v39 = vcvt.f32.s32 %v1765_v2  ;;  %v1766_v14 = vcvt.f32.s32 %v1763_v59 }
 0x58e   :  { %v2602_v63 = vrot.slane %v1757_v54, %v3610_v35  ;;  %v1768_v42 = vshll.u32 %v1767_v39, 16 }
 0x58f   :  { %v1777_v49 = vpop.xlane.xlu1 %1776  ;;  %v1775_v43 = vpop.xlane.xlu0 %1774 }
 0x590   :  { %v2603_v34 = vsel %vm2108_vm6, %v2602_v63, %v2598_v40  ;;  %v1769_v0 = vadd.s32 %v1768_v42, %v1766_v14  ;;  %v1779_v9 = vcvt.f32.s32 %v1777_v49  ;;  %v1778_v24 = vcvt.f32.s32 %v1775_v43 }
 0x592   :  { %v2607_v37 = vrot.slane %v1769_v0, %v3615_v47  ;;  %v1780_v41 = vshll.u32 %v1779_v9, 16 }
 0x593   :  { %v1801_v17 = vpop.xlane.xlu1 %1800  ;;  %v1789_v36 = vpop.xlane.xlu0 %1788 }
 0x594   :  { %v2608_v13 = vsel %vm2115_vm7, %v2607_v37, %v2603_v34  ;;  %v1781_v62 = vadd.s32 %v1780_v41, %v1778_v24  ;;  %v1791_v6 = vcvt.f32.s32 %v1789_v36  ;;  %v1803_v1 = vcvt.f32.s32 %v1801_v17 }
 0x596   :  { %v2612_v48 = vrot.slane %v1781_v62, %v3648_v44  ;;  %v1792_v60 = vshll.u32 %v1791_v6, 16  ;;  %v1804_v58 = vshll.u32 %v1803_v1, 16 }
 0x597   :  { %v1813_v16 = vpop.xlane.xlu1 %1812  ;;  %v1787_v22 = vpop.xlane.xlu0 %1786 }
 0x598   :  { %v2613_v11 = vsel %vm2122_vm11, %v2612_v48, %v2608_v13  ;;  %v1790_v45 = vcvt.f32.s32 %v1787_v22  ;;  %v1815_v61 = vcvt.f32.s32 %v1813_v16 }
 0x59a   :  { %v1793_v8 = vadd.s32 %v1792_v60, %v1790_v45  ;;  %v1816_v7 = vshll.u32 %v1815_v61, 16 }
 0x59b   :  { %v1825_v57 = vpop.xlane.xlu1 %1824  ;;  %v1799_v28 = vpop.xlane.xlu0 %1798 }
 0x59c   :  { %v2617_v4 = vrot.slane %v1793_v8, %v3659_v19  ;;  %v1802_v32 = vcvt.f32.s32 %v1799_v28  ;;  %v1827_v21 = vcvt.f32.s32 %v1825_v57 }
 0x59e   :  { %v2618_v30 = vsel %vm2129_vm1, %v2617_v4, %v2613_v11  ;;  %v1805_v10 = vadd.s32 %v1804_v58, %v1802_v32  ;;  %v1828_v2 = vshll.u32 %v1827_v21, 16 }
 0x59f   :  { %v1837_v52 = vpop.xlane.xlu1 %1836  ;;  %v1811_v12 = vpop.xlane.xlu0 %1810 }
 0x5a0   :  { %v2622_v25 = vrot.slane %v1805_v10, %v3681_v23  ;;  %v1814_v53 = vcvt.f32.s32 %v1811_v12  ;;  %v1839_v59 = vcvt.f32.s32 %v1837_v52 }
 0x5a2   :  { %v2623_v26 = vsel %vm2136_vm3, %v2622_v25, %v2618_v30  ;;  %v1817_v38 = vadd.s32 %v1816_v7, %v1814_v53  ;;  %v1840_v49 = vshll.u32 %v1839_v59, 16 }
 0x5a3   :  { %v1849_v18 = vpop.xlane.xlu1 %1848  ;;  %v1823_v55 = vpop.xlane.xlu0 %1822 }
 0x5a4   :  { %v2627_v40 = vrot.slane %v1817_v38, %v3694_v5  ;;  %v1826_v54 = vcvt.f32.s32 %v1823_v55  ;;  %v1851_v43 = vcvt.f32.s32 %v1849_v18 }
 0x5a6   :  { %v2628_v39 = vsel %vm2143_vm10, %v2627_v40, %v2623_v26  ;;  %v1829_v63 = vadd.s32 %v1828_v2, %v1826_v54  ;;  %v1852_v36 = vshll.u32 %v1851_v43, 16 }
 0x5a7   :  { %v1861_v42 = vpop.xlane.xlu1 %1860  ;;  %v1835_v14 = vpop.xlane.xlu0 %1834 }
 0x5a8   :  { %v2632_v34 = vrot.slane %v1829_v63, %v3718_v3  ;;  %v1838_v0 = vcvt.f32.s32 %v1835_v14  ;;  %v1863_v41 = vcvt.f32.s32 %v1861_v42 }
 0x5aa   :  { %v2633_v9 = vsel %vm2150_vm4, %v2632_v34, %v2628_v39  ;;  %v1841_v37 = vadd.s32 %v1840_v49, %v1838_v0  ;;  %v1864_v22 = vshll.u32 %v1863_v41, 16 }
 0x5ab   :  { %v1873_v24 = vpop.xlane.xlu1 %1872  ;;  %v1847_v17 = vpop.xlane.xlu0 %1846 }
 0x5ac   :  { %v2637_v13 = vrot.slane %v1841_v37, %v3721_v56  ;;  %v1875_v62 = vcvt.f32.s32 %v1873_v24  ;;  %v1850_v6 = vcvt.f32.s32 %v1847_v17 }
 0x5ae   :  { %v2638_v48 = vsel %vm4428_vm0, %v2637_v13, %v2633_v9  ;;  %v1853_v16 = vadd.s32 %v1852_v36, %v1850_v6  ;;  %v1876_v60 = vshll.u32 %v1875_v62, 16 }
 0x5af   :  { %v1871_v11 = vpop.xlane.xlu1 %1870  ;;  %v1859_v1 = vpop.xlane.xlu0 %1858 }
 0x5b0   :  { %v2642_v45 = vrot.slane %v1853_v16, %v3749_v33  ;;  %v1874_v8 = vcvt.f32.s32 %v1871_v11  ;;  %v1862_v57 = vcvt.f32.s32 %v1859_v1 }
 0x5b2   :  { %v2643_v28 = vsel %vm4429_vm15, %v2642_v45, %v2638_v48  ;;  %v1877_v58 = vadd.s32 %v1876_v60, %v1874_v8  ;;  %v1865_v61 = vadd.s32 %v1864_v22, %v1862_v57 }
 0x5b3   :  { %v1897_v4 = vpop.xlane.xlu1 %1896  ;;  %v1885_v32 = vpop.xlane.xlu0 %1884 }
 0x5b4   :  { %v2652_v30 = vrot.slane %v1877_v58, %v3779_v29  ;;  %v2647_v10 = vrot.slane %v1865_v61, %v3752_v20  ;;  %v1899_v43 = vcvt.f32.s32 %v1897_v4  ;;  %v1887_v34 = vcvt.f32.s32 %v1885_v32 }
 0x5b6   :  { %v2648_v52 = vsel %vm2171_vm5, %v2647_v10, %v2643_v28  ;;  %v1900_v41 = vshll.u32 %v1899_v43, 16  ;;  %v1888_v24 = vshll.u32 %v1887_v34, 16 }
 0x5b7   :  { %v1909_v12 = vpop.xlane.xlu0 %1908  ;;  %v1883_v7 = vpop.xlane.xlu1 %1882  ;;  %v2653_v21 = vsel %vm2178_vm9, %v2652_v30, %v2648_v52 }
 0x5b8   :  { %v4212_v25 = vsel %vm2743_vm8, %v2653_v21, %v4175_v31  ;;  %v1886_v9 = vcvt.f32.s32 %v1883_v7  ;;  %v1911_v17 = vcvt.f32.s32 %v1909_v12 }
 0x5ba   :  { %v1889_v62 = vadd.s32 %v1888_v24, %v1886_v9  ;;  %v1912_v60 = vshll.u32 %v1911_v17, 16 }
 0x5bb   :  { %v1895_v53 = vpop.xlane.xlu0 %1894  ;;  %v1921_v26 = vpop.xlane.xlu1 %1920 }
 0x5bc   :  { %v1898_v0 = vcvt.f32.s32 %v1895_v53  ;;  %v1923_v13 = vcvt.f32.s32 %v1921_v26  ;;  %v2657_v28 = vrot.slane %v1889_v62, %v3548_v50 }
 0x5be   :  { %v1901_v36 = vadd.s32 %v1900_v41, %v1898_v0  ;;  %v1924_v8 = vshll.u32 %v1923_v13, 16 }
 0x5bf   :  { %v1907_v38 = vpop.xlane.xlu0 %1906  ;;  %v1933_v18 = vpop.xlane.xlu1 %1932 }
 0x5c0   :  { %v1910_v16 = vcvt.f32.s32 %v1907_v38  ;;  %v1935_v22 = vcvt.f32.s32 %v1933_v18  ;;  %v2661_v45 = vrot.slane %v1901_v36, %v3551_v15 }
 0x5c2   :  { %v1913_v30 = vadd.s32 %v1912_v60, %v1910_v16  ;;  %v1936_v10 = vshll.u32 %v1935_v22, 16  ;;  %v2662_v26 = vsel %vm2080_vm12, %v2661_v45, %v2657_v28  ;;  %vm4430_vm12 = vmmov %vm4428_vm0 }
 0x5c3   :  { %v1919_v55 = vpop.xlane.xlu0 %1918  ;;  %v1945_v2 = vpop.xlane.xlu1 %1944 }
 0x5c4   :  { %v1922_v11 = vcvt.f32.s32 %v1919_v55  ;;  %v1947_v1 = vcvt.f32.s32 %v1945_v2 }
 0x5c6   :  { %v1925_v52 = vadd.s32 %v1924_v8, %v1922_v11  ;;  %v1948_v7 = vshll.u32 %v1947_v1, 16 }
 0x5c7   :  { %v1931_v59 = vpop.xlane.xlu0 %1930  ;;  %v1957_v40 = vpop.xlane.xlu1 %1956 }
 0x5c8   :  { %v1934_v57 = vcvt.f32.s32 %v1931_v59  ;;  %v1959_v58 = vcvt.f32.s32 %v1957_v40  ;;  %v2671_v43 = vrot.slane %v1925_v52, %v3581_v51 }
 0x5ca   :  { %v1937_v38 = vadd.s32 %v1936_v10, %v1934_v57  ;;  %v1960_v15 = vshll.u32 %v1959_v58, 16 }
 0x5cb   :  { %v1969_v54 = vpop.xlane.xlu0 %1968  ;;  %v1943_v39 = vpop.xlane.xlu1 %1942 }
 0x5cc   :  { %v1946_v61 = vcvt.f32.s32 %v1943_v39  ;;  %v1971_v12 = vcvt.f32.s32 %v1969_v54  ;;  %v2666_v39 = vrot.slane %v1913_v30, %v3557_v46  ;;  %v2676_v41 = vrot.slane %v1937_v38, %v3599_v27 }
 0x5ce   :  { %v1949_v55 = vadd.s32 %v1948_v7, %v1946_v61  ;;  %v1972_v34 = vshll.u32 %v1971_v12, 16  ;;  %v2667_v51 = vsel %vm2087_vm13, %v2666_v39, %v2662_v26  ;;  %vm4431_vm13 = vmmov %vm4429_vm15 }
 0x5cf   :  { %v1955_v63 = vpop.xlane.xlu0 %1954  ;;  %v1981_v42 = vpop.xlane.xlu1 %1980 }
 0x5d0   :  { %v1958_v21 = vcvt.f32.s32 %v1955_v63  ;;  %v1983_v53 = vcvt.f32.s32 %v1981_v42 }
 0x5d2   :  { %v1961_v54 = vadd.s32 %v1960_v15, %v1958_v21  ;;  %v1984_v9 = vshll.u32 %v1983_v53, 16 }
 0x5d3   :  { %v1967_v14 = vpop.xlane.xlu0 %1966  ;;  %v1993_v49 = vpop.xlane.xlu1 %1992 }
 0x5d4   :  { %v1970_v18 = vcvt.f32.s32 %v1967_v14  ;;  %v1995_v2 = vcvt.f32.s32 %v1993_v49  ;;  %v2681_v49 = vrot.slane %v1949_v55, %v3610_v35 }
 0x5d6   :  { %v1973_v24 = vadd.s32 %v1972_v34, %v1970_v18 }
 0x5d7   :  { %v1979_v31 = vpop.xlane.xlu0 %1978  ;;  %v2005_v37 = vpop.xlane.xlu1 %2004 }
 0x5d8   :  { %v1982_v59 = vcvt.f32.s32 %v1979_v31  ;;  %v2007_v0 = vcvt.f32.s32 %v2005_v37  ;;  %v1996_v31 = vshll.u32 %v1995_v2, 16  ;;  %v2691_v35 = vrot.slane %v1973_v24, %v3648_v44 }
 0x5da   :  { %v1985_v36 = vadd.s32 %v1984_v9, %v1982_v59  ;;  %v2008_v16 = vshll.u32 %v2007_v0, 16  ;;  %v4432_v9 = vld [vmem:[#allocation15_spill] sm:$0xff] }
 0x5db   :  { %v1991_v6 = vpop.xlane.xlu0 %1990  ;;  %v2017_v48 = vpop.xlane.xlu1 %2016 }
 0x5dc   :  { %v1994_v63 = vcvt.f32.s32 %v1991_v6  ;;  %v2019_v42 = vcvt.f32.s32 %v2017_v48  ;;  %v2672_v6 = vsel %vm2094_vm14, %v2671_v43, %v2667_v51  ;;  %v2686_v48 = vrot.slane %v1961_v54, %v3615_v47 }
 0x5dd   :  { %v2677_v1 = vsel %vm2101_vm2, %v2676_v41, %v2672_v6  ;;  %v2696_v57 = vrot.slane %v1985_v36, %v3659_v19  ;;  %vm2745_vm14 = vcmask 1047559  }
 0x5de   :  { %v1997_v27 = vadd.s32 %v1996_v31, %v1994_v63  ;;  %v2020_v11 = vshll.u32 %v2019_v42, 16  ;;  %v2682_v8 = vsel %vm2108_vm6, %v2681_v49, %v2677_v1  ;;  %v4433_v63 = vld [vmem:[#allocation14_spill] sm:$0xff] }
 0x5df   :  { %v2003_v4 = vpop.xlane.xlu0 %2002  ;;  %v2029_v32 = vpop.xlane.xlu1 %2028  ;;  %v2687_v52 = vsel %vm2115_vm7, %v2686_v48, %v2682_v8  ;;  %vm2070_vm2 = vcmp.lt.s32.totalorder %v4433_v63, %v4432_v9 }
 0x5e0   :  { %v2006_v14 = vcvt.f32.s32 %v2003_v4  ;;  %v2031_v17 = vcvt.f32.s32 %v2029_v32  ;;  %v2701_v12 = vrot.slane %v1997_v27, %v3681_v23  ;;  %v2692_v44 = vsel %vm2122_vm11, %v2691_v35, %v2687_v52 }
 0x5e1   :  { %v2697_v53 = vsel %vm2129_vm1, %v2696_v57, %v2692_v44 }
 0x5e2   :  { %v2009_v60 = vadd.s32 %v2008_v16, %v2006_v14  ;;  %v2032_v45 = vshll.u32 %v2031_v17, 16 }
 0x5e3   :  { %v2015_v50 = vpop.xlane.xlu0 %2014  ;;  %v2041_v40 = vpop.xlane.xlu1 %2040 }
 0x5e4   :  { %v2018_v13 = vcvt.f32.s32 %v2015_v50  ;;  %v2043_v37 = vcvt.f32.s32 %v2041_v40  ;;  %v2706_v7 = vrot.slane %v2009_v60, %v3694_v5  ;;  %v2702_v50 = vsel %vm2136_vm3, %v2701_v12, %v2697_v53 }
 0x5e6   :  { %v2021_v28 = vadd.s32 %v2020_v11, %v2018_v13  ;;  %v2044_v32 = vshll.u32 %v2043_v37, 16  ;;  %v2707_v40 = vsel %vm2143_vm10, %v2706_v7, %v2702_v50 }
 0x5e7   :  { %v2027_v62 = vpop.xlane.xlu0 %2026  ;;  %v2053_v46 = vpop.xlane.xlu1 %2052 }
 0x5e8   :  { %v2030_v22 = vcvt.f32.s32 %v2027_v62  ;;  %v2055_v58 = vcvt.f32.s32 %v2053_v46  ;;  %v2711_v19 = vrot.slane %v2021_v28, %v3718_v3 }
 0x5ea   :  { %v2033_v30 = vadd.s32 %v2032_v45, %v2030_v22  ;;  %v2056_v26 = vshll.u32 %v2055_v58, 16  ;;  %v2712_v43 = vsel %vm2150_vm4, %v2711_v19, %v2707_v40 }
 0x5eb   :  { %v2065_v61 = vpop.xlane.xlu0 %2064  ;;  %v2039_v4 = vpop.xlane.xlu1 %2038 }
 0x5ec   :  { %v2067_v10 = vcvt.f32.s32 %v2065_v61  ;;  %v2042_v47 = vcvt.f32.s32 %v2039_v4  ;;  %v2716_v15 = vrot.slane %v2033_v30, %v3721_v56 }
 0x5ee   :  { %v2045_v21 = vadd.s32 %v2044_v32, %v2042_v47  ;;  %v2068_v55 = vshll.u32 %v2067_v10, 16  ;;  %v2717_v3 = vsel %vm4430_vm12, %v2716_v15, %v2712_v43 }
 0x5ef   :  { %v2051_v38 = vpop.xlane.xlu0 %2050  ;;  %v2063_v18 = vpop.xlane.xlu1 %2062 }
 0x5f0   :  { %v2054_v2 = vcvt.f32.s32 %v2051_v38  ;;  %v2066_v59 = vcvt.f32.s32 %v2063_v18  ;;  %v2721_v23 = vrot.slane %v2045_v21, %v3749_v33 }
 0x5f2   :  { %v2057_v5 = vadd.s32 %v2056_v26, %v2054_v2  ;;  %v2069_v39 = vadd.s32 %v2068_v55, %v2066_v59  ;;  %v2722_v56 = vsel %vm4431_vm13, %v2721_v23, %v2717_v3 }
 0x5f4   :  { %v2726_v34 = vrot.slane %v2057_v5, %v3752_v20  ;;  %v2731_v0 = vrot.slane %v2069_v39, %v3779_v29 }
 0x5f6   :  { %v2727_v54 = vsel %vm2171_vm5, %v2726_v34, %v2722_v56 }
 0x5f7   :  { %v2732_v33 = vsel %vm2178_vm9, %v2731_v0, %v2727_v54 }
 0x5f8   :  { %v2746_v42 = vsel %vm2745_vm14, %v2732_v33, %v4212_v25 }
 0x5f9   :  { %v2747_v41 = vsel %vm2070_vm2, %v2746_v42, 4294967295 }
 0x5fa   :  { %2748 = vst [vmem:[#allocation7] sm:$0xff] %v2747_v41 }
 0x5fb   :  { %2856 = shalt.err (!%p2853_p0)
}
 0x5fc   :  { %2759 = dma.vmem_to_hbm [thread:$0]  %s2757_s7, 128, %s4253_s2, [#allocation6]  }
 0x5fd   :  { %2869 = dma.done.wait [#allocation6], 128  }
 0x5fe   :  { %2870 = vsyncadd [#allocation6], 4294967168 }
 0x5ff   :  { %2871 = dma.done.wait [#allocation9], 128  }
 0x600   :  { %2872 = vsyncadd [#allocation9], 4294967168 }
 0x601   :  { %2776 = vsyncpa [#allocation5], 1 }
 0x602   :  { %2777 = vsyncpa [#allocation6], 1 }
 0x603   :  { %2778 = vsyncpa [#allocation9], 1 }

</bundles_post_ra>
